<compile_context>
chip_gen: v6e
topology: v6e:2x2x1
jax: 0.10.0
libtpu: 0.0.40
codegen_flags: <defaults>
</compile_context>

<pallas_src>
import functools

import jax
import jax.numpy as jnp
from jax import lax
from jax.experimental import pallas as pl
from jax.experimental.pallas import tpu as pltpu


def _round_up(x, m):
    return ((x + m - 1) // m) * m


def _vmem_limit_bytes():
    cap = 64 * 1024 * 1024  # conservative default (v7x physical VMEM per TC)
    try:
        info = pltpu.get_tpu_info()
        cap = int(getattr(info, "vmem_capacity_bytes", cap))
    except Exception:
        pass
    # Leave headroom below physical; never ask for more than ~112 MiB.
    return int(min(max(cap - 8 * 1024 * 1024, 32 * 1024 * 1024),
                   112 * 1024 * 1024))


def _pick_tiles(H_pad, W_pad, C_in, H_out, W_out, kH, kW, C_out_pad,
                in_bytes, out_bytes, budget_bytes):
    # Output-channel tile: lane-dense multiple of 128 dividing C_out_pad.
    # Prefer >=256 so the 256-wide v6e/v7x MXU N dimension stays full.
    if C_out_pad <= 512:
        tn = C_out_pad
    elif C_out_pad % 256 == 0:
        tn = 256
    elif C_out_pad % 384 == 0:
        tn = 384
    else:
        tn = 128

    x_bytes = 2 * H_pad * W_pad * C_in * in_bytes       # image (double buffered)
    w_bytes = 2 * kH * kW * C_in * tn * in_bytes        # weight tile (double buffered)

    def fits(th):
        rows = th * W_out
        tile_bytes = (2 * rows * tn * out_bytes          # out tile (double buffered)
                      + rows * tn * 4                    # f32 accumulator
                      + rows * C_in * 4)                 # per-tap patch value
        return x_bytes + w_bytes + tile_bytes <= budget_bytes

    # Row tile = th output rows; th must divide H_out and th*W_out should be a
    # sublane multiple (or the full extent) for an unmasked lane-dense store.
    cands = [t for t in range(1, H_out + 1)
             if H_out % t == 0 and ((t * W_out) % 8 == 0 or t == H_out)]
    cands.sort(reverse=True)
    th = cands[-1]
    for t in cands:
        if t * W_out <= 4096 and fits(t):
            th = t
            break
    return th, tn


def _conv_bn_act_kernel(x_ref, w_ref, b_ref, o_ref, *, kH, kW, stride, th, W_out):
    # x_ref: (1, H_pad, W_pad, C_in)  whole padded image (resident per batch n)
    # w_ref: (kH, kW, C_in, tn)       BN-scale-folded conv weights (compute dtype)
    # b_ref: (1, tn)                  f32 BN bias (beta - mean * scale)
    # o_ref: (1, th*W_out, tn)        output row tile (lane-dense channels)
    i = pl.program_id(1)
    c_in = x_ref.shape[-1]
    tn = o_ref.shape[-1]
    rows = th * W_out
    r0 = pl.multiple_of(i * (th * stride), th * stride)  # first input row of tile

    acc = jnp.zeros((rows, tn), jnp.float32)
    for kh in range(kH):            # static tap loops -> unrolled MXU dots
        for kw in range(kW):
            if stride == 1:
                patch = x_ref[0, pl.ds(r0 + kh, th), pl.ds(kw, W_out), :]
            else:
                patch = x_ref[0,
                              pl.ds(r0 + kh, th, stride=stride),
                              pl.ds(kw, W_out, stride=stride), :]
            acc = acc + jnp.dot(patch.reshape(rows, c_in),
                                w_ref[kh, kw, :, :],
                                preferred_element_type=jnp.float32)

    y = jnp.maximum(acc + b_ref[...], 0.0)               # bias + ReLU epilogue
    o_ref[...] = y.astype(o_ref.dtype).reshape(o_ref.shape)


def conv_bn_act(x_nchw, weight, gamma, beta, running_mean, running_var, *,
                stride=1, padding=1, eps=1e-5,
                compute_dtype=jnp.bfloat16, out_dtype=jnp.float32,
                out_layout="NCHW"):
    """ConvBnAct forward. x_nchw: (N, C_in, H, W); weight: (C_out, C_in, kH, kW)."""
    N, C_in, H, W = x_nchw.shape
    C_out, C_in_w, kH, kW = weight.shape
    assert C_in_w == C_in
    stride = int(stride)
    padding = int(padding)

    H_out = (H + 2 * padding - kH) // stride + 1
    W_out = (W + 2 * padding - kW) // stride + 1
    H_pad, W_pad = H + 2 * padding, W + 2 * padding

    # NCHW -> NHWC, spatial zero pad, compute dtype: one cheap input-sized pass
    # (instead of a kH*kW-inflated im2col materialization).
    x = jnp.transpose(x_nchw, (0, 2, 3, 1)).astype(compute_dtype)
    if padding:
        x = jnp.pad(x, ((0, 0), (padding, padding), (padding, padding), (0, 0)))

    # Fold BN (inference) into the weights (scale) and a per-channel bias.
    scale = (gamma.astype(jnp.float32)
             / jnp.sqrt(running_var.astype(jnp.float32) + eps))
    bias = beta.astype(jnp.float32) - running_mean.astype(jnp.float32) * scale

    C_out_pad = _round_up(C_out, 128)
    w = weight.astype(jnp.float32) * scale[:, None, None, None]   # fold scale
    w = jnp.transpose(w, (2, 3, 1, 0)).astype(compute_dtype)      # (kH,kW,C_in,C_out)
    w = jnp.pad(w, ((0, 0), (0, 0), (0, 0), (0, C_out_pad - C_out)))
    bias_p = jnp.pad(bias, (0, C_out_pad - C_out)).reshape(1, C_out_pad)

    in_bytes = jnp.dtype(compute_dtype).itemsize
    out_bytes = jnp.dtype(out_dtype).itemsize
    vmem_limit = _vmem_limit_bytes()
    th, tn = _pick_tiles(H_pad, W_pad, C_in, H_out, W_out, kH, kW, C_out_pad,
                         in_bytes, out_bytes, budget_bytes=int(0.8 * vmem_limit))

    grid = (N, H_out // th, C_out_pad // tn)
    kernel = functools.partial(_conv_bn_act_kernel, kH=kH, kW=kW,
                               stride=stride, th=th, W_out=W_out)

    out_flat = pl.pallas_call(
        kernel,
        out_shape=jax.ShapeDtypeStruct((N, H_out * W_out, C_out_pad), out_dtype),
        grid_spec=pltpu.PrefetchScalarGridSpec(
            num_scalar_prefetch=0,
            grid=grid,
            in_specs=[
                # whole padded image, resident across (i, j) for a given n
                pl.BlockSpec((1, H_pad, W_pad, C_in), lambda n, i, j: (n, 0, 0, 0)),
                # scale-folded weights, tiled only over output channels
                pl.BlockSpec((kH, kW, C_in, tn), lambda n, i, j: (0, 0, 0, j)),
                # BN bias
                pl.BlockSpec((1, tn), lambda n, i, j: (0, j)),
            ],
            out_specs=pl.BlockSpec((1, th * W_out, tn), lambda n, i, j: (n, i, j)),
        ),
        compiler_params=pltpu.CompilerParams(
            dimension_semantics=("parallel", "parallel", "parallel"),
            vmem_limit_bytes=vmem_limit,
        ),
    )(x, w, bias_p)

    out = out_flat[:, :, :C_out].reshape(N, H_out, W_out, C_out)
    if out_layout == "NCHW":
        out = out.transpose(0, 3, 1, 2)
    return out


def _reference(x, weight, gamma, beta, mean, var, *, stride, padding, eps,
               quantize_dtype=None):
    scale = gamma / jnp.sqrt(var + eps)
    bias = beta - mean * scale
    w = weight * scale[:, None, None, None]
    if quantize_dtype is not None:
        x = x.astype(quantize_dtype).astype(jnp.float32)
        w = w.astype(quantize_dtype).astype(jnp.float32)
    y = lax.conv_general_dilated(
        x, w, window_strides=(stride, stride),
        padding=((padding, padding), (padding, padding)),
        dimension_numbers=("NCHW", "OIHW", "NCHW"),
        precision=lax.Precision.HIGHEST)
    y = y + bias[None, :, None, None]
    return jnp.maximum(y, 0.0)


if __name__ == "__main__":
    key = jax.random.PRNGKey(0)
    ks = jax.random.split(key, 12)

    # ---- Test 1 & 2: 3x3 conv, pad 1, stride 1, non-square spatial --------
    N, C_in, H, W = 2, 4, 16, 12
    C_out, kH, kW = 8, 3, 3

    x = jax.random.normal(ks[0], (N, C_in, H, W), dtype=jnp.float32)
    weight = 0.1 * jax.random.normal(ks[1], (C_out, C_in, kH, kW), dtype=jnp.float32)
    gamma = 1.0 + 0.1 * jax.random.normal(ks[2], (C_out,), dtype=jnp.float32)
    beta = 0.1 * jax.random.normal(ks[3], (C_out,), dtype=jnp.float32)
    r_mean = 0.1 * jax.random.normal(ks[4], (C_out,), dtype=jnp.float32)
    r_var = jnp.abs(1.0 + 0.1 * jax.random.normal(ks[5], (C_out,), dtype=jnp.float32))

    # bf16 MXU operands, f32 accumulation (default fast path).
    out_bf16 = conv_bn_act(x, weight, gamma, beta, r_mean, r_var,
                           stride=1, padding=1)
    out_bf16 = jax.block_until_ready(out_bf16)
    assert out_bf16.shape == (N, C_out, H, W)
    ref_bf16 = _reference(x, weight, gamma, beta, r_mean, r_var,
                          stride=1, padding=1, eps=1e-5,
                          quantize_dtype=jnp.bfloat16)
    assert jnp.allclose(out_bf16, ref_bf16, atol=2e-2, rtol=2e-2), \
        "bf16 path mismatch vs reference"

    # Full-precision path: tight check of the fused conv+BN+ReLU logic.
    out_f32 = conv_bn_act(x, weight, gamma, beta, r_mean, r_var,
                          stride=1, padding=1, compute_dtype=jnp.float32)
    out_f32 = jax.block_until_ready(out_f32)
    ref_f32 = _reference(x, weight, gamma, beta, r_mean, r_var,
                         stride=1, padding=1, eps=1e-5)
    assert jnp.allclose(out_f32, ref_f32, atol=5e-4, rtol=5e-4), \
        "f32 path mismatch vs reference"

    # ---- Test 3: 1x1 conv, pad 0, channel counts that are not multiples ----
    N2, C_in2, H2, W2, C_out2 = 2, 5, 8, 8, 10
    x2 = jax.random.normal(ks[6], (N2, C_in2, H2, W2), dtype=jnp.float32)
    w2 = 0.1 * jax.random.normal(ks[7], (C_out2, C_in2, 1, 1), dtype=jnp.float32)
    g2 = 1.0 + 0.1 * jax.random.normal(ks[8], (C_out2,), dtype=jnp.float32)
    b2 = 0.1 * jax.random.normal(ks[9], (C_out2,), dtype=jnp.float32)
    m2 = 0.1 * jax.random.normal(ks[10], (C_out2,), dtype=jnp.float32)
    v2 = jnp.abs(1.0 + 0.1 * jax.random.normal(ks[11], (C_out2,), dtype=jnp.float32))

    out2 = conv_bn_act(x2, w2, g2, b2, m2, v2, stride=1, padding=0,
                       compute_dtype=jnp.float32)
    out2 = jax.block_until_ready(out2)
    assert out2.shape == (N2, C_out2, H2, W2)
    ref2 = _reference(x2, w2, g2, b2, m2, v2, stride=1, padding=0, eps=1e-5)
    assert jnp.allclose(out2, ref2, atol=5e-4, rtol=5e-4), \
        "1x1 conv path mismatch vs reference"

    print("KERNEL_OK")
</pallas_src>

<mosaic_0001>
module attributes {stable_mosaic.version = 11 : i64} {
  func.func @_conv_bn_act_kernel(%arg0: i32, %arg1: i32, %arg2: i32, %arg3: memref<1x18x14x4xbf16, #tpu.memory_space<vmem>>, %arg4: memref<3x3x4x128xbf16, #tpu.memory_space<vmem>>, %arg5: memref<1x128xf32, #tpu.memory_space<vmem>>, %arg6: memref<1x192x128xf32, #tpu.memory_space<vmem>>) attributes {dimension_semantics = [#tpu.dimension_semantics<parallel>, #tpu.dimension_semantics<parallel>, #tpu.dimension_semantics<parallel>], iteration_bounds = array<i64: 2, 1, 1>, scalar_prefetch = 0 : i64, scratch_operands = 0 : i64, tpu.core_type = #tpu.core_type<tc>, window_params = [{transform_indices = @transform_0, window_bounds = array<i64: 1, 18, 14, 4>}, {transform_indices = @transform_1, window_bounds = array<i64: 3, 3, 4, 128>}, {transform_indices = @transform_2, window_bounds = array<i64: 1, 128>}, {transform_indices = @transform_3, window_bounds = array<i64: 1, 192, 128>}]} {
    %c16_i32 = arith.constant 16 : i32
    %0 = arith.muli %arg1, %c16_i32 : i32
    %1 = tpu.assume_multiple %0, 16 : i32
    %cst = arith.constant 0.000000e+00 : f32
    %2 = vector.broadcast %cst : f32 to vector<192x128xf32>
    %c0_i32 = arith.constant 0 : i32
    %3 = arith.addi %1, %c0_i32 : i32
    %c0 = arith.constant 0 : index
    %4 = arith.index_cast %3 : i32 to index
    %c0_0 = arith.constant 0 : index
    %c0_1 = arith.constant 0 : index
    %5 = vector.load %arg3[%c0, %4, %c0_0, %c0_1] : memref<1x18x14x4xbf16, #tpu.memory_space<vmem>>, vector<1x16x12x4xbf16>
    %6 = vector.shape_cast %5 : vector<1x16x12x4xbf16> to vector<16x12x4xbf16>
    %7 = vector.shape_cast %6 : vector<16x12x4xbf16> to vector<192x4xbf16>
    %c0_2 = arith.constant 0 : index
    %c0_3 = arith.constant 0 : index
    %c0_4 = arith.constant 0 : index
    %c0_5 = arith.constant 0 : index
    %8 = vector.load %arg4[%c0_2, %c0_3, %c0_4, %c0_5] : memref<3x3x4x128xbf16, #tpu.memory_space<vmem>>, vector<1x1x4x128xbf16>
    %9 = vector.shape_cast %8 : vector<1x1x4x128xbf16> to vector<4x128xbf16>
    %cst_6 = arith.constant dense<0.000000e+00> : vector<192x128xf32>
    %10 = tpu.matmul %7, %9, %cst_6 {dimension_numbers = #tpu.dot_dimension_numbers<[1], [0], [0], [1], [0, 0, 1, 1], [], []>} : vector<192x4xbf16>, vector<4x128xbf16>, vector<192x128xf32> -> vector<192x128xf32>
    %11 = arith.addf %2, %10 : vector<192x128xf32>
    %c0_i32_7 = arith.constant 0 : i32
    %12 = arith.addi %1, %c0_i32_7 : i32
    %c0_8 = arith.constant 0 : index
    %13 = arith.index_cast %12 : i32 to index
    %c1 = arith.constant 1 : index
    %c0_9 = arith.constant 0 : index
    %14 = vector.load %arg3[%c0_8, %13, %c1, %c0_9] : memref<1x18x14x4xbf16, #tpu.memory_space<vmem>>, vector<1x16x12x4xbf16>
    %15 = vector.shape_cast %14 : vector<1x16x12x4xbf16> to vector<16x12x4xbf16>
    %16 = vector.shape_cast %15 : vector<16x12x4xbf16> to vector<192x4xbf16>
    %c0_10 = arith.constant 0 : index
    %c1_11 = arith.constant 1 : index
    %c0_12 = arith.constant 0 : index
    %c0_13 = arith.constant 0 : index
    %17 = vector.load %arg4[%c0_10, %c1_11, %c0_12, %c0_13] : memref<3x3x4x128xbf16, #tpu.memory_space<vmem>>, vector<1x1x4x128xbf16>
    %18 = vector.shape_cast %17 : vector<1x1x4x128xbf16> to vector<4x128xbf16>
    %cst_14 = arith.constant dense<0.000000e+00> : vector<192x128xf32>
    %19 = tpu.matmul %16, %18, %cst_14 {dimension_numbers = #tpu.dot_dimension_numbers<[1], [0], [0], [1], [0, 0, 1, 1], [], []>} : vector<192x4xbf16>, vector<4x128xbf16>, vector<192x128xf32> -> vector<192x128xf32>
    %20 = arith.addf %11, %19 : vector<192x128xf32>
    %c0_i32_15 = arith.constant 0 : i32
    %21 = arith.addi %1, %c0_i32_15 : i32
    %c0_16 = arith.constant 0 : index
    %22 = arith.index_cast %21 : i32 to index
    %c2 = arith.constant 2 : index
    %c0_17 = arith.constant 0 : index
    %23 = vector.load %arg3[%c0_16, %22, %c2, %c0_17] : memref<1x18x14x4xbf16, #tpu.memory_space<vmem>>, vector<1x16x12x4xbf16>
    %24 = vector.shape_cast %23 : vector<1x16x12x4xbf16> to vector<16x12x4xbf16>
    %25 = vector.shape_cast %24 : vector<16x12x4xbf16> to vector<192x4xbf16>
    %c0_18 = arith.constant 0 : index
    %c2_19 = arith.constant 2 : index
    %c0_20 = arith.constant 0 : index
    %c0_21 = arith.constant 0 : index
    %26 = vector.load %arg4[%c0_18, %c2_19, %c0_20, %c0_21] : memref<3x3x4x128xbf16, #tpu.memory_space<vmem>>, vector<1x1x4x128xbf16>
    %27 = vector.shape_cast %26 : vector<1x1x4x128xbf16> to vector<4x128xbf16>
    %cst_22 = arith.constant dense<0.000000e+00> : vector<192x128xf32>
    %28 = tpu.matmul %25, %27, %cst_22 {dimension_numbers = #tpu.dot_dimension_numbers<[1], [0], [0], [1], [0, 0, 1, 1], [], []>} : vector<192x4xbf16>, vector<4x128xbf16>, vector<192x128xf32> -> vector<192x128xf32>
    %29 = arith.addf %20, %28 : vector<192x128xf32>
    %c1_i32 = arith.constant 1 : i32
    %30 = arith.addi %1, %c1_i32 : i32
    %c0_23 = arith.constant 0 : index
    %31 = arith.index_cast %30 : i32 to index
    %c0_24 = arith.constant 0 : index
    %c0_25 = arith.constant 0 : index
    %32 = vector.load %arg3[%c0_23, %31, %c0_24, %c0_25] : memref<1x18x14x4xbf16, #tpu.memory_space<vmem>>, vector<1x16x12x4xbf16>
    %33 = vector.shape_cast %32 : vector<1x16x12x4xbf16> to vector<16x12x4xbf16>
    %34 = vector.shape_cast %33 : vector<16x12x4xbf16> to vector<192x4xbf16>
    %c1_26 = arith.constant 1 : index
    %c0_27 = arith.constant 0 : index
    %c0_28 = arith.constant 0 : index
    %c0_29 = arith.constant 0 : index
    %35 = vector.load %arg4[%c1_26, %c0_27, %c0_28, %c0_29] : memref<3x3x4x128xbf16, #tpu.memory_space<vmem>>, vector<1x1x4x128xbf16>
    %36 = vector.shape_cast %35 : vector<1x1x4x128xbf16> to vector<4x128xbf16>
    %cst_30 = arith.constant dense<0.000000e+00> : vector<192x128xf32>
    %37 = tpu.matmul %34, %36, %cst_30 {dimension_numbers = #tpu.dot_dimension_numbers<[1], [0], [0], [1], [0, 0, 1, 1], [], []>} : vector<192x4xbf16>, vector<4x128xbf16>, vector<192x128xf32> -> vector<192x128xf32>
    %38 = arith.addf %29, %37 : vector<192x128xf32>
    %c1_i32_31 = arith.constant 1 : i32
    %39 = arith.addi %1, %c1_i32_31 : i32
    %c0_32 = arith.constant 0 : index
    %40 = arith.index_cast %39 : i32 to index
    %c1_33 = arith.constant 1 : index
    %c0_34 = arith.constant 0 : index
    %41 = vector.load %arg3[%c0_32, %40, %c1_33, %c0_34] : memref<1x18x14x4xbf16, #tpu.memory_space<vmem>>, vector<1x16x12x4xbf16>
    %42 = vector.shape_cast %41 : vector<1x16x12x4xbf16> to vector<16x12x4xbf16>
    %43 = vector.shape_cast %42 : vector<16x12x4xbf16> to vector<192x4xbf16>
    %c1_35 = arith.constant 1 : index
    %c1_36 = arith.constant 1 : index
    %c0_37 = arith.constant 0 : index
    %c0_38 = arith.constant 0 : index
    %44 = vector.load %arg4[%c1_35, %c1_36, %c0_37, %c0_38] : memref<3x3x4x128xbf16, #tpu.memory_space<vmem>>, vector<1x1x4x128xbf16>
    %45 = vector.shape_cast %44 : vector<1x1x4x128xbf16> to vector<4x128xbf16>
    %cst_39 = arith.constant dense<0.000000e+00> : vector<192x128xf32>
    %46 = tpu.matmul %43, %45, %cst_39 {dimension_numbers = #tpu.dot_dimension_numbers<[1], [0], [0], [1], [0, 0, 1, 1], [], []>} : vector<192x4xbf16>, vector<4x128xbf16>, vector<192x128xf32> -> vector<192x128xf32>
    %47 = arith.addf %38, %46 : vector<192x128xf32>
    %c1_i32_40 = arith.constant 1 : i32
    %48 = arith.addi %1, %c1_i32_40 : i32
    %c0_41 = arith.constant 0 : index
    %49 = arith.index_cast %48 : i32 to index
    %c2_42 = arith.constant 2 : index
    %c0_43 = arith.constant 0 : index
    %50 = vector.load %arg3[%c0_41, %49, %c2_42, %c0_43] : memref<1x18x14x4xbf16, #tpu.memory_space<vmem>>, vector<1x16x12x4xbf16>
    %51 = vector.shape_cast %50 : vector<1x16x12x4xbf16> to vector<16x12x4xbf16>
    %52 = vector.shape_cast %51 : vector<16x12x4xbf16> to vector<192x4xbf16>
    %c1_44 = arith.constant 1 : index
    %c2_45 = arith.constant 2 : index
    %c0_46 = arith.constant 0 : index
    %c0_47 = arith.constant 0 : index
    %53 = vector.load %arg4[%c1_44, %c2_45, %c0_46, %c0_47] : memref<3x3x4x128xbf16, #tpu.memory_space<vmem>>, vector<1x1x4x128xbf16>
    %54 = vector.shape_cast %53 : vector<1x1x4x128xbf16> to vector<4x128xbf16>
    %cst_48 = arith.constant dense<0.000000e+00> : vector<192x128xf32>
    %55 = tpu.matmul %52, %54, %cst_48 {dimension_numbers = #tpu.dot_dimension_numbers<[1], [0], [0], [1], [0, 0, 1, 1], [], []>} : vector<192x4xbf16>, vector<4x128xbf16>, vector<192x128xf32> -> vector<192x128xf32>
    %56 = arith.addf %47, %55 : vector<192x128xf32>
    %c2_i32 = arith.constant 2 : i32
    %57 = arith.addi %1, %c2_i32 : i32
    %c0_49 = arith.constant 0 : index
    %58 = arith.index_cast %57 : i32 to index
    %c0_50 = arith.constant 0 : index
    %c0_51 = arith.constant 0 : index
    %59 = vector.load %arg3[%c0_49, %58, %c0_50, %c0_51] : memref<1x18x14x4xbf16, #tpu.memory_space<vmem>>, vector<1x16x12x4xbf16>
    %60 = vector.shape_cast %59 : vector<1x16x12x4xbf16> to vector<16x12x4xbf16>
    %61 = vector.shape_cast %60 : vector<16x12x4xbf16> to vector<192x4xbf16>
    %c2_52 = arith.constant 2 : index
    %c0_53 = arith.constant 0 : index
    %c0_54 = arith.constant 0 : index
    %c0_55 = arith.constant 0 : index
    %62 = vector.load %arg4[%c2_52, %c0_53, %c0_54, %c0_55] : memref<3x3x4x128xbf16, #tpu.memory_space<vmem>>, vector<1x1x4x128xbf16>
    %63 = vector.shape_cast %62 : vector<1x1x4x128xbf16> to vector<4x128xbf16>
    %cst_56 = arith.constant dense<0.000000e+00> : vector<192x128xf32>
    %64 = tpu.matmul %61, %63, %cst_56 {dimension_numbers = #tpu.dot_dimension_numbers<[1], [0], [0], [1], [0, 0, 1, 1], [], []>} : vector<192x4xbf16>, vector<4x128xbf16>, vector<192x128xf32> -> vector<192x128xf32>
    %65 = arith.addf %56, %64 : vector<192x128xf32>
    %c2_i32_57 = arith.constant 2 : i32
    %66 = arith.addi %1, %c2_i32_57 : i32
    %c0_58 = arith.constant 0 : index
    %67 = arith.index_cast %66 : i32 to index
    %c1_59 = arith.constant 1 : index
    %c0_60 = arith.constant 0 : index
    %68 = vector.load %arg3[%c0_58, %67, %c1_59, %c0_60] : memref<1x18x14x4xbf16, #tpu.memory_space<vmem>>, vector<1x16x12x4xbf16>
    %69 = vector.shape_cast %68 : vector<1x16x12x4xbf16> to vector<16x12x4xbf16>
    %70 = vector.shape_cast %69 : vector<16x12x4xbf16> to vector<192x4xbf16>
    %c2_61 = arith.constant 2 : index
    %c1_62 = arith.constant 1 : index
    %c0_63 = arith.constant 0 : index
    %c0_64 = arith.constant 0 : index
    %71 = vector.load %arg4[%c2_61, %c1_62, %c0_63, %c0_64] : memref<3x3x4x128xbf16, #tpu.memory_space<vmem>>, vector<1x1x4x128xbf16>
    %72 = vector.shape_cast %71 : vector<1x1x4x128xbf16> to vector<4x128xbf16>
    %cst_65 = arith.constant dense<0.000000e+00> : vector<192x128xf32>
    %73 = tpu.matmul %70, %72, %cst_65 {dimension_numbers = #tpu.dot_dimension_numbers<[1], [0], [0], [1], [0, 0, 1, 1], [], []>} : vector<192x4xbf16>, vector<4x128xbf16>, vector<192x128xf32> -> vector<192x128xf32>
    %74 = arith.addf %65, %73 : vector<192x128xf32>
    %c2_i32_66 = arith.constant 2 : i32
    %75 = arith.addi %1, %c2_i32_66 : i32
    %c0_67 = arith.constant 0 : index
    %76 = arith.index_cast %75 : i32 to index
    %c2_68 = arith.constant 2 : index
    %c0_69 = arith.constant 0 : index
    %77 = vector.load %arg3[%c0_67, %76, %c2_68, %c0_69] : memref<1x18x14x4xbf16, #tpu.memory_space<vmem>>, vector<1x16x12x4xbf16>
    %78 = vector.shape_cast %77 : vector<1x16x12x4xbf16> to vector<16x12x4xbf16>
    %79 = vector.shape_cast %78 : vector<16x12x4xbf16> to vector<192x4xbf16>
    %c2_70 = arith.constant 2 : index
    %c2_71 = arith.constant 2 : index
    %c0_72 = arith.constant 0 : index
    %c0_73 = arith.constant 0 : index
    %80 = vector.load %arg4[%c2_70, %c2_71, %c0_72, %c0_73] : memref<3x3x4x128xbf16, #tpu.memory_space<vmem>>, vector<1x1x4x128xbf16>
    %81 = vector.shape_cast %80 : vector<1x1x4x128xbf16> to vector<4x128xbf16>
    %cst_74 = arith.constant dense<0.000000e+00> : vector<192x128xf32>
    %82 = tpu.matmul %79, %81, %cst_74 {dimension_numbers = #tpu.dot_dimension_numbers<[1], [0], [0], [1], [0, 0, 1, 1], [], []>} : vector<192x4xbf16>, vector<4x128xbf16>, vector<192x128xf32> -> vector<192x128xf32>
    %83 = arith.addf %74, %82 : vector<192x128xf32>
    %c0_75 = arith.constant 0 : index
    %c0_76 = arith.constant 0 : index
    %84 = vector.load %arg5[%c0_75, %c0_76] : memref<1x128xf32, #tpu.memory_space<vmem>>, vector<1x128xf32>
    %85 = vector.broadcast %84 : vector<1x128xf32> to vector<192x128xf32>
    %86 = arith.addf %83, %85 : vector<192x128xf32>
    %cst_77 = arith.constant 0.000000e+00 : f32
    %87 = vector.broadcast %cst_77 : f32 to vector<192x128xf32>
    %88 = arith.maximumf %86, %87 : vector<192x128xf32>
    %89 = vector.shape_cast %88 : vector<192x128xf32> to vector<1x192x128xf32>
    %c0_78 = arith.constant 0 : index
    %c0_79 = arith.constant 0 : index
    %c0_80 = arith.constant 0 : index
    %90 = vector.load %arg6[%c0_78, %c0_79, %c0_80] : memref<1x192x128xf32, #tpu.memory_space<vmem>>, vector<1x192x128xf32>
    tpu.vector_store %arg6[%c0_78, %c0_79, %c0_80], %89 {strides = array<i32>} : memref<1x192x128xf32, #tpu.memory_space<vmem>>, vector<1x192x128xf32>,
    return
  }
  func.func @transform_0(%arg0: i32, %arg1: i32, %arg2: i32) -> (i32, i32, i32, i32) {
    %c0_i32 = arith.constant 0 : i32
    %c0_i32_0 = arith.constant 0 : i32
    %c0_i32_1 = arith.constant 0 : i32
    %c0_i32_2 = arith.constant 0 : i32
    return %arg0, %c0_i32, %c0_i32_0, %c0_i32_1 : i32, i32, i32, i32
  }
  func.func @transform_1(%arg0: i32, %arg1: i32, %arg2: i32) -> (i32, i32, i32, i32) {
    %c0_i32 = arith.constant 0 : i32
    %c0_i32_0 = arith.constant 0 : i32
    %c0_i32_1 = arith.constant 0 : i32
    %c0_i32_2 = arith.constant 0 : i32
    return %c0_i32, %c0_i32_0, %c0_i32_1, %arg2 : i32, i32, i32, i32
  }
  func.func @transform_2(%arg0: i32, %arg1: i32, %arg2: i32) -> (i32, i32) {
    %c0_i32 = arith.constant 0 : i32
    %c0_i32_0 = arith.constant 0 : i32
    return %c0_i32, %arg2 : i32, i32
  }
  func.func @transform_3(%arg0: i32, %arg1: i32, %arg2: i32) -> (i32, i32, i32) {
    %c0_i32 = arith.constant 0 : i32
    return %arg0, %arg1, %arg2 : i32, i32, i32
  }
}

</mosaic_0001>

<bundles_post_ra>
// kernel: tpu_custom_call.1
= control target key start
LH: loop header
LB: loop body
LE: loop exit
PB: predicated region body
PF: predicated region fallthrough
CT: control target
= control target key end

     0   :  { %8 = vsyncpa [#allocation3], 0  ;;  %s12703_s0 = inlined_call_operand.vmem [shape: bf16[2,18,14,4], index: 0, kind: input, shape index: {}]   ;;  %s12704_s1 = inlined_call_operand.vmem [shape: bf16[3,3,4,128], index: 1, kind: input, shape index: {}]   ;;  %s12705_s2 = inlined_call_operand.vmem [shape: f32[1,128], index: 2, kind: input, shape index: {}]   ;;  %s12706_s3 = inlined_call_operand.hbm [shape: f32[2,192,128], index: 3, kind: output, shape index: {}]  }
   0x1   :  { %10 = vsyncpa [#allocation3 + $0x1], 0  ;;  %s9953_s12 = smov 0   ;;  %s9955_s13 = smov 0  }
   0x2   :  { %s9957_s14 = smov 0   ;;  %s9959_s15 = smov 0  }
   0x3   :  { %s9961_s16 = smov 0   ;;  %s9963_s17 = smov 0  }
   0x4 LB: > { %s8780_s18 = sadd.s32 4294967295, %s9927_s17   ;;  %s8781_s19 = sadd.s32 4294967294, %s9927_s17   ;;  %s9927_s17 = sphi %s9963_s17, %s16_s17   ;;  %s9923_s16 = sphi %s9961_s16, %s13091_s16   ;;  %s9919_s15 = sphi %s9959_s15, %s13090_s15   ;;  %s9915_s14 = sphi %s9957_s14, %s13089_s14   ;;  %s9911_s13 = sphi %s9955_s13, %s13088_s13   ;;  %s9907_s12 = sphi %s9953_s12, %s13087_s12  }
   0x5   : > { %s35_s20 = sadd.s32 1, %s9923_s16  ;;  %s124_s21 = sadd.s32 1, %s9915_s14 }
   0x6   : > { %p37_p0 = scmp.ge.s32.totalorder %s35_s20, 2  ;;  %p134_p1 = scmp.ne.s32.totalorder %s9915_s14, %s9911_s13 }
   0x7   : > { %p135_p2 = scmp.eq.s32.totalorder %s8780_s18, 1  ;;  %p140_p3 = scmp.ne.s32.totalorder %s9911_s13, %s9907_s12 }
   0x8   : > { %s13093_s20 = smov (%p37_p0, %s35_s20), 0  ;;  %p141_p5 = scmp.eq.s32.totalorder %s8781_s19, 1 }
   0x9   : > { %p9993_p4 = por %p135_p2, %p134_p1  ;;  %s117_s23 = ssub.s32 %s9923_s16, %s13093_s20 }
   0xa   : > { %p8786_p6 = scmp.ge.s32.totalorder %s9927_s17, 1  ;;  %p122_p7 = scmp.eq.s32.totalorder %s117_s23, 0 }
   0xb   : > { %p10000_p8 = por %p141_p5, %p140_p3  ;;  %p180_p9 = scmp.lt.s32.totalorder %s9927_s17, 3 }
   0xc   : > { %s10006_s25 = scalar_select %p122_p7, %s9915_s14, %s124_s21  }
   0xd   : > { %p181_p10 = pnand %p8786_p6, %p180_p9 }
   0xf   : > { %184 = sbr.rel (%p181_p10) target bundleno = 805 (0x325), region = 32 }
  0x14   : > { %v8836_v0 = vld [vmem:[%s12704_s1 + $0x2] sm:$0x3]  ;;  %vm1488_vm0 = vcmask 1041408   ;;  %p211_p11 = scmp.lt.s32.totalorder %s9919_s15, 1  ;;  %v1252_v2 = vlaneseq  ;;  %v9929_v3 = vmov 1983009808  }
  0x15   : > { %9774 = vmatprep.subr.msk.bf16.mxu1 %vm1488_vm0, %v8836_v0  ;;  %9773 = vmatprep.subr.msk.bf16.mxu0 %vm1488_vm0, %v8836_v0  ;;  %v1490_v1 = vsel %vm1488_vm0, %v8836_v0, 0  ;;  %v1250_v4 = vunpack.c.l.s4 %v9929_v3  ;;  %v533_v5 = vld [vmem:[%s12704_s1] sm:$0x3]  ;;  %v8909_v6 = vld [vmem:[%s12704_s1 + $0x4] sm:$0x3]  ;;  %v12780_v33 = vmov 0 }
  0x16   : > { %9772 = vmatpush3.bf16.msra.mxu1 %v1490_v1  ;;  %9538 = vmatpush3.bf16.msra.mxu0 %v1490_v1  ;;  %s212_s28 = scalar_select %p211_p11, %s9919_s15, 1  ;;  %vm694_vm1 = vsmask.f32 1280  ;;  %vm695_vm2 = vsmask.f32 3336  ;;  %v1253_v8 = vshrl.u32 %v1252_v2, 7 }
  0x17   : > { %9775 = vmatprep.subr.msk.bf16.mxu1 %vm1488_vm0, %v533_v5  ;;  %9776 = vmatprep.subr.msk.bf16.mxu0 %vm1488_vm0, %v8909_v6  ;;  %v1251_v7 = vunpack.c.0.s8 %v1250_v4  ;;  %vm697_vm3 = vsmask.f32 5392  ;;  %vm699_vm4 = vsmask.f32 7448  ;;  %vm696_vm5 = vmor %vm694_vm1, %vm695_vm2  ;;  %v10033_v10 = vsel %vm1488_vm0, %v533_v5, 0  ;;  %s208_s7 = sand.u32 1, %s9911_s13  }
  0x18   : > { %s9784_s6 = smul.u32 144, %s212_s28  ;;  %v10049_v18 = vsel %vm1488_vm0, %v8909_v6, 0  ;;  %vm698_vm6 = vmor %vm696_vm5, %vm697_vm3  ;;  %vm1451_vm8 = vcmask 31744   ;;  %vm2313_vm9 = vcmask 1040384   ;;  %vm2314_vm10 = vcmask 1042434   ;;  %s9930_s28 = smov [#allocation2]  }
  0x19   : > { %v10046_v17 = vsub.s32 %v1251_v7, %v1253_v8  ;;  %vm10065_vm7 = vmor %vm698_vm6, %vm699_vm4  ;;  %vm2316_vm11 = vcmask 1044484   ;;  %vm2318_vm12 = vcmask 1046534   ;;  %s9783_s8 = smul.u32 192, %s208_s7  ;;  %s9855_s29 = sshll.u32 %s9930_s28, 4  ;;  %s9856_s29 = int_to_ptr.vmem [resolvable:$false] %s9855_s29 }
  0x1a   : > { %s10027_s9 = scalar_lea.vmem %s12703_s0, %s9784_s6  ;;  %v12781_v33 = vsel %vm10065_vm7, 4294967295, %v12780_v33  ;;  %vm10486_vm13 = vmor %vm2313_vm9, %vm2314_vm10  ;;  %s9785_s18 = smul.u32 3072, %s9919_s15 }
  0x1b   : > { %v10030_v9 = vld.sshfl [vmem:[%s10027_s9] sm:$0x33 pattern:$0x76325410]  ;;  %12782 = vst [vmem:[#allocation5_spill] sm:$0xff] %v12781_v33  ;;  %vm2317_vm14 = vmor %vm10486_vm13, %vm2316_vm11  ;;  %s12566_s11 = scalar_lea.vmem [#allocation2], %s9783_s8 }
  0x1c   : > { %v10036_v11 = vld.sshfl [vmem:[%s10027_s9 + $0x8] sm:$0x33 pattern:$0x76325410]  ;;  %v10040_v12 = vcombine.high %v10030_v9, %v10030_v9  ;;  %v702_v13 = vshrl.u32 %v10030_v9, 16  ;;  %v705_v14 = vshll.u32 %v10030_v9, 16  ;;  %vm10511_vm15 = vmor %vm2317_vm14, %vm2318_vm12  ;;  %s12650_s26 = scalar_lea.hbm %s12706_s3, %s9785_s18 }
  0x1d   : > { %v736_v15 = vshrl.u32 %v10036_v11, 16  ;;  %v739_v16 = vshll.u32 %v10036_v11, 16  ;;  %v10052_v19 = vld.sshfl [vmem:[%s10027_s9 + $0xc] sm:$0x3 pattern:$0x76325410]  ;;  %v10056_v20 = vcombine.high %v10036_v11, %v10036_v11 }
  0x1e   : > { %v8820_v21 = vld.sshfl [vmem:[%s10027_s9 + $0x4] sm:$0x13 pattern:$0x76325410]  ;;  %v704_v22 = vrot.slane %v702_v13, 6  ;;  %v707_v23 = vrot.slane %v705_v14, 7 }
  0x1f   : > { %v573_v25 = vcombine.high %v8820_v21, %v8820_v21  ;;  %v711_v26 = vshll.u32 %v10040_v12, 16  ;;  %v715_v27 = vshrl.u32 %v10040_v12, 16  ;;  %v721_v28 = vshll.u32 %v8820_v21, 16  ;;  %s8666_s19 = sshll.u32 %s12566_s11, 4  ;;  %s12658_s15 = scalar_lea.sflag [#allocation3], %s208_s7  ;;  %s12653_s19 = int_to_ptr.vmem [resolvable:$true] %s8666_s19 }
  0x20   : > { %v708_v29 = vor.u32 %v707_v23, %v704_v22  ;;  %v725_v30 = vshrl.u32 %v8820_v21, 16  ;;  %v738_v31 = vrot.slane %v736_v15, 6  ;;  %v741_v32 = vrot.slane %v739_v16, 7  ;;  %s9851_s27 = scalar_lea.vmem %s12653_s19, 3072  ;;  %s9857_s30 = scalar_lea.vmem %s9856_s29, 6144 }
  0x21   : > { %v713_v34 = vrot.slane %v711_v26, 7  ;;  %v717_v35 = vrot.slane %v715_v27, 6  ;;  %v723_v36 = vrot.slane %v721_v28, 7  ;;  %v731_v37 = vshll.u32 %v573_v25, 16  ;;  %p9852_p12 = scmp.ne.s32.totalorder %s12653_s19, %s9851_s27  ;;  %p9858_p1 = scmp.lt.s32.totalorder %s12653_s19, %s9856_s29 }
  0x22   : > { %v709_v38 = vrot.slane %v708_v29, 2  ;;  %v727_v39 = vrot.slane %v725_v30, 6  ;;  %v742_v40 = vor.u32 %v741_v32, %v738_v31  ;;  %v745_v41 = vshll.u32 %v10056_v20, 16  ;;  %p9859_p2 = scmp.lt.s32.totalorder %s9857_s30, %s9851_s27 }
  0x23   : > { %v718_v42 = vor.u32 %v717_v35, %v713_v34  ;;  %v733_v43 = vrot.slane %v731_v37, 7  ;;  %v749_v44 = vshrl.u32 %v10056_v20, 16  ;;  %v8804_v46 = vld.sshfl [vmem:[%s10027_s9 + $0x40] sm:$0x33 pattern:$0x76325410]  ;;  %p9853_p13 = pnand %p9852_p12, %p9993_p4 }
  0x24   : > { %v714_v47 = vsel %vm10065_vm7, %v709_v38, %v713_v34  ;;  %v728_v48 = vor.u32 %v727_v39, %v723_v36  ;;  %v743_v49 = vrot.slane %v742_v40, 2  ;;  %v747_v50 = vrot.slane %v745_v41, 7  ;;  %v8806_v51 = vld.sshfl [vmem:[%s10027_s9 + $0x48] sm:$0x33 pattern:$0x76325410]  ;;  %p9860_p3 = por %p9859_p2, %p9858_p1 }
  0x25   : > { %v719_v52 = vrot.slane %v718_v42, 2  ;;  %v751_v53 = vrot.slane %v749_v44, 6  ;;  %v10077_v54 = vcombine.high %v8804_v46, %v8804_v46  ;;  %v10079_v55 = vcombine.high %v8806_v51, %v8806_v51  ;;  %v8828_v56 = vld.sshfl [vmem:[%s10027_s9 + $0x44] sm:$0x13 pattern:$0x76325410]  ;;  %p9854_p0 = pneg %p9853_p13 }
  0x26   : > { %v729_v57 = vrot.slane %v728_v48, 2  ;;  %v748_v58 = vsel %vm10065_vm7, %v743_v49, %v747_v50  ;;  %v637_v59 = vcombine.high %v8828_v56, %v8828_v56  ;;  %v974_v60 = vshrl.u32 %v8804_v46, 16  ;;  %v10095_v26 = vld.sshfl [vmem:[%s10027_s9 + $0x10] sm:$0x33 pattern:$0x76325410] }
  0x27   : > { %v724_v61 = vsel %vm10065_vm7, %v719_v52, %v723_v36  ;;  %v752_v62 = vor.u32 %v751_v53, %v747_v50  ;;  %v977_v63 = vshll.u32 %v8804_v46, 16  ;;  %v983_v0 = vshll.u32 %v10077_v54, 16  ;;  %v10098_v31 = vld.sshfl [vmem:[%s10027_s9 + $0xc] sm:$0x13 pattern:$0x76325410]  ;;  %p9861_p5 = pnand %p9860_p3, %p9854_p0 }
  0x28   : > { %v734_v1 = vsel %vm10065_vm7, %v729_v57, %v733_v43  ;;  %v1247_v2 = vcombine.low %v714_v47, %v724_v61  ;;  %v976_v3 = vrot.slane %v974_v60, 6  ;;  %v987_v4 = vshrl.u32 %v10077_v54, 16  ;;  %v10116_v52 = vld.sshfl [vmem:[%s10027_s9 + $0x14] sm:$0x13 pattern:$0x76325410] }
  0x29   : > { %v10090_v5 = vrot.slane %v752_v62, 2  ;;  %v1248_v6 = vcombine.low %v734_v1, %v748_v58  ;;  %v979_v7 = vrot.slane %v977_v63, 7  ;;  %v985_v8 = vrot.slane %v983_v0, 7 }
  0x2a   : > { %v1255_v13 = vrot.slane %v1247_v2, %v10046_v17  ;;  %v989_v14 = vrot.slane %v987_v4, 6  ;;  %v993_v15 = vshll.u32 %v8828_v56, 16  ;;  %v997_v16 = vshrl.u32 %v8828_v56, 16 }
  0x2b   : > { %v1262_v21 = vrot.slane %v1248_v6, %v10046_v17  ;;  %v980_v22 = vor.u32 %v979_v7, %v976_v3  ;;  %v1003_v23 = vshll.u32 %v637_v59, 16  ;;  %v1008_v25 = vshrl.u32 %v8806_v51, 16  ;;  %v8808_v1 = vld.sshfl [vmem:[%s10027_s9 + $0x50] sm:$0x33 pattern:$0x76325410] }
  0x2c   : > { %v990_v27 = vor.u32 %v989_v14, %v985_v8  ;;  %v995_v28 = vrot.slane %v993_v15, 7  ;;  %v999_v29 = vrot.slane %v997_v16, 6  ;;  %v1011_v30 = vshll.u32 %v8806_v51, 16 }
  0x2d   : > { %v1263_v32 = vcombine.low %v1255_v13, %v1262_v21  ;;  %v981_v34 = vrot.slane %v980_v22, 2  ;;  %v1005_v35 = vrot.slane %v1003_v23, 7  ;;  %v1010_v36 = vrot.slane %v1008_v25, 6 }
  0x2e   : > { %v991_v37 = vrot.slane %v990_v27, 2  ;;  %v1000_v38 = vor.u32 %v999_v29, %v995_v28  ;;  %v1013_v39 = vrot.slane %v1011_v30, 7  ;;  %v1017_v40 = vshll.u32 %v10079_v55, 16 }
  0x2f   : > { %9539 = vmatprep.mubr.msk.bf16.mxu0 %vm1451_vm8, %v1263_v32  ;;  %v986_v41 = vsel %vm10065_vm7, %v981_v34, %v985_v8  ;;  %v1021_v42 = vshrl.u32 %v10079_v55, 16  ;;  %v10107_v43 = vcombine.high %v10095_v26, %v10095_v26  ;;  %v10111_v44 = vcombine.high %v10098_v31, %v10098_v31  ;;  %v8829_v15 = vld.sshfl [vmem:[%s10027_s9 + $0x4c] sm:$0x13 pattern:$0x76325410] }
  0x30   : > { %v996_v46 = vsel %vm10065_vm7, %v991_v37, %v995_v28  ;;  %v1001_v47 = vrot.slane %v1000_v38, 2  ;;  %v1014_v48 = vor.u32 %v1013_v39, %v1010_v36  ;;  %v1019_v49 = vrot.slane %v1017_v40, 7 }
  0x31   : > { %v1023_v50 = vrot.slane %v1021_v42, 6  ;;  %v1349_v51 = vcombine.low %v986_v41, %v996_v46  ;;  %v755_v53 = vshll.u32 %v10098_v31, 16  ;;  %v759_v56 = vshrl.u32 %v10098_v31, 16 }
  0x32   : > { %v1006_v57 = vsel %vm10065_vm7, %v1001_v47, %v1005_v35  ;;  %v1015_v58 = vrot.slane %v1014_v48, 2  ;;  %v765_v59 = vshll.u32 %v10111_v44, 16  ;;  %v770_v60 = vshrl.u32 %v10095_v26, 16 }
  0x33   : > { %v1024_v61 = vor.u32 %v1023_v50, %v1019_v49  ;;  %v1357_v62 = vrot.slane %v1349_v51, %v10046_v17  ;;  %v757_v63 = vrot.slane %v755_v53, 7  ;;  %v761_v0 = vrot.slane %v759_v56, 6  ;;  %v10144_v42 = vld.sshfl [vmem:[%s10027_s9 + $0x54] sm:$0x13 pattern:$0x76325410] }
  0x34   : > { %v1020_v2 = vsel %vm10065_vm7, %v1015_v58, %v1019_v49  ;;  %v767_v3 = vrot.slane %v765_v59, 7  ;;  %v772_v4 = vrot.slane %v770_v60, 6  ;;  %v773_v6 = vshll.u32 %v10095_v26, 16 }
  0x35   : > { %v1025_v7 = vrot.slane %v1024_v61, 2  ;;  %v1350_v8 = vcombine.low %v1006_v57, %v1020_v2  ;;  %v758_v13 = vsel %vm10065_vm7, %v10090_v5, %v757_v63  ;;  %v762_v14 = vor.u32 %v761_v0, %v757_v63  ;;  %v10151_v58 = vld.sshfl [vmem:[%s10027_s9 + $0x18] sm:$0x33 pattern:$0x76325410] }
  0x36   : > { %v775_v16 = vrot.slane %v773_v6, 7  ;;  %v779_v21 = vshll.u32 %v10107_v43, 16  ;;  %v783_v22 = vshrl.u32 %v10107_v43, 16  ;;  %v789_v23 = vshll.u32 %v10116_v52, 16 }
  0x37   : > { %v1364_v25 = vrot.slane %v1350_v8, %v10046_v17  ;;  %v763_v27 = vrot.slane %v762_v14, 2  ;;  %v10137_v28 = vcombine.high %v8808_v1, %v8808_v1  ;;  %v645_v29 = vcombine.high %v8829_v15, %v8829_v15 }
  0x38   : > { %v776_v30 = vor.u32 %v775_v16, %v772_v4  ;;  %v781_v32 = vrot.slane %v779_v21, 7  ;;  %v785_v34 = vrot.slane %v783_v22, 6  ;;  %v10139_v5 = vrot.slane %v789_v23, 7 }
  0x39   : > { %12783 = vst [vmem:[#allocation6_spill] sm:$0xff] %v10137_v28  ;;  %v1365_v35 = vcombine.low %v1357_v62, %v1364_v25  ;;  %v768_v36 = vsel %vm10065_vm7, %v763_v27, %v767_v3  ;;  %v1027_v37 = vshll.u32 %v8829_v15, 16  ;;  %v1031_v38 = vshrl.u32 %v8829_v15, 16 }
  0x3a   : > { %v777_v39 = vrot.slane %v776_v30, 2  ;;  %v786_v40 = vor.u32 %v785_v34, %v781_v32  ;;  %v1264_v41 = vcombine.low %v758_v13, %v768_v36  ;;  %v1037_v46 = vshll.u32 %v645_v29, 16 }
  0x3b   : > { %9551 = vmatprep.mubr.msk.bf16.mxu1 %vm1451_vm8, %v1365_v35  ;;  %v1029_v47 = vrot.slane %v1027_v37, 7  ;;  %v1033_v48 = vrot.slane %v1031_v38, 6  ;;  %v1042_v49 = vshrl.u32 %v8808_v1, 16  ;;  %v1045_v50 = vshll.u32 %v8808_v1, 16 }
  0x3c   : > { %v782_v51 = vsel %vm10065_vm7, %v777_v39, %v781_v32  ;;  %v787_v53 = vrot.slane %v786_v40, 2  ;;  %v1272_v56 = vrot.slane %v1264_v41, %v10046_v17  ;;  %v1039_v57 = vrot.slane %v1037_v46, 7  ;;  %v10191_v46 = vld [vmem:[%s12704_s1 + $0x8] sm:$0x3] }
  0x3d   : > { %v1030_v59 = vsel %vm10065_vm7, %v1025_v7, %v1029_v47  ;;  %v1034_v60 = vor.u32 %v1033_v48, %v1029_v47  ;;  %v1044_v61 = vrot.slane %v1042_v49, 6  ;;  %v1047_v62 = vrot.slane %v1045_v50, 7  ;;  %v10166_v7 = vld.sshfl [vmem:[%s10027_s9 + $0x1c] sm:$0x13 pattern:$0x76325410] }
  0x3e   : > { %v792_v63 = vsel %vm10065_vm7, %v787_v53, %v10139_v5  ;;  %v1051_v0 = vshll.u32 %v10137_v28, 16  ;;  %v1055_v1 = vshrl.u32 %v10137_v28, 16  ;;  %v1061_v2 = vshll.u32 %v10144_v42, 16 }
  0x3f   : > { %v1265_v3 = vcombine.low %v782_v51, %v792_v63  ;;  %v1035_v4 = vrot.slane %v1034_v60, 2  ;;  %v1048_v6 = vor.u32 %v1047_v62, %v1044_v61  ;;  %v10163_v8 = vcombine.high %v10151_v58, %v10151_v58 }
  0x40   : > { %v1053_v13 = vrot.slane %v1051_v0, 7  ;;  %v1057_v14 = vrot.slane %v1055_v1, 6  ;;  %v10168_v15 = vrot.slane %v1061_v2, 7  ;;  %v10172_v16 = vcombine.high %v10116_v52, %v10116_v52 }
  0x41   : > { %v1279_v21 = vrot.slane %v1265_v3, %v10046_v17  ;;  %v1040_v22 = vsel %vm10065_vm7, %v1035_v4, %v1039_v57  ;;  %v1049_v23 = vrot.slane %v1048_v6, 2  ;;  %v10179_v25 = vcombine.high %v10166_v7, %v10166_v7 }
  0x42   : > { %v1058_v27 = vor.u32 %v1057_v14, %v1053_v13  ;;  %v1366_v29 = vcombine.low %v1030_v59, %v1040_v22  ;;  %v793_v30 = vshrl.u32 %v10116_v52, 16  ;;  %v799_v32 = vshll.u32 %v10172_v16, 16  ;;  %v8810_v59 = vld.sshfl [vmem:[%s10027_s9 + $0x58] sm:$0x33 pattern:$0x76325410] }
  0x43   : > { %v1280_v34 = vcombine.low %v1272_v56, %v1279_v21  ;;  %v1054_v35 = vsel %vm10065_vm7, %v1049_v23, %v1053_v13  ;;  %v804_v36 = vshrl.u32 %v10151_v58, 16  ;;  %v807_v37 = vshll.u32 %v10151_v58, 16  ;;  %v8831_v22 = vld.sshfl [vmem:[%s10027_s9 + $0x5c] sm:$0x13 pattern:$0x76325410] }
  0x44   : > { %v1059_v38 = vrot.slane %v1058_v27, 2  ;;  %v1374_v39 = vrot.slane %v1366_v29, %v10046_v17  ;;  %v795_v40 = vrot.slane %v793_v30, 6  ;;  %v801_v41 = vrot.slane %v799_v32, 7 }
  0x45   : > { %9540 = vmatmul.mubr.msk.bf16.vlgmr.msra.gmra.mxu0 %vm1451_vm8, %v1280_v34  ;;  %v806_v47 = vrot.slane %v804_v36, 6  ;;  %v809_v48 = vrot.slane %v807_v37, 7  ;;  %v813_v49 = vshll.u32 %v10163_v8, 16  ;;  %v817_v50 = vshrl.u32 %v10163_v8, 16 }
  0x46   : > { %v1064_v51 = vsel %vm10065_vm7, %v1059_v38, %v10168_v15  ;;  %9590 = vmatpush3.bf16.msra.mxu0 %v10049_v18  ;;  %v796_v53 = vor.u32 %v795_v40, %v10139_v5  ;;  %v823_v56 = vshll.u32 %v10166_v7, 16  ;;  %v827_v57 = vshrl.u32 %v10166_v7, 16  ;;  %v10221_v38 = vld [vmem:[%s12704_s1 + $0x6] sm:$0x3] }
  0x47   : > { %v1367_v60 = vcombine.low %v1054_v35, %v1064_v51  ;;  %v810_v61 = vor.u32 %v809_v48, %v806_v47  ;;  %v815_v62 = vrot.slane %v813_v49, 7  ;;  %v819_v63 = vrot.slane %v817_v50, 6  ;;  %9778 = vmatprep.subr.msk.bf16.mxu0 %vm1488_vm0, %v10191_v46  ;;  %v10232_v51 = vld.sshfl [vmem:[%s10027_s9 + $0x20] sm:$0x33 pattern:$0x76325410] }
  0x48   : > { %v797_v0 = vrot.slane %v796_v53, 2  ;;  %v825_v1 = vrot.slane %v823_v56, 7  ;;  %v829_v2 = vrot.slane %v827_v57, 6  ;;  %v833_v18 = vshll.u32 %v10179_v25, 16 }
  0x49   : > { %v1381_v5 = vrot.slane %v1367_v60, %v10046_v17  ;;  %v811_v3 = vrot.slane %v810_v61, 2  ;;  %v820_v4 = vor.u32 %v819_v63, %v815_v62  ;;  %v10208_v6 = vcombine.high %v8810_v59, %v8810_v59 }
  0x4a   : > { %v802_v13 = vsel %vm10065_vm7, %v797_v0, %v801_v41  ;;  %v830_v14 = vor.u32 %v829_v2, %v825_v1  ;;  %v835_v21 = vrot.slane %v833_v18, 7  ;;  %v653_v23 = vcombine.high %v10144_v42, %v10144_v42  ;;  %v10240_v2 = vld.sshfl [vmem:[%s10027_s9 + $0x28] sm:$0x33 pattern:$0x76325410] }
  0x4b   : > { %12784 = vst [vmem:[#allocation7_spill] sm:$0xff] %v10208_v6  ;;  %v1382_v27 = vcombine.low %v1374_v39, %v1381_v5  ;;  %v816_v29 = vsel %vm10065_vm7, %v811_v3, %v815_v62  ;;  %v821_v30 = vrot.slane %v820_v4, 2  ;;  %v661_v32 = vcombine.high %v8831_v22, %v8831_v22 }
  0x4c   : > { %v831_v34 = vrot.slane %v830_v14, 2  ;;  %v1281_v35 = vcombine.low %v802_v13, %v816_v29  ;;  %v1065_v36 = vshrl.u32 %v10144_v42, 16  ;;  %v1071_v37 = vshll.u32 %v653_v23, 16 }
  0x4d   : > { %9552 = vmatmul.mubr.msk.bf16.vlgmr.msra.gmra.mxu1 %vm1451_vm8, %v1382_v27  ;;  %v826_v39 = vsel %vm10065_vm7, %v821_v30, %v825_v1  ;;  %v1076_v40 = vshrl.u32 %v8810_v59, 16  ;;  %v1079_v41 = vshll.u32 %v8810_v59, 16  ;;  %v1085_v47 = vshll.u32 %v10208_v6, 16 }
  0x4e   : > { %9564 = vmatpush3.bf16.msra.mxu1 %v10033_v10  ;;  %v836_v42 = vsel %vm10065_vm7, %v831_v34, %v835_v21  ;;  %v1289_v48 = vrot.slane %v1281_v35, %v10046_v17  ;;  %v1067_v49 = vrot.slane %v1065_v36, 6  ;;  %v1073_v50 = vrot.slane %v1071_v37, 7  ;;  %v10251_v23 = vld.sshfl [vmem:[%s10027_s9 + $0x24] sm:$0x13 pattern:$0x76325410] }
  0x4f   : > { %v1282_v53 = vcombine.low %v826_v39, %v836_v42  ;;  %v1078_v56 = vrot.slane %v1076_v40, 6  ;;  %v1081_v57 = vrot.slane %v1079_v41, 7  ;;  %v1087_v60 = vrot.slane %v1085_v47, 7  ;;  %9777 = vmatprep.subr.msk.bf16.mxu1 %vm1488_vm0, %v10221_v38 }
  0x50   : > { %v1068_v59 = vor.u32 %v1067_v49, %v10168_v15  ;;  %v1089_v10 = vshrl.u32 %v10208_v6, 16  ;;  %v1095_v61 = vshll.u32 %v8831_v22, 16  ;;  %v1099_v62 = vshrl.u32 %v8831_v22, 16 }
  0x51   : > { %v1296_v63 = vrot.slane %v1282_v53, %v10046_v17  ;;  %v1082_v0 = vor.u32 %v1081_v57, %v1078_v56  ;;  %v1105_v1 = vshll.u32 %v661_v32, 16  ;;  %v10244_v18 = vcombine.high %v10232_v51, %v10232_v51 }
  0x52   : > { %v1069_v5 = vrot.slane %v1068_v59, 2  ;;  %v1091_v3 = vrot.slane %v1089_v10, 6  ;;  %v1097_v4 = vrot.slane %v1095_v61, 7  ;;  %v1101_v13 = vrot.slane %v1099_v62, 6 }
  0x53   : > { %v1297_v15 = vcombine.low %v1289_v48, %v1296_v63  ;;  %v1083_v14 = vrot.slane %v1082_v0, 2  ;;  %v1107_v21 = vrot.slane %v1105_v1, 7  ;;  %v10248_v22 = vcombine.high %v10240_v2, %v10240_v2  ;;  %v10274_v63 = vld.sshfl [vmem:[%s10027_s9 + $0x60] sm:$0x33 pattern:$0x76325410] }
  0x54   : > { %v1074_v27 = vsel %vm10065_vm7, %v1069_v5, %v1073_v50  ;;  %v1092_v29 = vor.u32 %v1091_v3, %v1087_v60  ;;  %v1102_v30 = vor.u32 %v1101_v13, %v1097_v4  ;;  %v10257_v32 = vcombine.high %v10251_v23, %v10251_v23  ;;  %12785 = vst [vmem:[#allocation8_spill] sm:$0xff] %v10274_v63 }
  0x55   : > { %9543 = vmatprep.mubr.msk.bf16.mxu0 %vm1451_vm8, %v1297_v15  ;;  %v1088_v34 = vsel %vm10065_vm7, %v1083_v14, %v1087_v60  ;;  %v838_v35 = vshrl.u32 %v10232_v51, 16  ;;  %v841_v36 = vshll.u32 %v10232_v51, 16  ;;  %v847_v37 = vshll.u32 %v10244_v18, 16 }
  0x56   : > { %v1093_v39 = vrot.slane %v1092_v29, 2  ;;  %v1103_v40 = vrot.slane %v1102_v30, 2  ;;  %v1383_v41 = vcombine.low %v1074_v27, %v1088_v34  ;;  %v851_v47 = vshrl.u32 %v10244_v18, 16 }
  0x57   : > { %v840_v42 = vrot.slane %v838_v35, 6  ;;  %v843_v48 = vrot.slane %v841_v36, 7  ;;  %v849_v49 = vrot.slane %v847_v37, 7  ;;  %v857_v50 = vshll.u32 %v10251_v23, 16 }
  0x58   : > { %v1098_v53 = vsel %vm10065_vm7, %v1093_v39, %v1097_v4  ;;  %v1108_v56 = vsel %vm10065_vm7, %v1103_v40, %v1107_v21  ;;  %v1391_v57 = vrot.slane %v1383_v41, %v10046_v17  ;;  %v853_v60 = vrot.slane %v851_v47, 6  ;;  %v10286_v39 = vld.sshfl [vmem:[%s10027_s9 + $0x68] sm:$0x33 pattern:$0x76325410] }
  0x59   : > { %v1384_v59 = vcombine.low %v1098_v53, %v1108_v56  ;;  %v844_v10 = vor.u32 %v843_v48, %v840_v42  ;;  %v859_v61 = vrot.slane %v857_v50, 7  ;;  %v861_v62 = vshrl.u32 %v10251_v23, 16  ;;  %12786 = vst [vmem:[#allocation9_spill] sm:$0xff] %v10286_v39 }
  0x5a   : > { %v854_v0 = vor.u32 %v853_v60, %v849_v49  ;;  %v867_v1 = vshll.u32 %v10257_v32, 16  ;;  %v872_v5 = vshrl.u32 %v10240_v2, 16  ;;  %v875_v3 = vshll.u32 %v10240_v2, 16 }
  0x5b   : > { %v1398_v4 = vrot.slane %v1384_v59, %v10046_v17  ;;  %v845_v13 = vrot.slane %v844_v10, 2  ;;  %v863_v15 = vrot.slane %v861_v62, 6  ;;  %v881_v14 = vshll.u32 %v10248_v22, 16 }
  0x5c   : > { %v855_v21 = vrot.slane %v854_v0, 2  ;;  %v869_v27 = vrot.slane %v867_v1, 7  ;;  %v874_v29 = vrot.slane %v872_v5, 6  ;;  %v877_v30 = vrot.slane %v875_v3, 7 }
  0x5d   : > { %v1399_v34 = vcombine.low %v1391_v57, %v1398_v4  ;;  %v850_v35 = vsel %vm10065_vm7, %v845_v13, %v849_v49  ;;  %v864_v36 = vor.u32 %v863_v15, %v859_v61  ;;  %v10283_v37 = vrot.slane %v881_v14, 7  ;;  %v10299_v48 = vld.sshfl [vmem:[%s10027_s9 + $0x64] sm:$0x13 pattern:$0x76325410] }
  0x5e   : > { %v860_v40 = vsel %vm10065_vm7, %v855_v21, %v859_v61  ;;  %v878_v41 = vor.u32 %v877_v30, %v874_v29  ;;  %v10292_v47 = vcombine.high %v10274_v63, %v10274_v63  ;;  %v10296_v42 = vcombine.high %v10286_v39, %v10286_v39  ;;  %12789 = vst [vmem:[#allocation12_spill] sm:$0xff] %v10299_v48  ;;  %v10318_v15 = vld.sshfl [vmem:[%s10027_s9 + $0x30] sm:$0x33 pattern:$0x76325410] }
  0x5f   : > { %9555 = vmatprep.mubr.msk.bf16.mxu1 %vm1451_vm8, %v1399_v34  ;;  %v865_v49 = vrot.slane %v864_v36, 2  ;;  %v1298_v50 = vcombine.low %v850_v35, %v860_v40  ;;  %v10304_v53 = vcombine.high %v10299_v48, %v10299_v48  ;;  %v1110_v56 = vshrl.u32 %v10274_v63, 16  ;;  %v10325_v40 = vld.sshfl [vmem:[%s10027_s9 + $0x2c] sm:$0x13 pattern:$0x76325410] }
  0x60   : > { %12787 = vst [vmem:[#allocation10_spill] sm:$0xff] %v10292_v47  ;;  %12788 = vst [vmem:[#allocation11_spill] sm:$0xff] %v10296_v42  ;;  %v879_v57 = vrot.slane %v878_v41, 2  ;;  %v1113_v60 = vshll.u32 %v10274_v63, 16  ;;  %v1119_v59 = vshll.u32 %v10292_v47, 16  ;;  %v1123_v10 = vshrl.u32 %v10292_v47, 16 }
  0x61   : > { %12790 = vst [vmem:[#allocation13_spill] sm:$0xff] %v10304_v53  ;;  %v870_v61 = vsel %vm10065_vm7, %v865_v49, %v869_v27  ;;  %v1306_v62 = vrot.slane %v1298_v50, %v10046_v17  ;;  %v1112_v0 = vrot.slane %v1110_v56, 6  ;;  %v1129_v1 = vshll.u32 %v10299_v48, 16 }
  0x62   : > { %v884_v5 = vsel %vm10065_vm7, %v879_v57, %v10283_v37  ;;  %v1115_v3 = vrot.slane %v1113_v60, 7  ;;  %v1121_v4 = vrot.slane %v1119_v59, 7  ;;  %v1125_v13 = vrot.slane %v1123_v10, 6 }
  0x63   : > { %v1299_v14 = vcombine.low %v870_v61, %v884_v5  ;;  %v1131_v21 = vrot.slane %v1129_v1, 7  ;;  %v1133_v29 = vshrl.u32 %v10299_v48, 16  ;;  %v1139_v27 = vshll.u32 %v10304_v53, 16 }
  0x64   : > { %v1116_v30 = vor.u32 %v1115_v3, %v1112_v0  ;;  %v1126_v34 = vor.u32 %v1125_v13, %v1121_v4  ;;  %v1144_v35 = vshrl.u32 %v10286_v39, 16  ;;  %v1147_v36 = vshll.u32 %v10286_v39, 16  ;;  %v10455_v47 = vld.sshfl [vmem:[%s10027_s9 + $0x7c] sm:$0x13 pattern:$0x76325410] }
  0x65   : > { %v1313_v41 = vrot.slane %v1299_v14, %v10046_v17  ;;  %v1135_v49 = vrot.slane %v1133_v29, 6  ;;  %v1141_v50 = vrot.slane %v1139_v27, 7  ;;  %v1153_v56 = vshll.u32 %v10296_v42, 16 }
  0x66   : > { %v1117_v57 = vrot.slane %v1116_v30, 2  ;;  %v1127_v60 = vrot.slane %v1126_v34, 2  ;;  %v1146_v59 = vrot.slane %v1144_v35, 6  ;;  %v1149_v10 = vrot.slane %v1147_v36, 7 }
  0x67   : > { %v1314_v61 = vcombine.low %v1306_v62, %v1313_v41  ;;  %v1136_v0 = vor.u32 %v1135_v49, %v1131_v21  ;;  %v10329_v1 = vrot.slane %v1153_v56, 7  ;;  %v10333_v5 = vcombine.high %v10318_v15, %v10318_v15  ;;  %v10345_v30 = vld.sshfl [vmem:[%s10027_s9 + $0x34] sm:$0x13 pattern:$0x76325410] }
  0x68   : > { %v1122_v3 = vsel %vm10065_vm7, %v1117_v57, %v1121_v4  ;;  %v1132_v13 = vsel %vm10065_vm7, %v1127_v60, %v1131_v21  ;;  %v1150_v14 = vor.u32 %v1149_v10, %v1146_v59  ;;  %v10341_v29 = vcombine.high %v10325_v40, %v10325_v40  ;;  %v10356_v59 = vld.sshfl [vmem:[%s10027_s9 + $0x70] sm:$0x33 pattern:$0x76325410] }
  0x69   : > { %9544 = vmatmul.mubr.msk.bf16.gmra.mxu0 %vm1451_vm8, %v1314_v61  ;;  %v1137_v62 = vrot.slane %v1136_v0, 2  ;;  %v1400_v27 = vcombine.low %v1122_v3, %v1132_v13  ;;  %v885_v34 = vshrl.u32 %v10248_v22, 16  ;;  %v891_v35 = vshll.u32 %v10325_v40, 16  ;;  %12791 = vst [vmem:[#allocation14_spill] sm:$0xff] %v10356_v59 }
  0x6a   : > { %v1151_v4 = vrot.slane %v1150_v14, 2  ;;  %v895_v36 = vshrl.u32 %v10325_v40, 16  ;;  %v901_v21 = vshll.u32 %v10341_v29, 16  ;;  %v906_v41 = vshrl.u32 %v10318_v15, 16 }
  0x6b   : > { %v1142_v49 = vsel %vm10065_vm7, %v1137_v62, %v1141_v50  ;;  %v1408_v56 = vrot.slane %v1400_v27, %v10046_v17  ;;  %v887_v57 = vrot.slane %v885_v34, 6  ;;  %v893_v60 = vrot.slane %v891_v35, 7 }
  0x6c   : > { %v1156_v10 = vsel %vm10065_vm7, %v1151_v4, %v10329_v1  ;;  %v897_v61 = vrot.slane %v895_v36, 6  ;;  %v903_v0 = vrot.slane %v901_v21, 7  ;;  %v908_v3 = vrot.slane %v906_v41, 6 }
  0x6d   : > { %v1401_v13 = vcombine.low %v1142_v49, %v1156_v10  ;;  %v888_v14 = vor.u32 %v887_v57, %v10283_v37  ;;  %v909_v45 = vshll.u32 %v10318_v15, 16  ;;  %v915_v50 = vshll.u32 %v10333_v5, 16  ;;  %v10371_v4 = vld.sshfl [vmem:[%s10027_s9 + $0x6c] sm:$0x13 pattern:$0x76325410] }
  0x6e   : > { %v898_v62 = vor.u32 %v897_v61, %v893_v60  ;;  %v919_v27 = vshrl.u32 %v10333_v5, 16  ;;  %v925_v34 = vshll.u32 %v10345_v30, 16  ;;  %v10368_v35 = vcombine.high %v10356_v59, %v10356_v59  ;;  %12793 = vst [vmem:[#allocation16_spill] sm:$0xff] %v10371_v4 }
  0x6f   : > { %v1415_v36 = vrot.slane %v1401_v13, %v10046_v17  ;;  %v889_v21 = vrot.slane %v888_v14, 2  ;;  %v911_v41 = vrot.slane %v909_v45, 7  ;;  %v917_v37 = vrot.slane %v915_v50, 7 }
  0x70   : > { %12792 = vst [vmem:[#allocation15_spill] sm:$0xff] %v10368_v35  ;;  %v899_v49 = vrot.slane %v898_v62, 2  ;;  %v921_v57 = vrot.slane %v919_v27, 6  ;;  %v10374_v10 = vrot.slane %v925_v34, 7  ;;  %v10378_v61 = vcombine.high %v10371_v4, %v10371_v4 }
  0x71   : > { %v1416_v24 = vcombine.low %v1408_v56, %v1415_v36  ;;  %v894_v53 = vsel %vm10065_vm7, %v889_v21, %v893_v60  ;;  %v912_v48 = vor.u32 %v911_v41, %v908_v3  ;;  %v1157_v39 = vshrl.u32 %v10296_v42, 16  ;;  %v10389_v56 = vld.sshfl [vmem:[%s10027_s9 + $0x74] sm:$0x13 pattern:$0x76325410] }
  0x72   : > { %12794 = vst [vmem:[#allocation17_spill] sm:$0xff] %v10378_v61  ;;  %v904_v45 = vsel %vm10065_vm7, %v899_v49, %v903_v0  ;;  %v922_v13 = vor.u32 %v921_v57, %v917_v37  ;;  %v1163_v14 = vshll.u32 %v10371_v4, 16  ;;  %v1167_v50 = vshrl.u32 %v10371_v4, 16  ;;  %12795 = vst [vmem:[#allocation18_spill] sm:$0xff] %v10389_v56 }
  0x73   : > { %9556 = vmatmul.mubr.msk.bf16.gmra.mxu1 %vm1451_vm8, %v1416_v24  ;;  %v913_v62 = vrot.slane %v912_v48, 2  ;;  %v1315_v27 = vcombine.low %v894_v53, %v904_v45  ;;  %v1159_v34 = vrot.slane %v1157_v39, 6  ;;  %v1173_v60 = vshll.u32 %v10378_v61, 16 }
  0x74   : > { %v923_v3 = vrot.slane %v922_v13, 2  ;;  %v1165_v36 = vrot.slane %v1163_v14, 7  ;;  %v1169_v21 = vrot.slane %v1167_v50, 6  ;;  %v1178_v0 = vshrl.u32 %v10356_v59, 16 }
  0x75   : > { %v918_v41 = vsel %vm10065_vm7, %v913_v62, %v917_v37  ;;  %v1323_v49 = vrot.slane %v1315_v27, %v10046_v17  ;;  %v1160_v57 = vor.u32 %v1159_v34, %v10329_v1  ;;  %v1175_v24 = vrot.slane %v1173_v60, 7  ;;  %v10398_v48 = vld.sshfl [vmem:[%s10027_s9 + $0x38] sm:$0x33 pattern:$0x76325410] }
  0x76   : > { %v928_v39 = vsel %vm10065_vm7, %v923_v3, %v10374_v10  ;;  %v1170_v53 = vor.u32 %v1169_v21, %v1165_v36  ;;  %v1180_v45 = vrot.slane %v1178_v0, 6  ;;  %v1181_v13 = vshll.u32 %v10356_v59, 16 }
  0x77   : > { %v1316_v14 = vcombine.low %v918_v41, %v928_v39  ;;  %v1161_v50 = vrot.slane %v1160_v57, 2  ;;  %v1187_v37 = vshll.u32 %v10368_v35, 16  ;;  %v1191_v62 = vshrl.u32 %v10368_v35, 16 }
  0x78   : > { %v1171_v27 = vrot.slane %v1170_v53, 2  ;;  %v1183_v1 = vrot.slane %v1181_v13, 7  ;;  %v1197_v34 = vshll.u32 %v10389_v56, 16  ;;  %v10409_v60 = vcombine.high %v10398_v48, %v10398_v48 }
  0x79   : > { %v1330_v3 = vrot.slane %v1316_v14, %v10046_v17  ;;  %v1166_v21 = vsel %vm10065_vm7, %v1161_v50, %v1165_v36  ;;  %v1189_v0 = vrot.slane %v1187_v37, 7  ;;  %v1193_v41 = vrot.slane %v1191_v62, 6  ;;  %v10419_v13 = vld.sshfl [vmem:[%s10027_s9 + $0x3c] sm:$0x13 pattern:$0x76325410] }
  0x7a   : > { %v1176_v57 = vsel %vm10065_vm7, %v1171_v27, %v1175_v24  ;;  %v1184_v39 = vor.u32 %v1183_v1, %v1180_v45  ;;  %v10416_v53 = vrot.slane %v1197_v34, 7  ;;  %v10423_v61 = vcombine.high %v10345_v30, %v10345_v30  ;;  %v10433_v62 = vld.sshfl [vmem:[%s10027_s9 + $0x78] sm:$0x33 pattern:$0x76325410] }
  0x7b   : > { %v1331_v4 = vcombine.low %v1323_v49, %v1330_v3  ;;  %v1194_v14 = vor.u32 %v1193_v41, %v1189_v0  ;;  %v1417_v59 = vcombine.low %v1166_v21, %v1176_v57  ;;  %v10427_v36 = vcombine.high %v10419_v13, %v10419_v13  ;;  %12796 = vst [vmem:[#allocation19_spill] sm:$0xff] %v10433_v62 }
  0x7c   : > { %v1185_v50 = vrot.slane %v1184_v39, 2  ;;  %v929_v37 = vshrl.u32 %v10345_v30, 16  ;;  %v935_v24 = vshll.u32 %v10423_v61, 16  ;;  %v940_v45 = vshrl.u32 %v10398_v48, 16 }
  0x7d   : > { %9547 = vmatprep.mubr.msk.bf16.mxu0 %vm1451_vm8, %v1331_v4  ;;  %v1195_v27 = vrot.slane %v1194_v14, 2  ;;  %v1425_v49 = vrot.slane %v1417_v59, %v10046_v17  ;;  %v943_v1 = vshll.u32 %v10398_v48, 16  ;;  %v949_v34 = vshll.u32 %v10409_v60, 16 }
  0x7e   : > { %v1190_v3 = vsel %vm10065_vm7, %v1185_v50, %v1189_v0  ;;  %v931_v21 = vrot.slane %v929_v37, 6  ;;  %v937_v41 = vrot.slane %v935_v24, 7  ;;  %v942_v57 = vrot.slane %v940_v45, 6 }
  0x7f   : > { %v1200_v39 = vsel %vm10065_vm7, %v1195_v27, %v10416_v53  ;;  %v945_v4 = vrot.slane %v943_v1, 7  ;;  %v951_v14 = vrot.slane %v949_v34, 7  ;;  %v953_v59 = vshrl.u32 %v10409_v60, 16 }
  0x80   : > { %v1418_v35 = vcombine.low %v1190_v3, %v1200_v39  ;;  %v932_v42 = vor.u32 %v931_v21, %v10374_v10  ;;  %v959_v63 = vshll.u32 %v10419_v13, 16  ;;  %v963_v0 = vshrl.u32 %v10419_v13, 16 }
  0x81   : > { %v946_v50 = vor.u32 %v945_v4, %v942_v57  ;;  %v955_v37 = vrot.slane %v953_v59, 6  ;;  %v969_v24 = vshll.u32 %v10427_v36, 16  ;;  %v10451_v45 = vcombine.high %v10433_v62, %v10433_v62 }
  0x82   : > { %v1432_v27 = vrot.slane %v1418_v35, %v10046_v17  ;;  %v933_v1 = vrot.slane %v932_v42, 2  ;;  %v961_v34 = vrot.slane %v959_v63, 7  ;;  %v965_v3 = vrot.slane %v963_v0, 6 }
  0x83   : > { %12797 = vst [vmem:[#allocation20_spill] sm:$0xff] %v10451_v45  ;;  %v947_v39 = vrot.slane %v946_v50, 2  ;;  %v956_v10 = vor.u32 %v955_v37, %v951_v14  ;;  %v971_v21 = vrot.slane %v969_v24, 7  ;;  %v10459_v57 = vcombine.high %v10389_v56, %v10389_v56 }
  0x84   : > { %v1433_v4 = vcombine.low %v1425_v49, %v1432_v27  ;;  %v938_v59 = vsel %vm10065_vm7, %v933_v1, %v937_v41  ;;  %v966_v6 = vor.u32 %v965_v3, %v961_v34  ;;  %v10465_v35 = vcombine.high %v10455_v47, %v10455_v47 }
  0x85   : > { %12798 = vst [vmem:[#allocation21_spill] sm:$0xff] %v10459_v57  ;;  %v952_v63 = vsel %vm10065_vm7, %v947_v39, %v951_v14  ;;  %v957_v42 = vrot.slane %v956_v10, 2  ;;  %v1201_v0 = vshrl.u32 %v10389_v56, 16  ;;  %v1207_v50 = vshll.u32 %v10459_v57, 16 }
  0x86   : > { %12799 = vst [vmem:[#allocation22_spill] sm:$0xff] %v10465_v35  ;;  %9559 = vmatprep.mubr.msk.bf16.mxu1 %vm1451_vm8, %v1433_v4  ;;  %v967_v49 = vrot.slane %v966_v6, 2  ;;  %v1332_v37 = vcombine.low %v938_v59, %v952_v63  ;;  %v1212_v41 = vshrl.u32 %v10433_v62, 16  ;;  %v1215_v24 = vshll.u32 %v10433_v62, 16 }
  0x87   : > { %v962_v27 = vsel %vm10065_vm7, %v957_v42, %v961_v34  ;;  %v1203_v1 = vrot.slane %v1201_v0, 6  ;;  %v1209_v14 = vrot.slane %v1207_v50, 7  ;;  %v1221_v3 = vshll.u32 %v10451_v45, 16 }
  0x88   : > { %v972_v39 = vsel %vm10065_vm7, %v967_v49, %v971_v21  ;;  %v1340_v10 = vrot.slane %v1332_v37, %v10046_v17  ;;  %v1214_v6 = vrot.slane %v1212_v41, 6  ;;  %v1217_v4 = vrot.slane %v1215_v24, 7  ;;  %v8789_v59 = vld.sshfl [vmem:[%s10027_s9 + $0x4] sm:$0x3 pattern:$0x76325410] }
  0x89   : > { %v1333_v63 = vcombine.low %v962_v27, %v972_v39  ;;  %v1204_v57 = vor.u32 %v1203_v1, %v10416_v53  ;;  %v1223_v62 = vrot.slane %v1221_v3, 7  ;;  %v1225_v34 = vshrl.u32 %v10451_v45, 16  ;;  %v8861_v42 = vld.sshfl [vmem:[%s10027_s9] sm:$0x32 pattern:$0x76325410] }
  0x8a   : > { %v1218_v21 = vor.u32 %v1217_v4, %v1214_v6  ;;  %v1231_v50 = vshll.u32 %v10455_v47, 16  ;;  %v1235_v49 = vshrl.u32 %v10455_v47, 16  ;;  %v1241_v37 = vshll.u32 %v10465_v35, 16 }
  0x8b   : > { %v8862_v41 = vld.sshfl [vmem:[%s10027_s9 + $0x4] sm:$0x13 pattern:$0x76325410]  ;;  %v1347_v53 = vrot.slane %v1333_v63, %v10046_v17  ;;  %v1205_v24 = vrot.slane %v1204_v57, 2  ;;  %v1227_v27 = vrot.slane %v1225_v34, 6  ;;  %v1622_v1 = vcombine.low %v8789_v59, %v10036_v11 }
  0x8c   : > { %v8863_v3 = vld.sshfl [vmem:[%s10027_s9 + $0x8] sm:$0x32 pattern:$0x76325410]  ;;  %v1219_v39 = vrot.slane %v1218_v21, 2  ;;  %v1233_v45 = vrot.slane %v1231_v50, 7  ;;  %v12802_v57 = vcombine.low %v10030_v9, %v10040_v12  ;;  %v2064_v21 = vcombine.high %v8861_v42, %v8861_v42 }
  0x8d   : > { %v1237_v56 = vrot.slane %v1235_v49, 6  ;;  %v1243_v28 = vrot.slane %v1241_v37, 7  ;;  %v1348_v6 = vcombine.low %v1340_v10, %v1347_v53  ;;  %v1210_v4 = vsel %vm10065_vm7, %v1205_v24, %v1209_v14 }
  0x8e   : > { %v1228_v35 = vor.u32 %v1227_v27, %v1223_v62  ;;  %v1629_v63 = vrot.slane %v12802_v57, %v10046_v17  ;;  %v1224_v11 = vsel %vm10065_vm7, %v1219_v39, %v1223_v62  ;;  %v1636_v34 = vrot.slane %v1622_v1, %v10046_v17 }
  0x8f   : > { %v1238_v59 = vor.u32 %v1237_v56, %v1233_v45  ;;  %9548 = vmatmul.mubr.msk.bf16.gmra.mxu0 %vm1451_vm8, %v1348_v6  ;;  %v1434_v0 = vcombine.low %v1210_v4, %v1224_v11  ;;  %v2072_v50 = vcombine.high %v8862_v41, %v8862_v41  ;;  %v2080_v14 = vcombine.high %v8863_v3, %v8863_v3 }
  0x90   : > { %v1229_v10 = vrot.slane %v1228_v35, 2  ;;  %v1637_v12 = vcombine.low %v1629_v63, %v1636_v34  ;;  %v8893_v37 = vrot.slane %v8861_v42, 9  ;;  %v2322_v62 = vrot.slane %v2064_v21, 7 }
  0x91   : > { %v1239_v9 = vrot.slane %v1238_v59, 2  ;;  %v1442_v53 = vrot.slane %v1434_v0, %v10046_v17  ;;  %v2325_v24 = vrot.slane %v8862_v41, 7  ;;  %v2328_v27 = vrot.slane %v2072_v50, 7 }
  0x92   : > { %v1234_v56 = vsel %vm10065_vm7, %v1229_v10, %v1233_v45  ;;  %v8865_v35 = vld.sshfl [vmem:[%s10027_s9 + $0x10] sm:$0x32 pattern:$0x76325410]  ;;  %v2323_v39 = vsel %vm10511_vm15, %v8893_v37, %v2322_v62  ;;  %v2324_v6 = vrot.slane %v2322_v62, 2  ;;  %v8894_v4 = vrot.slane %v8863_v3, 9 }
  0x93   : > { %v1244_v1 = vsel %vm10065_vm7, %v1239_v9, %v1243_v28  ;;  %v2327_v42 = vrot.slane %v2325_v24, 2  ;;  %v2332_v63 = vrot.slane %v2080_v14, 7  ;;  %v1639_v45 = vcombine.low %v10095_v26, %v10107_v43  ;;  %v10541_v50 = vld.sshfl [vmem:[%s10027_s9 + $0x14] sm:$0x3 pattern:$0x76325410] }
  0x94   : > { %v1435_v57 = vcombine.low %v1234_v56, %v1244_v1  ;;  %v2326_v41 = vsel %vm10511_vm15, %v2324_v6, %v2325_v24  ;;  %v12805_v11 = vcombine.low %v10056_v20, %v10052_v19  ;;  %v2096_v59 = vcombine.high %v8865_v35, %v8865_v35  ;;  %v10547_v62 = vld.sshfl [vmem:[%s10027_s9 + $0x1c] sm:$0x3 pattern:$0x76325410] }
  0x95   : > { %v2335_v3 = vrot.slane %v10098_v31, 7  ;;  %v2329_v21 = vsel %vm10511_vm15, %v2327_v42, %v2328_v27  ;;  %v2333_v26 = vsel %vm10511_vm15, %v8894_v4, %v2332_v63  ;;  %v2334_v43 = vrot.slane %v2332_v63, 2 }
  0x96   : > { %v10531_v28 = vrot.slane %v12805_v11, %v10046_v17  ;;  %v1449_v34 = vrot.slane %v1435_v57, %v10046_v17  ;;  %v2482_v10 = vcombine.low %v2323_v39, %v2326_v41  ;;  %v2483_v0 = vcombine.low %v2329_v21, %v2333_v26  ;;  %v8867_v39 = vld.sshfl [vmem:[%s10027_s9 + $0x18] sm:$0x32 pattern:$0x76325410] }
  0x97   : > { %v1653_v19 = vrot.slane %v1639_v45, %v10046_v17  ;;  %v2337_v20 = vrot.slane %v2335_v3, 2  ;;  %v2336_v31 = vsel %vm10511_vm15, %v2334_v43, %v2335_v3  ;;  %v2338_v9 = vrot.slane %v10111_v44, 7  ;;  %v8869_v21 = vld.sshfl [vmem:[%s10027_s9 + $0x20] sm:$0x32 pattern:$0x76325410] }
  0x98   : > { %v1450_v14 = vcombine.low %v1442_v53, %v1449_v34  ;;  %v8895_v37 = vrot.slane %v8865_v35, 9  ;;  %v2490_v56 = vrot.slane %v2482_v10, %v10046_v17  ;;  %v2497_v24 = vrot.slane %v2483_v0, %v10046_v17  ;;  %v8871_v0 = vld.sshfl [vmem:[%s10027_s9 + $0x28] sm:$0x32 pattern:$0x76325410] }
  0x99   : > { %v1654_v27 = vcombine.low %v10531_v28, %v1653_v19  ;;  %v2342_v1 = vrot.slane %v2096_v59, 7  ;;  %v2339_v53 = vsel %vm10511_vm15, %v2337_v20, %v2338_v9  ;;  %v2345_v6 = vrot.slane %v10116_v52, 7  ;;  %v10574_v59 = vld.sshfl [vmem:[%s10027_s9 + $0x24] sm:$0x3 pattern:$0x76325410] }
  0x9a   : > { %9560 = vmatmul.mubr.msk.bf16.gmra.mxu1 %vm1451_vm8, %v1450_v14  ;;  %v3429_v44 = vsel %vm1488_vm0, %v10221_v38, 0  ;;  %v4691_v35 = vsel %vm1488_vm0, %v10191_v46, 0  ;;  %v2498_v4 = vcombine.low %v2490_v56, %v2497_v24  ;;  %v2499_v63 = vcombine.low %v2336_v31, %v2339_v53  ;;  %v10592_v9 = vld [vmem:[%s12704_s1 + $0xa] sm:$0x3] }
  0x9b   : > { %9565 = vmatprep.mubr.msk.bf16.mxu1 %vm1451_vm8, %v1637_v12  ;;  %v2343_v57 = vsel %vm10511_vm15, %v8895_v37, %v2342_v1  ;;  %v2344_v42 = vrot.slane %v2342_v1, 2  ;;  %v1655_v45 = vcombine.low %v10541_v50, %v10151_v58  ;;  %v1656_v52 = vcombine.low %v10163_v8, %v10547_v62  ;;  %v8873_v53 = vld.sshfl [vmem:[%s10027_s9 + $0x30] sm:$0x32 pattern:$0x76325410] }
  0x9c   : > { %v2112_v38 = vcombine.high %v8867_v39, %v8867_v39  ;;  %v2347_v41 = vrot.slane %v2345_v6, 2  ;;  %9591 = vmatprep.mubr.msk.bf16.mxu0 %vm1451_vm8, %v2498_v4  ;;  %v2507_v12 = vrot.slane %v2499_v63, %v10046_v17  ;;  %v2348_v11 = vrot.slane %v10172_v16, 7 }
  0x9d   : > { %v2346_v46 = vsel %vm10511_vm15, %v2344_v42, %v2345_v6  ;;  %v8896_v28 = vrot.slane %v8867_v39, 9  ;;  %v1663_v58 = vrot.slane %v1655_v45, %v10046_v17  ;;  %v1670_v8 = vrot.slane %v1656_v52, %v10046_v17 }
  0x9e   : > { %v2500_v3 = vcombine.low %v2343_v57, %v2346_v46  ;;  %v2352_v34 = vrot.slane %v2112_v38, 7  ;;  %v2349_v26 = vsel %vm10511_vm15, %v2347_v41, %v2348_v11  ;;  %v2355_v43 = vrot.slane %v10166_v7, 7 }
  0x9f   : > { %v2358_v10 = vrot.slane %v10179_v25, 7  ;;  %v1672_v16 = vcombine.low %v10232_v51, %v10244_v18  ;;  %v1671_v20 = vcombine.low %v1663_v58, %v1670_v8  ;;  %v1673_v25 = vcombine.low %v10574_v59, %v10240_v2  ;;  %v10598_v18 = vld.sshfl [vmem:[%s10027_s9 + $0x2c] sm:$0x3 pattern:$0x76325410] }
  0xa0   : > { %v2514_v19 = vrot.slane %v2500_v3, %v10046_v17  ;;  %v2353_v14 = vsel %vm10511_vm15, %v8896_v28, %v2352_v34  ;;  %v2354_v31 = vrot.slane %v2352_v34, 2  ;;  %v2357_v7 = vrot.slane %v2355_v43, 2  ;;  %v10632_v58 = vld.sshfl [vmem:[%s10027_s9 + $0x34] sm:$0x3 pattern:$0x76325410] }
  0xa1   : > { %v2516_v37 = vcombine.low %v2349_v26, %v2353_v14  ;;  %v1680_v51 = vrot.slane %v1672_v16, %v10046_v17  ;;  %v2128_v1 = vcombine.high %v8869_v21, %v8869_v21  ;;  %v2144_v39 = vcombine.high %v8871_v0, %v8871_v0 }
  0xa2   : > { %9566 = vmatmul.mubr.msk.bf16.vlgmr.msra.gmra.mxu1 %vm1451_vm8, %v1654_v27  ;;  %v2515_v56 = vcombine.low %v2507_v12, %v2514_v19  ;;  %v2356_v24 = vsel %vm10511_vm15, %v2354_v31, %v2355_v43  ;;  %v2359_v6 = vsel %vm10511_vm15, %v2357_v7, %v2358_v10  ;;  %v1687_v4 = vrot.slane %v1673_v25, %v10046_v17  ;;  %v10612_v27 = vld [vmem:[%s12704_s1 + $0xc] sm:$0x3]  ;;  %v10639_v43 = vld.sshfl [vmem:[%s10027_s9 + $0x3c] sm:$0x3 pattern:$0x76325410] }
  0xa3   : > { %9616 = vmatpush3.bf16.msra.mxu1 %v3429_v44  ;;  %9569 = vmatprep.mubr.msk.bf16.mxu1 %vm1451_vm8, %v1671_v20  ;;  %v2524_v2 = vrot.slane %v2516_v37, %v10046_v17  ;;  %v8897_v57 = vrot.slane %v8869_v21, 9  ;;  %v2517_v42 = vcombine.low %v2356_v24, %v2359_v6  ;;  %v2362_v63 = vrot.slane %v2128_v1, 7 }
  0xa4   : > { %9592 = vmatmul.mubr.msk.bf16.vlgmr.msra.gmra.mxu0 %vm1451_vm8, %v2515_v56  ;;  %v2365_v44 = vrot.slane %v10251_v23, 7  ;;  %v2368_v45 = vrot.slane %v10257_v32, 7  ;;  %9779 = vmatprep.subr.msk.bf16.mxu1 %vm1488_vm0, %v10592_v9  ;;  %v1688_v52 = vcombine.low %v1680_v51, %v1687_v4  ;;  %v8898_v38 = vrot.slane %v8871_v0, 9 }
  0xa5   : > { %9642 = vmatpush3.bf16.msra.mxu0 %v4691_v35  ;;  %v2372_v41 = vrot.slane %v2144_v39, 7  ;;  %v1689_v46 = vcombine.low %v10248_v22, %v10598_v18  ;;  %v2531_v12 = vrot.slane %v2517_v42, %v10046_v17  ;;  %v2363_v11 = vsel %vm10511_vm15, %v8897_v57, %v2362_v63  ;;  %v10666_v57 = vld.sshfl [vmem:[%s10027_s9 + $0x44] sm:$0x3 pattern:$0x76325410] }
  0xa6   : > { %v2364_v23 = vrot.slane %v2362_v63, 2  ;;  %v2367_v28 = vrot.slane %v2365_v44, 2  ;;  %9780 = vmatprep.subr.msk.bf16.mxu0 %vm1488_vm0, %v10612_v27  ;;  %v1690_v35 = vcombine.low %v10318_v15, %v10333_v5  ;;  %v2160_v22 = vcombine.high %v8873_v53, %v8873_v53  ;;  %v8875_v5 = vld.sshfl [vmem:[%s10027_s9 + $0x38] sm:$0x32 pattern:$0x76325410] }
  0xa7   : > { %v2373_v32 = vsel %vm10511_vm15, %v8898_v38, %v2372_v41  ;;  %v1697_v3 = vrot.slane %v1689_v46, %v10046_v17  ;;  %v2532_v8 = vcombine.low %v2524_v2, %v2531_v12  ;;  %v2374_v26 = vrot.slane %v2372_v41, 2 }
  0xa8   : > { %v2366_v34 = vsel %vm10511_vm15, %v2364_v23, %v2365_v44  ;;  %v2369_v21 = vsel %vm10511_vm15, %v2367_v28, %v2368_v45  ;;  %v1704_v0 = vrot.slane %v1690_v35, %v10046_v17  ;;  %v2375_v15 = vrot.slane %v10325_v40, 7  ;;  %v8877_v45 = vld.sshfl [vmem:[%s10027_s9 + $0x40] sm:$0x32 pattern:$0x76325410] }
  0xa9   : > { %v2533_v10 = vcombine.low %v2363_v11, %v2366_v34  ;;  %v2534_v16 = vcombine.low %v2369_v21, %v2373_v32  ;;  %9595 = vmatprep.mubr.msk.bf16.mxu0 %vm1451_vm8, %v2532_v8  ;;  %v2378_v19 = vrot.slane %v10341_v29, 7  ;;  %v8899_v20 = vrot.slane %v8873_v53, 9  ;;  %v9844_v23 = vld.sshfl [vmem:[%s10027_s9 + $0x40] sm:$0x33 pattern:$0x76325410] }
  0xaa   : > { %9570 = vmatmul.mubr.msk.bf16.gmra.mxu1 %vm1451_vm8, %v1688_v52  ;;  %v2382_v14 = vrot.slane %v2160_v22, 7  ;;  %v2385_v31 = vrot.slane %v10345_v30, 7  ;;  %v1705_v25 = vcombine.low %v1697_v3, %v1704_v0  ;;  %v2376_v40 = vsel %vm10511_vm15, %v2374_v26, %v2375_v15  ;;  %v10680_v32 = vld.sshfl [vmem:[%s10027_s9 + $0x44] sm:$0x13 pattern:$0x76325410] }
  0xab   : > { %v2541_v7 = vrot.slane %v2533_v10, %v10046_v17  ;;  %v2548_v37 = vrot.slane %v2534_v16, %v10046_v17  ;;  %v2377_v51 = vrot.slane %v2375_v15, 2  ;;  %v1706_v29 = vcombine.low %v10632_v58, %v10398_v48  ;;  %v9845_v8 = vld.sshfl [vmem:[%s10027_s9 + $0x48] sm:$0x33 pattern:$0x76325410] }
  0xac   : > { %v2383_v56 = vsel %vm10511_vm15, %v8899_v20, %v2382_v14  ;;  %v2384_v24 = vrot.slane %v2382_v14, 2  ;;  %9573 = vmatprep.mubr.msk.bf16.mxu1 %vm1451_vm8, %v1705_v25  ;;  %v1707_v30 = vcombine.low %v10409_v60, %v10639_v43  ;;  %v2176_v39 = vcombine.high %v8875_v5, %v8875_v5 }
  0xad   : > { %v2549_v1 = vcombine.low %v2541_v7, %v2548_v37  ;;  %v2387_v53 = vrot.slane %v2385_v31, 2  ;;  %v2379_v6 = vsel %vm10511_vm15, %v2377_v51, %v2378_v19  ;;  %v1714_v4 = vrot.slane %v1706_v29, %v10046_v17  ;;  %v10704_v7 = vld.sshfl [vmem:[%s10027_s9 + $0x4c] sm:$0x13 pattern:$0x76325410] }
  0xae   : > { %v2386_v2 = vsel %vm10511_vm15, %v2384_v24, %v2385_v31  ;;  %v2388_v48 = vrot.slane %v10423_v61, 7  ;;  %v2550_v42 = vcombine.low %v2376_v40, %v2379_v6  ;;  %v1721_v63 = vrot.slane %v1707_v30, %v10046_v17  ;;  %v8881_v30 = vld.sshfl [vmem:[%s10027_s9 + $0x50] sm:$0x32 pattern:$0x76325410] }
  0xaf   : > { %9596 = vmatmul.mubr.msk.bf16.gmra.mxu0 %vm1451_vm8, %v2549_v1  ;;  %v2551_v60 = vcombine.low %v2383_v56, %v2386_v2  ;;  %v8900_v44 = vrot.slane %v8875_v5, 9  ;;  %v2392_v38 = vrot.slane %v2176_v39, 7  ;;  %v2395_v41 = vrot.slane %v10419_v13, 7 }
  0xb0   : > { %v2389_v52 = vsel %vm10511_vm15, %v2387_v53, %v2388_v48  ;;  %v2398_v61 = vrot.slane %v10427_v36, 7  ;;  %v2558_v46 = vrot.slane %v2550_v42, %v10046_v17  ;;  %v1722_v11 = vcombine.low %v1714_v4, %v1721_v63  ;;  %v8879_v36 = vld.sshfl [vmem:[%s10027_s9 + $0x48] sm:$0x32 pattern:$0x76325410] }
  0xb1   : > { %v2565_v12 = vrot.slane %v2551_v60, %v10046_v17  ;;  %v1723_v28 = vcombine.low %v9844_v23, %v10077_v54  ;;  %v2393_v35 = vsel %vm10511_vm15, %v8900_v44, %v2392_v38  ;;  %v2394_v3 = vrot.slane %v2392_v38, 2  ;;  %v10699_v5 = vld.sshfl [vmem:[%s10027_s9 + $0x4c] sm:$0x3 pattern:$0x76325410] }
  0xb2   : > { %v2397_v22 = vrot.slane %v2395_v41, 2  ;;  %v1724_v13 = vcombine.low %v10666_v57, %v9845_v8  ;;  %9574 = vmatmul.mubr.msk.bf16.gmra.mxu1 %vm1451_vm8, %v1722_v11  ;;  %v2567_v21 = vcombine.low %v2389_v52, %v2393_v35  ;;  %v2192_v54 = vcombine.high %v8877_v45, %v8877_v45  ;;  %v9846_v2 = vld.sshfl [vmem:[%s10027_s9 + $0x50] sm:$0x33 pattern:$0x76325410]  ;;  %v12806_v4 = vld [vmem:[#allocation6_spill] sm:$0xff] }
  0xb3   : > { %v2566_v34 = vcombine.low %v2558_v46, %v2565_v12  ;;  %v1731_v26 = vrot.slane %v1723_v28, %v10046_v17  ;;  %v2396_v10 = vsel %vm10511_vm15, %v2394_v3, %v2395_v41  ;;  %v10696_v15 = vcombine.high %v10680_v32, %v10680_v32  ;;  %v8811_v28 = vld.sshfl [vmem:[%s10027_s9 + $0x5c] sm:$0x3 pattern:$0x76325410] }
  0xb4   : > { %v2399_v16 = vsel %vm10511_vm15, %v2397_v22, %v2398_v61  ;;  %v1738_v0 = vrot.slane %v1724_v13, %v10046_v17  ;;  %v2575_v20 = vrot.slane %v2567_v21, %v10046_v17  ;;  %v2208_v14 = vcombine.high %v8879_v36, %v8879_v36  ;;  %v10731_v61 = vld.sshfl [vmem:[%s10027_s9 + $0x54] sm:$0x3 pattern:$0x76325410] }
  0xb5   : > { %9599 = vmatprep.mubr.msk.bf16.mxu0 %vm1451_vm8, %v2566_v34  ;;  %v2568_v19 = vcombine.low %v2396_v10, %v2399_v16  ;;  %v8901_v31 = vrot.slane %v8877_v45, 9  ;;  %v2402_v25 = vrot.slane %v2192_v54, 7  ;;  %v2405_v40 = vrot.slane %v10680_v32, 7 }
  0xb6   : > { %v1739_v37 = vcombine.low %v1731_v26, %v1738_v0  ;;  %v2408_v51 = vrot.slane %v10696_v15, 7  ;;  %v8902_v24 = vrot.slane %v8879_v36, 9  ;;  %v2412_v29 = vrot.slane %v2208_v14, 7 }
  0xb7   : > { %v2582_v56 = vrot.slane %v2568_v19, %v10046_v17  ;;  %v1740_v1 = vcombine.low %v10079_v55, %v10699_v5  ;;  %v2403_v39 = vsel %vm10511_vm15, %v8901_v31, %v2402_v25  ;;  %v2404_v53 = vrot.slane %v2402_v25, 2  ;;  %v8882_v55 = vld.sshfl [vmem:[%s10027_s9 + $0x54] sm:$0x13 pattern:$0x76325410] }
  0xb8   : > { %9577 = vmatprep.mubr.msk.bf16.mxu1 %vm1451_vm8, %v1739_v37  ;;  %v2407_v6 = vrot.slane %v2405_v40, 2  ;;  %v1741_v48 = vcombine.low %v9846_v2, %v12806_v4  ;;  %v2413_v60 = vsel %vm10511_vm15, %v8902_v24, %v2412_v29  ;;  %v10723_v44 = vcombine.high %v10704_v7, %v10704_v7  ;;  %v8883_v26 = vld.sshfl [vmem:[%s10027_s9 + $0x58] sm:$0x32 pattern:$0x76325410]  ;;  %v12807_v37 = vld [vmem:[#allocation7_spill] sm:$0xff] }
  0xb9   : > { %v2583_v42 = vcombine.low %v2575_v20, %v2582_v56  ;;  %v1748_v63 = vrot.slane %v1740_v1, %v10046_v17  ;;  %v2406_v45 = vsel %vm10511_vm15, %v2404_v53, %v2405_v40  ;;  %v2224_v41 = vcombine.high %v8881_v30, %v8881_v30  ;;  %v9847_v0 = vld.sshfl [vmem:[%s10027_s9 + $0x58] sm:$0x33 pattern:$0x76325410] }
  0xba   : > { %v2409_v52 = vsel %vm10511_vm15, %v2407_v6, %v2408_v51  ;;  %v1755_v38 = vrot.slane %v1741_v48, %v10046_v17  ;;  %v2584_v46 = vcombine.low %v2403_v39, %v2406_v45  ;;  %v2414_v11 = vrot.slane %v2412_v29, 2  ;;  %v10748_v20 = vld.sshfl [vmem:[%s10027_s9 + $0x5c] sm:$0x13 pattern:$0x76325410] }
  0xbb   : > { %9600 = vmatmul.mubr.msk.bf16.gmra.mxu0 %vm1451_vm8, %v2583_v42  ;;  %v2585_v12 = vcombine.low %v2409_v52, %v2413_v60  ;;  %v2415_v23 = vrot.slane %v10704_v7, 7  ;;  %v2418_v3 = vrot.slane %v10723_v44, 7  ;;  %v8903_v22 = vrot.slane %v8881_v30, 9 }
  0xbc   : > { %v1756_v35 = vcombine.low %v1748_v63, %v1755_v38  ;;  %v2422_v8 = vrot.slane %v2224_v41, 7  ;;  %v2592_v13 = vrot.slane %v2584_v46, %v10046_v17  ;;  %v2425_v16 = vrot.slane %v8882_v55, 7  ;;  %v8813_v1 = vld.sshfl [vmem:[%s10027_s9 + $0x64] sm:$0x3 pattern:$0x76325410] }
  0xbd   : > { %v2599_v36 = vrot.slane %v2585_v12, %v10046_v17  ;;  %v2416_v34 = vsel %vm10511_vm15, %v2414_v11, %v2415_v23  ;;  %v2417_v21 = vrot.slane %v2415_v23, 2  ;;  %v1757_v19 = vcombine.low %v10731_v61, %v9847_v0  ;;  %v8885_v2 = vld.sshfl [vmem:[%s10027_s9 + $0x60] sm:$0x32 pattern:$0x76325410]  ;;  %v12808_v11 = vld [vmem:[#allocation10_spill] sm:$0xff] }
  0xbe   : > { %9578 = vmatmul.mubr.msk.bf16.gmra.mxu1 %vm1451_vm8, %v1756_v35  ;;  %v2423_v54 = vsel %vm10511_vm15, %v8903_v22, %v2422_v8  ;;  %v2424_v10 = vrot.slane %v2422_v8, 2  ;;  %v1758_v25 = vcombine.low %v12807_v37, %v8811_v28  ;;  %v2232_v40 = vcombine.high %v8882_v55, %v8882_v55  ;;  %v8887_v38 = vld.sshfl [vmem:[%s10027_s9 + $0x68] sm:$0x32 pattern:$0x76325410]  ;;  %v12809_v23 = vld [vmem:[#allocation8_spill] sm:$0xff] }
  0xbf   : > { %v2600_v14 = vcombine.low %v2592_v13, %v2599_v36  ;;  %v2419_v31 = vsel %vm10511_vm15, %v2417_v21, %v2418_v3  ;;  %v1765_v24 = vrot.slane %v1757_v19, %v10046_v17  ;;  %v2240_v29 = vcombine.high %v8883_v26, %v8883_v26  ;;  %v12810_v8 = vld [vmem:[#allocation9_spill] sm:$0xff] }
  0xc0   : > { %v2426_v51 = vsel %vm10511_vm15, %v2424_v10, %v2425_v16  ;;  %v2601_v56 = vcombine.low %v2416_v34, %v2419_v31  ;;  %v1772_v39 = vrot.slane %v1758_v25, %v10046_v17  ;;  %v10761_v53 = vcombine.high %v10748_v20, %v10748_v20  ;;  %v12811_v25 = vld [vmem:[#allocation12_spill] sm:$0xff] }
  0xc1   : > { %9603 = vmatprep.mubr.msk.bf16.mxu0 %vm1451_vm8, %v2600_v14  ;;  %v2602_v30 = vcombine.low %v2423_v54, %v2426_v51  ;;  %v2427_v6 = vrot.slane %v2425_v16, 2  ;;  %v2428_v48 = vrot.slane %v2232_v40, 7  ;;  %v8904_v42 = vrot.slane %v8883_v26, 9  ;;  %v12812_v51 = vld [vmem:[#allocation13_spill] sm:$0xff] }
  0xc2   : > { %v2609_v4 = vrot.slane %v2601_v56, %v10046_v17  ;;  %v2432_v60 = vrot.slane %v2240_v29, 7  ;;  %v1773_v55 = vcombine.low %v1765_v24, %v1772_v39  ;;  %v2435_v45 = vrot.slane %v10748_v20, 7  ;;  %v8815_v54 = vld.sshfl [vmem:[%s10027_s9 + $0x6c] sm:$0x3 pattern:$0x76325410] }
  0xc3   : > { %v2616_v63 = vrot.slane %v2602_v30, %v10046_v17  ;;  %v2438_v52 = vrot.slane %v10761_v53, 7  ;;  %v2429_v41 = vsel %vm10511_vm15, %v2427_v6, %v2428_v48  ;;  %v1774_v28 = vcombine.low %v12809_v23, %v12808_v11  ;;  %v8889_v14 = vld.sshfl [vmem:[%s10027_s9 + $0x70] sm:$0x32 pattern:$0x76325410] }
  0xc4   : > { %v2433_v46 = vsel %vm10511_vm15, %v8904_v42, %v2432_v60  ;;  %v2434_v12 = vrot.slane %v2432_v60, 2  ;;  %9581 = vmatprep.mubr.msk.bf16.mxu1 %vm1451_vm8, %v1773_v55  ;;  %v2437_v3 = vrot.slane %v2435_v45, 2  ;;  %v1775_v13 = vcombine.low %v8813_v1, %v12810_v8  ;;  %v12813_v30 = vld [vmem:[#allocation11_spill] sm:$0xff] }
  0xc5   : > { %v2617_v35 = vcombine.low %v2609_v4, %v2616_v63  ;;  %v2618_v22 = vcombine.low %v2429_v41, %v2433_v46  ;;  %v1782_v34 = vrot.slane %v1774_v28, %v10046_v17  ;;  %v2256_v21 = vcombine.high %v8885_v2, %v8885_v2  ;;  %v12814_v60 = vld [vmem:[#allocation15_spill] sm:$0xff]  ;;  %v12815_v63 = vld [vmem:[#allocation14_spill] sm:$0xff]  ;;  %v8819_v23 = vld.sshfl [vmem:[%s10027_s9 + $0x7c] sm:$0x3 pattern:$0x76325410] }
  0xc6   : > { %v2436_v36 = vsel %vm10511_vm15, %v2434_v12, %v2435_v45  ;;  %v2272_v26 = vcombine.high %v8887_v38, %v8887_v38  ;;  %v2439_v10 = vsel %vm10511_vm15, %v2437_v3, %v2438_v52  ;;  %v1789_v0 = vrot.slane %v1775_v13, %v10046_v17  ;;  %v8891_v13 = vld.sshfl [vmem:[%s10027_s9 + $0x78] sm:$0x32 pattern:$0x76325410] }
  0xc7   : > { %9604 = vmatmul.mubr.msk.bf16.gmra.mxu0 %vm1451_vm8, %v2617_v35  ;;  %v2626_v16 = vrot.slane %v2618_v22, %v10046_v17  ;;  %v8905_v19 = vrot.slane %v8885_v2, 9  ;;  %v2619_v31 = vcombine.low %v2436_v36, %v2439_v10  ;;  %v2442_v37 = vrot.slane %v2256_v21, 7  ;;  %v12816_v22 = vld [vmem:[#allocation16_spill] sm:$0xff]  ;;  %v12817_v36 = vld [vmem:[#allocation17_spill] sm:$0xff] }
  0xc8   : > { %v2445_v40 = vrot.slane %v12811_v25, 7  ;;  %v2448_v56 = vrot.slane %v12812_v51, 7  ;;  %v1790_v24 = vcombine.low %v1782_v34, %v1789_v0  ;;  %v8906_v29 = vrot.slane %v8887_v38, 9  ;;  %v12819_v51 = vld [vmem:[#allocation19_spill] sm:$0xff] }
  0xc9   : > { %v2452_v1 = vrot.slane %v2272_v26, 7  ;;  %v1791_v39 = vcombine.low %v12813_v30, %v8815_v54  ;;  %v2633_v6 = vrot.slane %v2619_v31, %v10046_v17  ;;  %v2443_v4 = vsel %vm10511_vm15, %v8905_v19, %v2442_v37  ;;  %v8817_v38 = vld.sshfl [vmem:[%s10027_s9 + $0x74] sm:$0x3 pattern:$0x76325410]  ;;  %v12818_v54 = vld [vmem:[#allocation18_spill] sm:$0xff] }
  0xca   : > { %v2444_v2 = vrot.slane %v2442_v37, 2  ;;  %v2447_v48 = vrot.slane %v2445_v40, 2  ;;  %9582 = vmatmul.mubr.msk.bf16.gmra.mxu1 %vm1451_vm8, %v1790_v24  ;;  %v1792_v55 = vcombine.low %v12815_v63, %v12814_v60  ;;  %v2288_v52 = vcombine.high %v8889_v14, %v8889_v14  ;;  %v12820_v24 = vld [vmem:[#allocation20_spill] sm:$0xff] }
  0xcb   : > { %v2453_v42 = vsel %vm10511_vm15, %v8906_v29, %v2452_v1  ;;  %v1799_v45 = vrot.slane %v1791_v39, %v10046_v17  ;;  %v2634_v41 = vcombine.low %v2626_v16, %v2633_v6  ;;  %v2454_v11 = vrot.slane %v2452_v1, 2  ;;  %v8954_v39 = vld.sshfl [vmem:[%s10027_s9 + $0x8] sm:$0x33 pattern:$0x76325410] }
  0xcc   : > { %v2446_v46 = vsel %vm10511_vm15, %v2444_v2, %v2445_v40  ;;  %v2449_v12 = vsel %vm10511_vm15, %v2447_v48, %v2448_v56  ;;  %v1806_v3 = vrot.slane %v1792_v55, %v10046_v17  ;;  %v2455_v8 = vrot.slane %v12816_v22, 7  ;;  %v12821_v48 = vld [vmem:[#allocation21_spill] sm:$0xff]  ;;  %v8955_v60 = vld.sshfl [vmem:[%s10027_s9 + $0xc] sm:$0x3 pattern:$0x76325410] }
  0xcd   : > { %v2635_v28 = vcombine.low %v2443_v4, %v2446_v46  ;;  %v2636_v35 = vcombine.low %v2449_v12, %v2453_v42  ;;  %9607 = vmatprep.mubr.msk.bf16.mxu0 %vm1451_vm8, %v2634_v41  ;;  %v2458_v34 = vrot.slane %v12817_v36, 7  ;;  %v8907_v21 = vrot.slane %v8889_v14, 9 }
  0xce   : > { %v2462_v26 = vrot.slane %v2288_v52, 7  ;;  %v2465_v10 = vrot.slane %v12818_v54, 7  ;;  %v1807_v19 = vcombine.low %v1799_v45, %v1806_v3  ;;  %v2456_v31 = vsel %vm10511_vm15, %v2454_v11, %v2455_v8  ;;  %v12822_v11 = vld [vmem:[#allocation22_spill] sm:$0xff] }
  0xcf   : > { %v2643_v16 = vrot.slane %v2635_v28, %v10046_v17  ;;  %v2650_v0 = vrot.slane %v2636_v35, %v10046_v17  ;;  %v2457_v37 = vrot.slane %v2455_v8, 2  ;;  %v1808_v14 = vcombine.low %v8817_v38, %v12819_v51  ;;  %v8956_v38 = vld.sshfl [vmem:[%s10027_s9 + $0x10] sm:$0x33 pattern:$0x76325410] }
  0xd0   : > { %v2463_v25 = vsel %vm10511_vm15, %v8907_v21, %v2462_v26  ;;  %v2464_v40 = vrot.slane %v2462_v26, 2  ;;  %9585 = vmatprep.mubr.msk.bf16.mxu1 %vm1451_vm8, %v1807_v19  ;;  %v1809_v29 = vcombine.low %v12820_v24, %v8819_v23  ;;  %v2304_v1 = vcombine.high %v8891_v13, %v8891_v13 }
  0xd1   : > { %v2651_v56 = vcombine.low %v2643_v16, %v2650_v0  ;;  %v2467_v30 = vrot.slane %v2465_v10, 2  ;;  %v2459_v6 = vsel %vm10511_vm15, %v2457_v37, %v2458_v34  ;;  %v1816_v2 = vrot.slane %v1808_v14, %v10046_v17 }
  0xd2   : > { %v2466_v4 = vsel %vm10511_vm15, %v2464_v40, %v2465_v10  ;;  %v2468_v42 = vrot.slane %v12821_v48, 7  ;;  %v2652_v63 = vcombine.low %v2456_v31, %v2459_v6  ;;  %v1823_v45 = vrot.slane %v1809_v29, %v10046_v17  ;;  %v9032_v10 = vld.sshfl [vmem:[%s10027_s9 + $0xc] sm:$0x13 pattern:$0x76325410] }
  0xd3   : > { %9608 = vmatmul.mubr.msk.bf16.gmra.mxu0 %vm1451_vm8, %v2651_v56  ;;  %v2653_v55 = vcombine.low %v2463_v25, %v2466_v4  ;;  %v8908_v52 = vrot.slane %v8891_v13, 9  ;;  %v2472_v46 = vrot.slane %v2304_v1, 7  ;;  %v2475_v12 = vrot.slane %v10455_v47, 7 }
  0xd4   : > { %v2469_v41 = vsel %vm10511_vm15, %v2467_v30, %v2468_v42  ;;  %v2478_v23 = vrot.slane %v12822_v11, 7  ;;  %v2660_v28 = vrot.slane %v2652_v63, %v10046_v17  ;;  %v1824_v3 = vcombine.low %v1816_v2, %v1823_v45  ;;  %v9034_v11 = vld.sshfl [vmem:[%s10027_s9 + $0x14] sm:$0x13 pattern:$0x76325410] }
  0xd5   : > { %v2667_v35 = vrot.slane %v2653_v55, %v10046_v17  ;;  %v2953_v22 = vcombine.high %v8954_v39, %v8954_v39  ;;  %v2473_v8 = vsel %vm10511_vm15, %v8908_v52, %v2472_v46  ;;  %v2474_v13 = vrot.slane %v2472_v46, 2 }
  0xd6   : > { %v2477_v36 = vrot.slane %v2475_v12, 2  ;;  %v2968_v34 = vcombine.high %v8956_v38, %v8956_v38  ;;  %9586 = vmatmul.mubr.msk.bf16.gmra.mxu1 %vm1451_vm8, %v1824_v3  ;;  %v2669_v26 = vcombine.low %v2469_v41, %v2473_v8  ;;  %v3189_v47 = vcombine.low %v8955_v60, %v8956_v38  ;;  %v8958_v60 = vld.sshfl [vmem:[%s10027_s9 + $0x18] sm:$0x33 pattern:$0x76325410] }
  0xd7   : > { %v2668_v21 = vcombine.low %v2660_v28, %v2667_v35  ;;  %v3188_v54 = vcombine.low %v8954_v39, %v2953_v22  ;;  %v2476_v16 = vsel %vm10511_vm15, %v2474_v13, %v2475_v12  ;;  %v3663_v31 = vcombine.high %v9032_v10, %v9032_v10 }
  0xd8   : > { %v2479_v0 = vsel %vm10511_vm15, %v2477_v36, %v2478_v23  ;;  %v3205_v19 = vcombine.low %v2968_v34, %v10541_v50  ;;  %v2677_v25 = vrot.slane %v2669_v26, %v10046_v17  ;;  %v3203_v51 = vrot.slane %v3189_v47, %v10046_v17 }
  0xd9   : > { %9611 = vmatprep.mubr.msk.bf16.mxu0 %vm1451_vm8, %v2668_v21  ;;  %v2670_v37 = vcombine.low %v2476_v16, %v2479_v0  ;;  %v3196_v40 = vrot.slane %v3188_v54, %v10046_v17  ;;  %v3905_v56 = vshrl.u32 %v8954_v39, 16  ;;  %v3908_v24 = vshll.u32 %v8954_v39, 16 }
  0xda   : > { %v10851_v14 = vrot.slane %v3205_v19, %v10046_v17  ;;  %v3914_v29 = vshll.u32 %v2953_v22, 16  ;;  %v3918_v30 = vshrl.u32 %v2953_v22, 16  ;;  %v3924_v6 = vshll.u32 %v9032_v10, 16 }
  0xdb   : > { %v2684_v1 = vrot.slane %v2670_v37, %v10046_v17  ;;  %v3204_v50 = vcombine.low %v3196_v40, %v3203_v51  ;;  %v3907_v4 = vrot.slane %v3905_v56, 6  ;;  %v3910_v2 = vrot.slane %v3908_v24, 7 }
  0xdc   : > { %v3916_v48 = vrot.slane %v3914_v29, 7  ;;  %v3928_v42 = vshrl.u32 %v9032_v10, 16  ;;  %v3920_v55 = vrot.slane %v3918_v30, 6  ;;  %v3926_v45 = vrot.slane %v3924_v6, 7 }
  0xdd   : > { %v2685_v63 = vcombine.low %v2677_v25, %v2684_v1  ;;  %9617 = vmatprep.mubr.msk.bf16.mxu1 %vm1451_vm8, %v3204_v50  ;;  %v3934_v52 = vshll.u32 %v3663_v31, 16  ;;  %v3911_v41 = vor.u32 %v3910_v2, %v3907_v4  ;;  %v3939_v46 = vshrl.u32 %v8956_v38, 16  ;;  %v9036_v4 = vld.sshfl [vmem:[%s10027_s9 + $0x1c] sm:$0x13 pattern:$0x76325410] }
  0xde   : > { %v3930_v39 = vrot.slane %v3928_v42, 6  ;;  %v3942_v12 = vshll.u32 %v8956_v38, 16  ;;  %v3921_v23 = vor.u32 %v3920_v55, %v3916_v48  ;;  %v3948_v35 = vshll.u32 %v2968_v34, 16 }
  0xdf   : > { %9612 = vmatmul.mubr.msk.bf16.gmra.mxu0 %vm1451_vm8, %v2685_v63  ;;  %v3936_v28 = vrot.slane %v3934_v52, 7  ;;  %v3952_v3 = vshrl.u32 %v2968_v34, 16  ;;  %v3912_v22 = vrot.slane %v3911_v41, 2  ;;  %v3941_v13 = vrot.slane %v3939_v46, 6 }
  0xe0   : > { %v3931_v8 = vor.u32 %v3930_v39, %v3926_v45  ;;  %v3944_v36 = vrot.slane %v3942_v12, 7  ;;  %v3922_v21 = vrot.slane %v3921_v23, 2  ;;  %v3950_v26 = vrot.slane %v3948_v35, 7 }
  0xe1   : > { %v3954_v54 = vrot.slane %v3952_v3, 6  ;;  %v2983_v47 = vcombine.high %v8958_v60, %v8958_v60  ;;  %v3917_v10 = vsel %vm10065_vm7, %v3912_v22, %v3916_v48  ;;  %v3679_v0 = vcombine.high %v9034_v11, %v9034_v11  ;;  %v8960_v52 = vld.sshfl [vmem:[%s10027_s9 + $0x20] sm:$0x33 pattern:$0x76325410] }
  0xe2   : > { %v3932_v16 = vrot.slane %v3931_v8, 2  ;;  %v3945_v38 = vor.u32 %v3944_v36, %v3941_v13  ;;  %v3927_v19 = vsel %vm10065_vm7, %v3922_v21, %v3926_v45  ;;  %v3958_v37 = vshll.u32 %v9034_v11, 16 }
  0xe3   : > { %v3955_v31 = vor.u32 %v3954_v54, %v3950_v26  ;;  %v3206_v34 = vcombine.low %v8958_v60, %v2983_v47  ;;  %v4450_v51 = vcombine.low %v3917_v10, %v3927_v19  ;;  %v3962_v56 = vshrl.u32 %v9034_v11, 16  ;;  %v9310_v11 = vld [vmem:[%s12704_s1 + $0xe] sm:$0x3] }
  0xe4   : > { %v3937_v25 = vsel %vm10065_vm7, %v3932_v16, %v3936_v28  ;;  %v3946_v40 = vrot.slane %v3945_v38, 2  ;;  %v3960_v1 = vrot.slane %v3958_v37, 7  ;;  %v3968_v50 = vshll.u32 %v3679_v0, 16 }
  0xe5   : > { %v3956_v24 = vrot.slane %v3955_v31, 2  ;;  %v3220_v29 = vrot.slane %v3206_v34, %v10046_v17  ;;  %v4458_v6 = vrot.slane %v4450_v51, %v10046_v17  ;;  %v3964_v2 = vrot.slane %v3962_v56, 6  ;;  %v9038_v10 = vld.sshfl [vmem:[%s10027_s9 + $0x24] sm:$0x13 pattern:$0x76325410] }
  0xe6   : > { %v3951_v30 = vsel %vm10065_vm7, %v3946_v40, %v3950_v26  ;;  %v3973_v48 = vshrl.u32 %v8958_v60, 16  ;;  %v3970_v45 = vrot.slane %v3968_v50, 7  ;;  %v3976_v46 = vshll.u32 %v8958_v60, 16 }
  0xe7   : > { %v4451_v42 = vcombine.low %v3937_v25, %v3951_v30  ;;  %v3221_v63 = vcombine.low %v10851_v14, %v3220_v29  ;;  %v3961_v55 = vsel %vm10065_vm7, %v3956_v24, %v3960_v1  ;;  %v3965_v41 = vor.u32 %v3964_v2, %v3960_v1 }
  0xe8   : > { %v3975_v39 = vrot.slane %v3973_v48, 6  ;;  %v3982_v12 = vshll.u32 %v2983_v47, 16  ;;  %v3986_v28 = vshrl.u32 %v2983_v47, 16  ;;  %v3992_v14 = vshll.u32 %v9036_v4, 16 }
  0xe9   : > { %v4465_v23 = vrot.slane %v4451_v42, %v10046_v17  ;;  %9618 = vmatmul.mubr.msk.bf16.vlgmr.msra.gmra.mxu1 %vm1451_vm8, %v3221_v63  ;;  %v5569_v35 = vsel %vm1488_vm0, %v10592_v9, 0  ;;  %v3966_v3 = vrot.slane %v3965_v41, 2  ;;  %v3978_v22 = vrot.slane %v3976_v46, 7 }
  0xea   : > { %v3984_v8 = vrot.slane %v3982_v12, 7  ;;  %9668 = vmatpush3.bf16.msra.mxu1 %v5569_v35  ;;  %v10882_v60 = vsel %vm1488_vm0, %v10612_v27, 0  ;;  %v3988_v36 = vrot.slane %v3986_v28, 6  ;;  %v3994_v21 = vrot.slane %v3992_v14, 7 }
  0xeb   : > { %v4466_v13 = vcombine.low %v4458_v6, %v4465_v23  ;;  %v2998_v26 = vcombine.high %v8960_v52, %v8960_v52  ;;  %9781 = vmatprep.subr.msk.bf16.mxu1 %vm1488_vm0, %v9310_v11  ;;  %v3971_v54 = vsel %vm10065_vm7, %v3966_v3, %v3970_v45  ;;  %v3979_v47 = vor.u32 %v3978_v22, %v3975_v39  ;;  %v8964_v28 = vld.sshfl [vmem:[%s10027_s9 + $0x30] sm:$0x33 pattern:$0x76325410] }
  0xec   : > { %v3222_v9 = vcombine.low %v10547_v62, %v8960_v52  ;;  %v3695_v16 = vcombine.high %v9036_v4, %v9036_v4  ;;  %v3989_v38 = vor.u32 %v3988_v36, %v3984_v8  ;;  %v4467_v0 = vcombine.low %v3961_v55, %v3971_v54  ;;  %v8962_v55 = vld.sshfl [vmem:[%s10027_s9 + $0x28] sm:$0x33 pattern:$0x76325410] }
  0xed   : > { %9643 = vmatprep.mubr.msk.bf16.mxu0 %vm1451_vm8, %v4466_v13  ;;  %v3223_v27 = vcombine.low %v2998_v26, %v10574_v59  ;;  %v3711_v19 = vcombine.high %v9038_v10, %v9038_v10  ;;  %v3980_v31 = vrot.slane %v3979_v47, 2  ;;  %v3996_v37 = vshrl.u32 %v9036_v4, 16 }
  0xee   : > { %v3230_v34 = vrot.slane %v3222_v9, %v10046_v17  ;;  %v4002_v25 = vshll.u32 %v3695_v16, 16  ;;  %v3990_v40 = vrot.slane %v3989_v38, 2  ;;  %v4475_v51 = vrot.slane %v4467_v0, %v10046_v17  ;;  %v10909_v16 = vld [vmem:[%s12704_s1 + $0x10] sm:$0x3] }
  0xef   : > { %v3237_v62 = vrot.slane %v3223_v27, %v10046_v17  ;;  %v4007_v56 = vshrl.u32 %v8960_v52, 16  ;;  %v3985_v24 = vsel %vm10065_vm7, %v3980_v31, %v3984_v8  ;;  %v3998_v29 = vrot.slane %v3996_v37, 6 }
  0xf0   : > { %v4004_v1 = vrot.slane %v4002_v25, 7  ;;  %v4010_v50 = vshll.u32 %v8960_v52, 16  ;;  %v3995_v59 = vsel %vm10065_vm7, %v3990_v40, %v3994_v21  ;;  %v4016_v4 = vshll.u32 %v2998_v26, 16 }
  0xf1   : > { %v3238_v30 = vcombine.low %v3230_v34, %v3237_v62  ;;  %v4009_v6 = vrot.slane %v4007_v56, 6  ;;  %v4468_v2 = vcombine.low %v3985_v24, %v3995_v59  ;;  %v3999_v48 = vor.u32 %v3998_v29, %v3994_v21 }
  0xf2   : > { %v4012_v42 = vrot.slane %v4010_v50, 7  ;;  %v4020_v63 = vshrl.u32 %v2998_v26, 16  ;;  %v4018_v45 = vrot.slane %v4016_v4, 7  ;;  %v4026_v41 = vshll.u32 %v9038_v10, 16 }
  0xf3   : > { %9621 = vmatprep.mubr.msk.bf16.mxu1 %vm1451_vm8, %v3238_v30  ;;  %v4030_v39 = vshrl.u32 %v9038_v10, 16  ;;  %v4036_v46 = vshll.u32 %v3711_v19, 16  ;;  %v4482_v52 = vrot.slane %v4468_v2, %v10046_v17  ;;  %v4000_v12 = vrot.slane %v3999_v48, 2 }
  0xf4   : > { %v4013_v11 = vor.u32 %v4012_v42, %v4009_v6  ;;  %v4022_v23 = vrot.slane %v4020_v63, 6  ;;  %v4028_v14 = vrot.slane %v4026_v41, 7  ;;  %v3013_v22 = vcombine.high %v8962_v55, %v8962_v55  ;;  %v9040_v26 = vld.sshfl [vmem:[%s10027_s9 + $0x2c] sm:$0x13 pattern:$0x76325410] }
  0xf5   : > { %v4032_v35 = vrot.slane %v4030_v39, 6  ;;  %v4038_v3 = vrot.slane %v4036_v46, 7  ;;  %v4483_v8 = vcombine.low %v4475_v51, %v4482_v52  ;;  %v4005_v13 = vsel %vm10065_vm7, %v4000_v12, %v4004_v1  ;;  %v8966_v41 = vld.sshfl [vmem:[%s10027_s9 + $0x38] sm:$0x33 pattern:$0x76325410] }
  0xf6   : > { %v4014_v36 = vrot.slane %v4013_v11, 2  ;;  %v4023_v21 = vor.u32 %v4022_v23, %v4018_v45  ;;  %v3239_v47 = vcombine.low %v8962_v55, %v3013_v22  ;;  %v3240_v9 = vcombine.low %v10598_v18, %v8964_v28 }
  0xf7   : > { %v4033_v54 = vor.u32 %v4032_v35, %v4028_v14  ;;  %v3727_v10 = vcombine.high %v9040_v26, %v9040_v26  ;;  %9644 = vmatmul.mubr.msk.bf16.vlgmr.msra.gmra.mxu0 %vm1451_vm8, %v4483_v8  ;;  %v10914_v27 = vcombine.high %v8964_v28, %v8964_v28  ;;  %v4041_v19 = vshrl.u32 %v8962_v55, 16 }
  0xf8   : > { %v4019_v38 = vsel %vm10065_vm7, %v4014_v36, %v4018_v45  ;;  %v4024_v0 = vrot.slane %v4023_v21, 2  ;;  %9694 = vmatpush3.bf16.msra.mxu0 %v10882_v60  ;;  %v3247_v18 = vrot.slane %v3239_v47, %v10046_v17  ;;  %v3254_v37 = vrot.slane %v3240_v9, %v10046_v17  ;;  %v9042_v36 = vld.sshfl [vmem:[%s10027_s9 + $0x34] sm:$0x13 pattern:$0x76325410] }
  0xf9   : > { %v4034_v31 = vrot.slane %v4033_v54, 2  ;;  %v4484_v34 = vcombine.low %v4005_v13, %v4019_v38  ;;  %v4043_v40 = vrot.slane %v4041_v19, 6  ;;  %v4044_v51 = vshll.u32 %v8962_v55, 16  ;;  %9782 = vmatprep.subr.msk.bf16.mxu0 %vm1488_vm0, %v10909_v16 }
  0xfa   : > { %v4029_v25 = vsel %vm10065_vm7, %v4024_v0, %v4028_v14  ;;  %v4050_v62 = vshll.u32 %v3013_v22, 16  ;;  %v3255_v24 = vcombine.low %v3247_v18, %v3254_v37  ;;  %v4054_v29 = vshrl.u32 %v3013_v22, 16 }
  0xfb   : > { %v4039_v56 = vsel %vm10065_vm7, %v4034_v31, %v4038_v3  ;;  %v4492_v60 = vrot.slane %v4484_v34, %v10046_v17  ;;  %v4046_v50 = vrot.slane %v4044_v51, 7  ;;  %v4060_v30 = vshll.u32 %v9040_v26, 16 }
  0xfc   : > { %v4485_v1 = vcombine.low %v4029_v25, %v4039_v56  ;;  %v4052_v59 = vrot.slane %v4050_v62, 7  ;;  %9622 = vmatmul.mubr.msk.bf16.gmra.mxu1 %vm1451_vm8, %v3255_v24  ;;  %v4056_v6 = vrot.slane %v4054_v29, 6  ;;  %v4064_v4 = vshrl.u32 %v9040_v26, 16 }
  0xfd   : > { %v4070_v2 = vshll.u32 %v3727_v10, 16  ;;  %v4075_v48 = vshrl.u32 %v8964_v28, 16  ;;  %v4047_v63 = vor.u32 %v4046_v50, %v4043_v40  ;;  %v4062_v55 = vrot.slane %v4060_v30, 7 }
  0xfe   : > { %v4499_v42 = vrot.slane %v4485_v1, %v10046_v17  ;;  %v4078_v45 = vshll.u32 %v8964_v28, 16  ;;  %v4057_v39 = vor.u32 %v4056_v6, %v4052_v59  ;;  %v4066_v46 = vrot.slane %v4064_v4, 6  ;;  %v9044_v62 = vld.sshfl [vmem:[%s10027_s9 + $0x3c] sm:$0x13 pattern:$0x76325410] }
  0xff   : > { %v4072_v52 = vrot.slane %v4070_v2, 7  ;;  %v4077_v12 = vrot.slane %v4075_v48, 6  ;;  %v4048_v23 = vrot.slane %v4047_v63, 2  ;;  %v4084_v35 = vshll.u32 %v10914_v27, 16 }
 0x100   : > { %v4500_v11 = vcombine.low %v4492_v60, %v4499_v42  ;;  %v4080_v14 = vrot.slane %v4078_v45, 7  ;;  %v4058_v3 = vrot.slane %v4057_v39, 2  ;;  %v4067_v22 = vor.u32 %v4066_v46, %v4062_v55  ;;  %v8968_v63 = vld.sshfl [vmem:[%s10027_s9 + $0x40] sm:$0x33 pattern:$0x76325410] }
 0x101   : > { %v3043_v8 = vcombine.high %v8966_v41, %v8966_v41  ;;  %v3256_v13 = vcombine.low %v10914_v27, %v10632_v58  ;;  %v4053_v28 = vsel %vm10065_vm7, %v4048_v23, %v4052_v59  ;;  %v4086_v26 = vrot.slane %v4084_v35, 7 }
 0x102   : > { %9647 = vmatprep.mubr.msk.bf16.mxu0 %vm1451_vm8, %v4500_v11  ;;  %v4081_v21 = vor.u32 %v4080_v14, %v4077_v12  ;;  %v3743_v54 = vcombine.high %v9042_v36, %v9042_v36  ;;  %v4063_v47 = vsel %vm10065_vm7, %v4058_v3, %v4062_v55  ;;  %v4068_v9 = vrot.slane %v4067_v22, 2 }
 0x103   : > { %v3257_v10 = vcombine.low %v8966_v41, %v3043_v8  ;;  %v3264_v38 = vrot.slane %v3256_v13, %v10046_v17  ;;  %v4501_v19 = vcombine.low %v4053_v28, %v4063_v47  ;;  %v4088_v58 = vshrl.u32 %v10914_v27, 16 }
 0x104   : > { %v4082_v0 = vrot.slane %v4081_v21, 2  ;;  %v4094_v31 = vshll.u32 %v9042_v36, 16  ;;  %v4073_v34 = vsel %vm10065_vm7, %v4068_v9, %v4072_v52  ;;  %v4098_v37 = vshrl.u32 %v9042_v36, 16 }
 0x105   : > { %v3271_v18 = vrot.slane %v3257_v10, %v10046_v17  ;;  %v4104_v25 = vshll.u32 %v3743_v54, 16  ;;  %v4509_v51 = vrot.slane %v4501_v19, %v10046_v17  ;;  %v4090_v56 = vrot.slane %v4088_v58, 6 }
 0x106   : > { %v4087_v40 = vsel %vm10065_vm7, %v4082_v0, %v4086_v26  ;;  %v4096_v60 = vrot.slane %v4094_v31, 7  ;;  %v4100_v27 = vrot.slane %v4098_v37, 6  ;;  %v4109_v59 = vshrl.u32 %v8966_v41, 16 }
 0x107   : > { %v4502_v24 = vcombine.low %v4073_v34, %v4087_v40  ;;  %v3272_v29 = vcombine.low %v3264_v38, %v3271_v18  ;;  %v4106_v1 = vrot.slane %v4104_v25, 7  ;;  %v4091_v50 = vor.u32 %v4090_v56, %v4086_v26 }
 0x108   : > { %v4112_v30 = vshll.u32 %v8966_v41, 16  ;;  %v4118_v6 = vshll.u32 %v3043_v8, 16  ;;  %v4101_v2 = vor.u32 %v4100_v27, %v4096_v60  ;;  %v4122_v48 = vshrl.u32 %v3043_v8, 16 }
 0x109   : > { %v4516_v4 = vrot.slane %v4502_v24, %v10046_v17  ;;  %9625 = vmatprep.mubr.msk.bf16.mxu1 %vm1451_vm8, %v3272_v29  ;;  %v4128_v42 = vshll.u32 %v9044_v62, 16  ;;  %v4092_v55 = vrot.slane %v4091_v50, 2  ;;  %v4111_v45 = vrot.slane %v4109_v59, 6 }
 0x10a   : > { %v4114_v39 = vrot.slane %v4112_v30, 7  ;;  %v4120_v46 = vrot.slane %v4118_v6, 7  ;;  %v4102_v12 = vrot.slane %v4101_v2, 2  ;;  %v4124_v11 = vrot.slane %v4122_v48, 6 }
 0x10b   : > { %v4517_v52 = vcombine.low %v4509_v51, %v4516_v4  ;;  %v4130_v23 = vrot.slane %v4128_v42, 7  ;;  %v4097_v41 = vsel %vm10065_vm7, %v4092_v55, %v4096_v60  ;;  %v3058_v35 = vcombine.high %v8968_v63, %v8968_v63  ;;  %v8972_v30 = vld.sshfl [vmem:[%s10027_s9 + $0x50] sm:$0x33 pattern:$0x76325410] }
 0x10c   : > { %v4115_v14 = vor.u32 %v4114_v39, %v4111_v45  ;;  %v3273_v3 = vcombine.low %v10639_v43, %v8968_v63  ;;  %v4107_v22 = vsel %vm10065_vm7, %v4102_v12, %v4106_v1  ;;  %v4125_v8 = vor.u32 %v4124_v11, %v4120_v46 }
 0x10d   : > { %9648 = vmatmul.mubr.msk.bf16.gmra.mxu0 %vm1451_vm8, %v4517_v52  ;;  %v3759_v13 = vcombine.high %v9044_v62, %v9044_v62  ;;  %v4132_v36 = vshrl.u32 %v9044_v62, 16  ;;  %v4518_v21 = vcombine.low %v4097_v41, %v4107_v22  ;;  %v3274_v26 = vcombine.low %v3058_v35, %v10666_v57  ;;  %v10965_v62 = vld.sshfl [vmem:[%s10027_s9 + $0x48] sm:$0x33 pattern:$0x76325410] }
 0x10e   : > { %v4116_v28 = vrot.slane %v4115_v14, 2  ;;  %v3281_v54 = vrot.slane %v3273_v3, %v10046_v17  ;;  %v4126_v47 = vrot.slane %v4125_v8, 2  ;;  %v4143_v38 = vshrl.u32 %v8968_v63, 16 }
 0x10f   : > { %v4134_v9 = vrot.slane %v4132_v36, 6  ;;  %v4138_v10 = vshll.u32 %v3759_v13, 16  ;;  %v4526_v0 = vrot.slane %v4518_v21, %v10046_v17  ;;  %v3288_v19 = vrot.slane %v3274_v26, %v10046_v17 }
 0x110   : > { %v4121_v43 = vsel %vm10065_vm7, %v4116_v28, %v4120_v46  ;;  %v4146_v58 = vshll.u32 %v8968_v63, 16  ;;  %v4131_v31 = vsel %vm10065_vm7, %v4126_v47, %v4130_v23  ;;  %v4145_v18 = vrot.slane %v4143_v38, 6  ;;  %v10997_v38 = vld.sshfl [vmem:[%s10027_s9 + $0x58] sm:$0x33 pattern:$0x76325410] }
 0x111   : > { %v4135_v34 = vor.u32 %v4134_v9, %v4130_v23  ;;  %v4140_v57 = vrot.slane %v4138_v10, 7  ;;  %v4519_v37 = vcombine.low %v4121_v43, %v4131_v31  ;;  %v3289_v25 = vcombine.low %v3281_v54, %v3288_v19 }
 0x112   : > { %v4148_v40 = vrot.slane %v4146_v58, 7  ;;  %v4152_v51 = vshll.u32 %v3058_v35, 16  ;;  %v4156_v60 = vshrl.u32 %v3058_v35, 16  ;;  %v4162_v24 = vshll.u32 %v10680_v32, 16 }
 0x113   : > { %v4136_v56 = vrot.slane %v4135_v34, 2  ;;  %v4166_v29 = vshrl.u32 %v10680_v32, 16  ;;  %v4533_v27 = vrot.slane %v4519_v37, %v10046_v17  ;;  %9626 = vmatmul.mubr.msk.bf16.gmra.mxu1 %vm1451_vm8, %v3289_v25  ;;  %v4172_v59 = vshll.u32 %v10696_v15, 16 }
 0x114   : > { %v4149_v1 = vor.u32 %v4148_v40, %v4145_v18  ;;  %v4154_v50 = vrot.slane %v4152_v51, 7  ;;  %v4158_v4 = vrot.slane %v4156_v60, 6  ;;  %v4164_v2 = vrot.slane %v4162_v24, 7 }
 0x115   : > { %v4141_v6 = vsel %vm10065_vm7, %v4136_v56, %v4140_v57  ;;  %v4168_v48 = vrot.slane %v4166_v29, 6  ;;  %v4534_v42 = vcombine.low %v4526_v0, %v4533_v27  ;;  %v4174_v55 = vrot.slane %v4172_v59, 7 }
 0x116   : > { %v4150_v63 = vrot.slane %v4149_v1, 2  ;;  %v10977_v32 = vcombine.high %v10965_v62, %v10965_v62  ;;  %v4159_v45 = vor.u32 %v4158_v4, %v4154_v50  ;;  %v3291_v46 = vcombine.low %v10699_v5, %v8972_v30 }
 0x117   : > { %v4169_v39 = vor.u32 %v4168_v48, %v4164_v2  ;;  %v3799_v52 = vcombine.high %v8972_v30, %v8972_v30  ;;  %9651 = vmatprep.mubr.msk.bf16.mxu0 %vm1451_vm8, %v4534_v42  ;;  %v4177_v11 = vshrl.u32 %v10965_v62, 16  ;;  %v4180_v23 = vshll.u32 %v10965_v62, 16 }
 0x118   : > { %v4155_v15 = vsel %vm10065_vm7, %v4150_v63, %v4154_v50  ;;  %v3290_v12 = vcombine.low %v10965_v62, %v10977_v32  ;;  %v4160_v41 = vrot.slane %v4159_v45, 2  ;;  %v3305_v3 = vrot.slane %v3291_v46, %v10046_v17  ;;  %v11009_v50 = vld.sshfl [vmem:[%s10027_s9 + $0x54] sm:$0x13 pattern:$0x76325410] }
 0x119   : > { %v4170_v14 = vrot.slane %v4169_v39, 2  ;;  %v4535_v35 = vcombine.low %v4141_v6, %v4155_v15  ;;  %v4179_v22 = vrot.slane %v4177_v11, 6  ;;  %v4182_v8 = vrot.slane %v4180_v23, 7 }
 0x11a   : > { %v3298_v5 = vrot.slane %v3290_v12, %v10046_v17  ;;  %v4186_v13 = vshll.u32 %v10977_v32, 16  ;;  %v4165_v36 = vsel %vm10065_vm7, %v4160_v41, %v4164_v2  ;;  %v4190_v26 = vshrl.u32 %v10977_v32, 16 }
 0x11b   : > { %v4175_v28 = vsel %vm10065_vm7, %v4170_v14, %v4174_v55  ;;  %v4543_v21 = vrot.slane %v4535_v35, %v10046_v17  ;;  %v4183_v9 = vor.u32 %v4182_v8, %v4179_v22  ;;  %v4196_v0 = vshll.u32 %v10704_v7, 16  ;;  %v11031_v8 = vld.sshfl [vmem:[%s10027_s9 + $0x5c] sm:$0x3 pattern:$0x76325410] }
 0x11c   : > { %v4536_v54 = vcombine.low %v4165_v36, %v4175_v28  ;;  %v3306_v47 = vcombine.low %v3298_v5, %v3305_v3  ;;  %v4188_v10 = vrot.slane %v4186_v13, 7  ;;  %v4192_v43 = vrot.slane %v4190_v26, 6  ;;  %v11034_v13 = vld.sshfl [vmem:[%s10027_s9 + $0x60] sm:$0x33 pattern:$0x76325410] }
 0x11d   : > { %v4200_v19 = vshrl.u32 %v10704_v7, 16  ;;  %v4206_v58 = vshll.u32 %v10723_v44, 16  ;;  %v4184_v34 = vrot.slane %v4183_v9, 2  ;;  %v4211_v57 = vshrl.u32 %v8972_v30, 16 }
 0x11e   : > { %v4550_v31 = vrot.slane %v4536_v54, %v10046_v17  ;;  %9629 = vmatprep.mubr.msk.bf16.mxu1 %vm1451_vm8, %v3306_v47  ;;  %v4214_v18 = vshll.u32 %v8972_v30, 16  ;;  %v4193_v37 = vor.u32 %v4192_v43, %v4188_v10  ;;  %v4198_v25 = vrot.slane %v4196_v0, 7  ;;  %v11041_v43 = vld.sshfl [vmem:[%s10027_s9 + $0x64] sm:$0x3 pattern:$0x76325410] }
 0x11f   : > { %v4202_v40 = vrot.slane %v4200_v19, 6  ;;  %v4208_v51 = vrot.slane %v4206_v58, 7  ;;  %v4189_v60 = vsel %vm10065_vm7, %v4184_v34, %v4188_v10  ;;  %v4213_v24 = vrot.slane %v4211_v57, 6 }
 0x120   : > { %v4551_v56 = vcombine.low %v4543_v21, %v4550_v31  ;;  %v4216_v7 = vrot.slane %v4214_v18, 7  ;;  %v4194_v29 = vrot.slane %v4193_v37, 2  ;;  %v4220_v27 = vshll.u32 %v3799_v52, 16 }
 0x121   : > { %v4203_v44 = vor.u32 %v4202_v40, %v4198_v25  ;;  %v3103_v1 = vcombine.high %v10997_v38, %v10997_v38  ;;  %v3307_v30 = vcombine.low %v3799_v52, %v10731_v61  ;;  %v11015_v6 = vcombine.high %v11009_v50, %v11009_v50 }
 0x122   : > { %9652 = vmatmul.mubr.msk.bf16.gmra.mxu0 %vm1451_vm8, %v4551_v56  ;;  %v4217_v59 = vor.u32 %v4216_v7, %v4213_v24  ;;  %v4224_v4 = vshrl.u32 %v3799_v52, 16  ;;  %v4199_v2 = vsel %vm10065_vm7, %v4194_v29, %v4198_v25  ;;  %v4222_v42 = vrot.slane %v4220_v27, 7 }
 0x123   : > { %v4204_v48 = vrot.slane %v4203_v44, 2  ;;  %v3308_v63 = vcombine.low %v10997_v38, %v3103_v1  ;;  %v4552_v45 = vcombine.low %v4189_v60, %v4199_v2  ;;  %v3315_v39 = vrot.slane %v3307_v30, %v10046_v17  ;;  %v11053_v60 = vld.sshfl [vmem:[%s10027_s9 + $0x64] sm:$0x13 pattern:$0x76325410] }
 0x124   : > { %v4218_v55 = vrot.slane %v4217_v59, 2  ;;  %v4226_v46 = vrot.slane %v4224_v4, 6  ;;  %v4230_v52 = vshll.u32 %v11009_v50, 16  ;;  %v4234_v12 = vshrl.u32 %v11009_v50, 16 }
 0x125   : > { %v4209_v61 = vsel %vm10065_vm7, %v4204_v48, %v4208_v51  ;;  %v3322_v15 = vrot.slane %v3308_v63, %v10046_v17  ;;  %v4560_v23 = vrot.slane %v4552_v45, %v10046_v17  ;;  %v4240_v14 = vshll.u32 %v11015_v6, 16  ;;  %v9848_v30 = vld.sshfl [vmem:[%s10027_s9 + $0x5c] sm:$0x13 pattern:$0x76325410] }
 0x126   : > { %v4223_v11 = vsel %vm10065_vm7, %v4218_v55, %v4222_v42  ;;  %v4227_v41 = vor.u32 %v4226_v46, %v4222_v42  ;;  %v4232_v5 = vrot.slane %v4230_v52, 7  ;;  %v4236_v22 = vrot.slane %v4234_v12, 6 }
 0x127   : > { %v4553_v35 = vcombine.low %v4209_v61, %v4223_v11  ;;  %v3323_v3 = vcombine.low %v3315_v39, %v3322_v15  ;;  %v4242_v28 = vrot.slane %v4240_v14, 7  ;;  %v4245_v21 = vshrl.u32 %v10997_v38, 16 }
 0x128   : > { %v4228_v36 = vrot.slane %v4227_v41, 2  ;;  %v4248_v26 = vshll.u32 %v10997_v38, 16  ;;  %v4237_v47 = vor.u32 %v4236_v22, %v4232_v5  ;;  %v4254_v9 = vshll.u32 %v3103_v1, 16 }
 0x129   : > { %v4567_v54 = vrot.slane %v4553_v35, %v10046_v17  ;;  %9630 = vmatmul.mubr.msk.bf16.gmra.mxu1 %vm1451_vm8, %v3323_v3  ;;  %v4258_v10 = vshrl.u32 %v3103_v1, 16  ;;  %v4247_v19 = vrot.slane %v4245_v21, 6  ;;  %v4264_v31 = vshll.u32 %v10748_v20, 16 }
 0x12a   : > { %v4233_v0 = vsel %vm10065_vm7, %v4228_v36, %v4232_v5  ;;  %v4250_v58 = vrot.slane %v4248_v26, 7  ;;  %v4238_v57 = vrot.slane %v4237_v47, 2  ;;  %v4256_v18 = vrot.slane %v4254_v9, 7 }
 0x12b   : > { %v4568_v34 = vcombine.low %v4560_v23, %v4567_v54  ;;  %v4260_v37 = vrot.slane %v4258_v10, 6  ;;  %v4266_v40 = vrot.slane %v4264_v31, 7  ;;  %v11048_v51 = vcombine.high %v11034_v13, %v11034_v13  ;;  %v11077_v23 = vld.sshfl [vmem:[%s10027_s9 + $0x68] sm:$0x33 pattern:$0x76325410] }
 0x12c   : > { %v4251_v25 = vor.u32 %v4250_v58, %v4247_v19  ;;  %v3324_v56 = vcombine.low %v11031_v8, %v11034_v13  ;;  %v4243_v20 = vsel %vm10065_vm7, %v4238_v57, %v4242_v28  ;;  %v11060_v7 = vcombine.high %v11053_v60, %v11053_v60  ;;  %v11086_v21 = vld.sshfl [vmem:[%s10027_s9 + $0x6c] sm:$0x3 pattern:$0x76325410] }
 0x12d   : > { %9655 = vmatprep.mubr.msk.bf16.mxu0 %vm1451_vm8, %v4568_v34  ;;  %v4261_v24 = vor.u32 %v4260_v37, %v4256_v18  ;;  %v4569_v44 = vcombine.low %v4233_v0, %v4243_v20  ;;  %v3325_v27 = vcombine.low %v11048_v51, %v11041_v43  ;;  %v4268_v4 = vshrl.u32 %v9848_v30, 16  ;;  %v11089_v58 = vld.sshfl [vmem:[%s10027_s9 + $0x70] sm:$0x33 pattern:$0x76325410] }
 0x12e   : > { %v4252_v29 = vrot.slane %v4251_v25, 2  ;;  %v3332_v1 = vrot.slane %v3324_v56, %v10046_v17  ;;  %v4274_v2 = vshll.u32 %v10761_v53, 16  ;;  %v4279_v48 = vshrl.u32 %v11034_v13, 16 }
 0x12f   : > { %v4262_v59 = vrot.slane %v4261_v24, 2  ;;  %v4577_v63 = vrot.slane %v4569_v44, %v10046_v17  ;;  %v3339_v55 = vrot.slane %v3325_v27, %v10046_v17  ;;  %v4282_v45 = vshll.u32 %v11034_v13, 16  ;;  %v11100_v25 = vld.sshfl [vmem:[%s10027_s9 + $0x6c] sm:$0x13 pattern:$0x76325410] }
 0x130   : > { %v4257_v42 = vsel %vm10065_vm7, %v4252_v29, %v4256_v18  ;;  %v4270_v46 = vrot.slane %v4268_v4, 6  ;;  %v4276_v61 = vrot.slane %v4274_v2, 7  ;;  %v4281_v15 = vrot.slane %v4279_v48, 6 }
 0x131   : > { %v4267_v39 = vsel %vm10065_vm7, %v4262_v59, %v4266_v40  ;;  %v3340_v53 = vcombine.low %v3332_v1, %v3339_v55  ;;  %v4284_v12 = vrot.slane %v4282_v45, 7  ;;  %v4288_v11 = vshll.u32 %v11048_v51, 16 }
 0x132   : > { %v4570_v52 = vcombine.low %v4257_v42, %v4267_v39  ;;  %v4271_v41 = vor.u32 %v4270_v46, %v4266_v40  ;;  %v4292_v14 = vshrl.u32 %v11048_v51, 16  ;;  %v4298_v35 = vshll.u32 %v11053_v60, 16 }
 0x133   : > { %v4302_v3 = vshrl.u32 %v11053_v60, 16  ;;  %9633 = vmatprep.mubr.msk.bf16.mxu1 %vm1451_vm8, %v3340_v53  ;;  %v4285_v22 = vor.u32 %v4284_v12, %v4281_v15  ;;  %v4290_v36 = vrot.slane %v4288_v11, 7  ;;  %v4308_v28 = vshll.u32 %v11060_v7, 16 }
 0x134   : > { %v4584_v5 = vrot.slane %v4570_v52, %v10046_v17  ;;  %v4272_v26 = vrot.slane %v4271_v41, 2  ;;  %v4294_v54 = vrot.slane %v4292_v14, 6  ;;  %v4300_v47 = vrot.slane %v4298_v35, 7 }
 0x135   : > { %v4304_v9 = vrot.slane %v4302_v3, 6  ;;  %v4286_v0 = vrot.slane %v4285_v22, 2  ;;  %v4310_v19 = vrot.slane %v4308_v28, 7  ;;  %v11093_v31 = vcombine.high %v11077_v23, %v11077_v23 }
 0x136   : > { %v4585_v10 = vcombine.low %v4577_v63, %v4584_v5  ;;  %v4277_v34 = vsel %vm10065_vm7, %v4272_v26, %v4276_v61  ;;  %v4295_v57 = vor.u32 %v4294_v54, %v4290_v36  ;;  %v3342_v37 = vcombine.low %v11086_v21, %v11089_v58  ;;  %v11129_v11 = vld.sshfl [vmem:[%s10027_s9 + $0x78] sm:$0x33 pattern:$0x76325410] }
 0x137   : > { %v4305_v18 = vor.u32 %v4304_v9, %v4300_v47  ;;  %v4291_v40 = vsel %vm10065_vm7, %v4286_v0, %v4290_v36  ;;  %v3341_v56 = vcombine.low %v11077_v23, %v11093_v31  ;;  %v11109_v20 = vcombine.high %v11100_v25, %v11100_v25  ;;  %v11136_v5 = vld.sshfl [vmem:[%s10027_s9 + $0x74] sm:$0x3 pattern:$0x76325410] }
 0x138   : > { %9656 = vmatmul.mubr.msk.bf16.gmra.mxu0 %vm1451_vm8, %v4585_v10  ;;  %v11113_v24 = vcombine.high %v11089_v58, %v11089_v58  ;;  %v4296_v29 = vrot.slane %v4295_v57, 2  ;;  %v4586_v27 = vcombine.low %v4277_v34, %v4291_v40  ;;  %v3356_v1 = vrot.slane %v3342_v37, %v10046_v17  ;;  %v11140_v54 = vld.sshfl [vmem:[%s10027_s9 + $0x74] sm:$0x13 pattern:$0x76325410] }
 0x139   : > { %v4306_v44 = vrot.slane %v4305_v18, 2  ;;  %v3349_v59 = vrot.slane %v3341_v56, %v10046_v17  ;;  %v4313_v30 = vshrl.u32 %v11077_v23, 16  ;;  %v4316_v4 = vshll.u32 %v11077_v23, 16 }
 0x13a   : > { %v4322_v2 = vshll.u32 %v11093_v31, 16  ;;  %v4301_v48 = vsel %vm10065_vm7, %v4296_v29, %v4300_v47  ;;  %v4594_v63 = vrot.slane %v4586_v27, %v10046_v17  ;;  %v4326_v55 = vshrl.u32 %v11093_v31, 16 }
 0x13b   : > { %v4311_v42 = vsel %vm10065_vm7, %v4306_v44, %v4310_v19  ;;  %v3357_v39 = vcombine.low %v3349_v59, %v3356_v1  ;;  %v4315_v46 = vrot.slane %v4313_v30, 6  ;;  %v4318_v61 = vrot.slane %v4316_v4, 7 }
 0x13c   : > { %v4587_v45 = vcombine.low %v4301_v48, %v4311_v42  ;;  %v4324_v15 = vrot.slane %v4322_v2, 7  ;;  %v4328_v52 = vrot.slane %v4326_v55, 6  ;;  %v4332_v53 = vshll.u32 %v11100_v25, 16 }
 0x13d   : > { %v4336_v12 = vshrl.u32 %v11100_v25, 16  ;;  %9634 = vmatmul.mubr.msk.bf16.gmra.mxu1 %vm1451_vm8, %v3357_v39  ;;  %v4319_v14 = vor.u32 %v4318_v61, %v4315_v46  ;;  %v4342_v35 = vshll.u32 %v11109_v20, 16  ;;  %v4347_v3 = vshrl.u32 %v11089_v58, 16 }
 0x13e   : > { %v4601_v41 = vrot.slane %v4587_v45, %v10046_v17  ;;  %v4329_v22 = vor.u32 %v4328_v52, %v4324_v15  ;;  %v4334_v36 = vrot.slane %v4332_v53, 7  ;;  %v4350_v26 = vshll.u32 %v11089_v58, 16  ;;  %v11165_v55 = vld.sshfl [vmem:[%s10027_s9 + $0x7c] sm:$0x13 pattern:$0x76325410] }
 0x13f   : > { %v4338_v28 = vrot.slane %v4336_v12, 6  ;;  %v4320_v9 = vrot.slane %v4319_v14, 2  ;;  %v4344_v10 = vrot.slane %v4342_v35, 7  ;;  %v4349_v0 = vrot.slane %v4347_v3, 6 }
 0x140   : > { %v4602_v47 = vcombine.low %v4594_v63, %v4601_v41  ;;  %v4330_v19 = vrot.slane %v4329_v22, 2  ;;  %v4352_v57 = vrot.slane %v4350_v26, 7  ;;  %v4356_v18 = vshll.u32 %v11113_v24, 16 }
 0x141   : > { %v4339_v34 = vor.u32 %v4338_v28, %v4334_v36  ;;  %v4325_v37 = vsel %vm10065_vm7, %v4320_v9, %v4324_v15  ;;  %v11148_v40 = vcombine.high %v11129_v11, %v11129_v11  ;;  %v3358_v56 = vcombine.low %v11113_v24, %v11136_v5  ;;  %v11173_v53 = vld.sshfl [vmem:[%s10027_s9 + $0x80] sm:$0x33 pattern:$0x76325410] }
 0x142   : > { %9659 = vmatprep.mubr.msk.bf16.mxu0 %vm1451_vm8, %v4602_v47  ;;  %v11154_v29 = vcombine.high %v11140_v54, %v11140_v54  ;;  %v4335_v44 = vsel %vm10065_vm7, %v4330_v19, %v4334_v36  ;;  %v4353_v1 = vor.u32 %v4352_v57, %v4349_v0  ;;  %v4358_v59 = vrot.slane %v4356_v18, 7  ;;  %v11179_v26 = vld.sshfl [vmem:[%s10027_s9 + $0x7c] sm:$0x3 pattern:$0x76325410] }
 0x143   : > { %v4340_v27 = vrot.slane %v4339_v34, 2  ;;  %v4603_v30 = vcombine.low %v4325_v37, %v4335_v44  ;;  %v3359_v4 = vcombine.low %v11129_v11, %v11148_v40  ;;  %v3366_v2 = vrot.slane %v3358_v56, %v10046_v17  ;;  %v11182_v47 = vld.sshfl [vmem:[%s10027_s9 + $0x84] sm:$0x3 pattern:$0x76325410] }
 0x144   : > { %v4360_v48 = vshrl.u32 %v11113_v24, 16  ;;  %v4354_v63 = vrot.slane %v4353_v1, 2  ;;  %v4366_v45 = vshll.u32 %v11140_v54, 16  ;;  %v4370_v39 = vshrl.u32 %v11140_v54, 16 }
 0x145   : > { %v4345_v42 = vsel %vm10065_vm7, %v4340_v27, %v4344_v10  ;;  %v4611_v46 = vrot.slane %v4603_v30, %v10046_v17  ;;  %v3373_v61 = vrot.slane %v3359_v4, %v10046_v17  ;;  %v4376_v52 = vshll.u32 %v11154_v29, 16 }
 0x146   : > { %v4362_v15 = vrot.slane %v4360_v48, 6  ;;  %v4359_v12 = vsel %vm10065_vm7, %v4354_v63, %v4358_v59  ;;  %v4368_v41 = vrot.slane %v4366_v45, 7  ;;  %v4372_v14 = vrot.slane %v4370_v39, 6 }
 0x147   : > { %v4381_v35 = vshrl.u32 %v11129_v11, 16  ;;  %v4604_v3 = vcombine.low %v4345_v42, %v4359_v12  ;;  %v3374_v22 = vcombine.low %v3366_v2, %v3373_v61  ;;  %v4378_v28 = vrot.slane %v4376_v52, 7  ;;  %v11203_v39 = vld.sshfl [vmem:[%s10027_s9 + $0x84] sm:$0x13 pattern:$0x76325410] }
 0x148   : > { %v4363_v36 = vor.u32 %v4362_v15, %v4358_v59  ;;  %v4373_v9 = vor.u32 %v4372_v14, %v4368_v41  ;;  %v4384_v0 = vshll.u32 %v11129_v11, 16  ;;  %v4390_v19 = vshll.u32 %v11148_v40, 16 }
 0x149   : > { %v4383_v10 = vrot.slane %v4381_v35, 6  ;;  %v4618_v34 = vrot.slane %v4604_v3, %v10046_v17  ;;  %9637 = vmatprep.mubr.msk.bf16.mxu1 %vm1451_vm8, %v3374_v22  ;;  %v4394_v18 = vshrl.u32 %v11148_v40, 16  ;;  %v4400_v37 = vshll.u32 %v11165_v55, 16 }
 0x14a   : > { %v4364_v57 = vrot.slane %v4363_v36, 2  ;;  %v4374_v56 = vrot.slane %v4373_v9, 2  ;;  %v4386_v44 = vrot.slane %v4384_v0, 7  ;;  %v4392_v27 = vrot.slane %v4390_v19, 7 }
 0x14b   : > { %v11192_v1 = vcombine.high %v11173_v53, %v11173_v53  ;;  %v4619_v59 = vcombine.low %v4611_v46, %v4618_v34  ;;  %v4396_v4 = vrot.slane %v4394_v18, 6  ;;  %v4402_v2 = vrot.slane %v4400_v37, 7  ;;  %v9108_v34 = vld.sshfl [vmem:[%s10027_s9 + $0x8] sm:$0x32 pattern:$0x76325410] }
 0x14c   : > { %v4369_v30 = vsel %vm10065_vm7, %v4364_v57, %v4368_v41  ;;  %v4379_v48 = vsel %vm10065_vm7, %v4374_v56, %v4378_v28  ;;  %v4387_v42 = vor.u32 %v4386_v44, %v4383_v10  ;;  %v3375_v63 = vcombine.low %v11179_v26, %v11173_v53 }
 0x14d   : > { %v3376_v45 = vcombine.low %v11192_v1, %v11182_v47  ;;  %9660 = vmatmul.mubr.msk.bf16.gmra.mxu0 %vm1451_vm8, %v4619_v59  ;;  %v4397_v46 = vor.u32 %v4396_v4, %v4392_v27  ;;  %v4620_v61 = vcombine.low %v4369_v30, %v4379_v48  ;;  %v11208_v15 = vcombine.high %v11165_v55, %v11165_v55  ;;  %v9109_v4 = vld.sshfl [vmem:[%s10027_s9 + $0xc] sm:$0x13 pattern:$0x76325410] }
 0x14e   : > { %v11212_v52 = vcombine.high %v11203_v39, %v11203_v39  ;;  %v4388_v12 = vrot.slane %v4387_v42, 2  ;;  %v3383_v41 = vrot.slane %v3375_v63, %v10046_v17  ;;  %v4404_v35 = vshrl.u32 %v11165_v55, 16 }
 0x14f   : > { %v3390_v14 = vrot.slane %v3376_v45, %v10046_v17  ;;  %v4398_v3 = vrot.slane %v4397_v46, 2  ;;  %v4628_v22 = vrot.slane %v4620_v61, %v10046_v17  ;;  %v4410_v36 = vshll.u32 %v11208_v15, 16 }
 0x150   : > { %v4415_v28 = vshrl.u32 %v11173_v53, 16  ;;  %v4393_v9 = vsel %vm10065_vm7, %v4388_v12, %v4392_v27  ;;  %v4406_v0 = vrot.slane %v4404_v35, 6  ;;  %v4418_v19 = vshll.u32 %v11173_v53, 16 }
 0x151   : > { %v3391_v10 = vcombine.low %v3383_v41, %v3390_v14  ;;  %v4403_v57 = vsel %vm10065_vm7, %v4398_v3, %v4402_v2  ;;  %v4412_v18 = vrot.slane %v4410_v36, 7  ;;  %v4424_v56 = vshll.u32 %v11192_v1, 16  ;;  %v9110_v14 = vld.sshfl [vmem:[%s10027_s9 + $0x10] sm:$0x32 pattern:$0x76325410] }
 0x152   : > { %v4417_v37 = vrot.slane %v4415_v28, 6  ;;  %v4621_v44 = vcombine.low %v4393_v9, %v4403_v57  ;;  %v4407_v59 = vor.u32 %v4406_v0, %v4402_v2  ;;  %v4420_v30 = vrot.slane %v4418_v19, 7  ;;  %v11238_v19 = vld.sshfl [vmem:[%s10027_s9 + $0x10] sm:$0x33 pattern:$0x76325410] }
 0x153   : > { %9638 = vmatmul.mubr.msk.bf16.gmra.mxu1 %vm1451_vm8, %v3391_v10  ;;  %v4428_v27 = vshrl.u32 %v11192_v1, 16  ;;  %v4426_v48 = vrot.slane %v4424_v56, 7  ;;  %v4434_v42 = vshll.u32 %v11203_v39, 16  ;;  %v4438_v63 = vshrl.u32 %v11203_v39, 16 }
 0x154   : > { %v4444_v45 = vshll.u32 %v11212_v52, 16  ;;  %v4635_v46 = vrot.slane %v4621_v44, %v10046_v17  ;;  %v4408_v61 = vrot.slane %v4407_v59, 2  ;;  %v4421_v12 = vor.u32 %v4420_v30, %v4417_v37  ;;  %v11241_v59 = vld.sshfl [vmem:[%s10027_s9 + $0x18] sm:$0x33 pattern:$0x76325410] }
 0x155   : > { %v4430_v41 = vrot.slane %v4428_v27, 6  ;;  %v4436_v2 = vrot.slane %v4434_v42, 7  ;;  %v4440_v35 = vrot.slane %v4438_v63, 6  ;;  %v4917_v36 = vcombine.high %v9108_v34, %v9108_v34  ;;  %12823 = vst [vmem:[#allocation6_spill] sm:$0xff] %v11241_v59 }
 0x156   : > { %v4446_v3 = vrot.slane %v4444_v45, 7  ;;  %v4636_v28 = vcombine.low %v4628_v22, %v4635_v46  ;;  %v4413_v9 = vsel %vm10065_vm7, %v4408_v61, %v4412_v18  ;;  %v4422_v10 = vrot.slane %v4421_v12, 2  ;;  %v9202_v61 = vld.sshfl [vmem:[%s10027_s9 + $0x14] sm:$0x3 pattern:$0x76325410] }
 0x157   : > { %v4431_v0 = vor.u32 %v4430_v41, %v4426_v48  ;;  %v4441_v57 = vor.u32 %v4440_v35, %v4436_v2  ;;  %v4925_v56 = vcombine.high %v9109_v4, %v9109_v4  ;;  %v4933_v44 = vcombine.high %v9110_v14, %v9110_v14 }
 0x158   : > { %v9140_v37 = vrot.slane %v9108_v34, 9  ;;  %9663 = vmatprep.mubr.msk.bf16.mxu0 %vm1451_vm8, %v4636_v28  ;;  %v4427_v22 = vsel %vm10065_vm7, %v4422_v10, %v4426_v48  ;;  %v5168_v27 = vrot.slane %v4917_v36, 7  ;;  %v5171_v18 = vrot.slane %v9109_v4, 7 }
 0x159   : > { %v4432_v30 = vrot.slane %v4431_v0, 2  ;;  %v4442_v42 = vrot.slane %v4441_v57, 2  ;;  %v4637_v63 = vcombine.low %v4413_v9, %v4427_v22  ;;  %v5174_v45 = vrot.slane %v4925_v56, 7 }
 0x15a   : > { %v9141_v46 = vrot.slane %v9110_v14, 9  ;;  %v5169_v12 = vsel %vm10511_vm15, %v9140_v37, %v5168_v27  ;;  %v5170_v41 = vrot.slane %v5168_v27, 2  ;;  %v5173_v35 = vrot.slane %v5171_v18, 2 }
 0x15b   : > { %v4437_v34 = vsel %vm10065_vm7, %v4432_v30, %v4436_v2  ;;  %v9204_v28 = vld.sshfl [vmem:[%s10027_s9 + $0x1c] sm:$0x3 pattern:$0x76325410]  ;;  %v4447_v48 = vsel %vm10065_vm7, %v4442_v42, %v4446_v3  ;;  %v4645_v4 = vrot.slane %v4637_v63, %v10046_v17  ;;  %v5178_v36 = vrot.slane %v4933_v44, 7 }
 0x15c   : > { %v11257_v14 = vcombine.high %v11238_v19, %v11238_v19  ;;  %v11260_v9 = vld.sshfl [vmem:[%s10027_s9 + $0x14] sm:$0x13 pattern:$0x76325410]  ;;  %v4638_v2 = vcombine.low %v4437_v34, %v4447_v48  ;;  %v5172_v10 = vsel %vm10511_vm15, %v5170_v41, %v5171_v18  ;;  %v5175_v0 = vsel %vm10511_vm15, %v5173_v35, %v5174_v45 }
 0x15d   : > { %v11268_v3 = vcombine.high %v11241_v59, %v11241_v59  ;;  %v9112_v57 = vld.sshfl [vmem:[%s10027_s9 + $0x18] sm:$0x32 pattern:$0x76325410]  ;;  %v11273_v56 = vsel %vm10511_vm15, %v9141_v46, %v5178_v36  ;;  %v5180_v44 = vrot.slane %v5178_v36, 2  ;;  %v5328_v37 = vcombine.low %v5169_v12, %v5172_v10 }
 0x15e   : > { %12825 = vst [vmem:[#allocation10_spill] sm:$0xff] %v11273_v56  ;;  %v6034_v22 = vcombine.low %v11238_v19, %v11257_v14  ;;  %v4652_v30 = vrot.slane %v4638_v2, %v10046_v17  ;;  %v5329_v27 = vcombine.low %v5175_v0, %v11273_v56  ;;  %v6035_v18 = vcombine.low %v9202_v61, %v11241_v59  ;;  %v11282_v63 = vld.sshfl [vmem:[%s10027_s9 + $0x1c] sm:$0x13 pattern:$0x76325410] }
 0x15f   : > { %12824 = vst [vmem:[#allocation7_spill] sm:$0xff] %v11268_v3  ;;  %v6051_v42 = vcombine.low %v11268_v3, %v9204_v28  ;;  %12826 = vst [vmem:[#allocation8_spill] sm:$0xff] %v11282_v63  ;;  %v5336_v45 = vrot.slane %v5328_v37, %v10046_v17  ;;  %v11288_v34 = vcombine.high %v11260_v9, %v11260_v9  ;;  %v11291_v41 = vld.sshfl [vmem:[%s10027_s9 + $0x20] sm:$0x33 pattern:$0x76325410] }
 0x160   : > { %v6042_v46 = vrot.slane %v6034_v22, %v10046_v17  ;;  %v4949_v12 = vcombine.high %v9112_v57, %v9112_v57  ;;  %12827 = vst [vmem:[#allocation9_spill] sm:$0xff] %v11291_v41  ;;  %v4653_v35 = vcombine.low %v4645_v4, %v4652_v30  ;;  %v5343_v48 = vrot.slane %v5329_v27, %v10046_v17  ;;  %v9114_v36 = vld.sshfl [vmem:[%s10027_s9 + $0x20] sm:$0x32 pattern:$0x76325410] }
 0x161   : > { %v6049_v61 = vrot.slane %v6035_v18, %v10046_v17  ;;  %v6059_v28 = vrot.slane %v6051_v42, %v10046_v17  ;;  %v5181_v2 = vrot.slane %v11260_v9, 7  ;;  %v5184_v10 = vrot.slane %v11288_v34, 7  ;;  %v11306_v30 = vld.sshfl [vmem:[%s10027_s9 + $0x24] sm:$0x13 pattern:$0x76325410] }
 0x162   : > { %v9142_v0 = vrot.slane %v9112_v57, 9  ;;  %v5188_v37 = vrot.slane %v4949_v12, 7  ;;  %9664 = vmatmul.mubr.msk.bf16.gmra.mxu0 %vm1451_vm8, %v4653_v35  ;;  %v5344_v22 = vcombine.low %v5336_v45, %v5343_v48  ;;  %v5191_v56 = vrot.slane %v11282_v63, 7  ;;  %12829 = vst [vmem:[#allocation13_spill] sm:$0xff] %v11306_v30 }
 0x163   : > { %v6050_v33 = vcombine.low %v6042_v46, %v6049_v61  ;;  %v11303_v4 = vcombine.high %v11291_v41, %v11291_v41  ;;  %v11310_v27 = vsel %vm10511_vm15, %v5180_v44, %v5181_v2  ;;  %v5183_v57 = vrot.slane %v5181_v2, 2  ;;  %v9849_v44 = vld [vmem:[%s12704_s1 + $0xe] sm:$0x3] }
 0x164   : > { %12830 = vst [vmem:[#allocation11_spill] sm:$0xff] %v11310_v27  ;;  %v11314_v18 = vsel %vm10511_vm15, %v9142_v0, %v5188_v37  ;;  %v5190_v42 = vrot.slane %v5188_v37, 2  ;;  %9669 = vmatprep.mubr.msk.bf16.mxu1 %vm1451_vm8, %v5344_v22  ;;  %v7537_v46 = vsel %vm1488_vm0, %v9849_v44, 0  ;;  %v8415_v12 = vsel %vm1488_vm0, %v10909_v16, 0 }
 0x165   : > { %12828 = vst [vmem:[#allocation12_spill] sm:$0xff] %v11303_v4  ;;  %9695 = vmatprep.mubr.msk.bf16.mxu0 %vm1451_vm8, %v6050_v33  ;;  %v6052_v45 = vcombine.low %v11291_v41, %v11303_v4  ;;  %v11328_v35 = vcombine.high %v11282_v63, %v11282_v63  ;;  %v11332_v33 = vsel %vm10511_vm15, %v5183_v57, %v5184_v10  ;;  %v9206_v0 = vld.sshfl [vmem:[%s10027_s9 + $0x24] sm:$0x3 pattern:$0x76325410]  ;;  %v5193_v57 = vrot.slane %v5191_v56, 2 }
 0x166   : > { %12831 = vst [vmem:[#allocation15_spill] sm:$0xff] %v11332_v33  ;;  %v11336_v48 = vsel %vm10511_vm15, %v5190_v42, %v5191_v56  ;;  %v4965_v61 = vcombine.high %v9114_v36, %v9114_v36  ;;  %v11340_v2 = vcombine.high %v11306_v30, %v11306_v30  ;;  %v11344_v16 = vld.sshfl [vmem:[%s10027_s9 + $0x28] sm:$0x33 pattern:$0x76325410]  ;;  %v5345_v37 = vcombine.low %v11310_v27, %v11332_v33 }
 0x167   : > { %12832 = vst [vmem:[#allocation14_spill] sm:$0xff] %v11336_v48  ;;  %12834 = vst [vmem:[#allocation17_spill] sm:$0xff] %v11344_v16  ;;  %v5346_v10 = vcombine.low %v11314_v18, %v11336_v48  ;;  %v6066_v22 = vrot.slane %v6052_v45, %v10046_v17  ;;  %v9116_v42 = vld.sshfl [vmem:[%s10027_s9 + $0x28] sm:$0x32 pattern:$0x76325410] }
 0x168   : > { %12833 = vst [vmem:[#allocation16_spill] sm:$0xff] %v11340_v2  ;;  %v5194_v44 = vrot.slane %v11328_v35, 7  ;;  %v9143_v4 = vrot.slane %v9114_v36, 9  ;;  %v5198_v41 = vrot.slane %v4965_v61, 7  ;;  %v5201_v63 = vrot.slane %v11306_v30, 7 }
 0x169   : > { %v5353_v3 = vrot.slane %v5345_v37, %v10046_v17  ;;  %v5360_v59 = vrot.slane %v5346_v10, %v10046_v17  ;;  %v6067_v33 = vcombine.low %v6059_v28, %v6066_v22  ;;  %v5204_v27 = vrot.slane %v11340_v2, 7  ;;  %v11358_v48 = vld.sshfl [vmem:[%s10027_s9 + $0x2c] sm:$0x13 pattern:$0x76325410] }
 0x16a   : > { %12835 = vst [vmem:[#allocation18_spill] sm:$0xff] %v11358_v48  ;;  %v11362_v56 = vsel %vm10511_vm15, %v5193_v57, %v5194_v44  ;;  %v11366_v36 = vsel %vm10511_vm15, %v9143_v4, %v5198_v41  ;;  %v5200_v45 = vrot.slane %v5198_v41, 2  ;;  %v5203_v61 = vrot.slane %v5201_v63, 2 }
 0x16b   : > { %12836 = vst [vmem:[#allocation19_spill] sm:$0xff] %v11362_v56  ;;  %12837 = vst [vmem:[#allocation20_spill] sm:$0xff] %v11366_v36  ;;  %v9208_v37 = vld.sshfl [vmem:[%s10027_s9 + $0x2c] sm:$0x3 pattern:$0x76325410]  ;;  %v5361_v30 = vcombine.low %v5353_v3, %v5360_v59  ;;  %9696 = vmatmul.mubr.msk.bf16.vlgmr.msra.gmra.mxu0 %vm1451_vm8, %v6067_v33  ;;  %v5362_v28 = vcombine.low %v11362_v56, %v11366_v36  ;;  %v11374_v10 = vcombine.high %v11344_v16, %v11344_v16 }
 0x16c   : > { %v6068_v22 = vcombine.low %v9206_v0, %v11344_v16  ;;  %v9118_v57 = vld.sshfl [vmem:[%s10027_s9 + $0x30] sm:$0x32 pattern:$0x76325410]  ;;  %9746 = vmatpush3.bf16.msra.mxu0 %v8415_v12  ;;  %v11380_v41 = vsel %vm10511_vm15, %v5200_v45, %v5201_v63  ;;  %v11384_v59 = vsel %vm10511_vm15, %v5203_v61, %v5204_v27  ;;  %v4981_v3 = vcombine.high %v9116_v42, %v9116_v42 }
 0x16d   : > { %12838 = vst [vmem:[#allocation21_spill] sm:$0xff] %v11374_v10  ;;  %12839 = vst [vmem:[#allocation22_spill] sm:$0xff] %v11380_v41  ;;  %v11388_v4 = vcombine.high %v11358_v48, %v11358_v48  ;;  %v11391_v33 = vld.sshfl [vmem:[%s10027_s9 + $0x30] sm:$0x33 pattern:$0x76325410]  ;;  %9670 = vmatmul.mubr.msk.bf16.vlgmr.msra.gmra.mxu1 %vm1451_vm8, %v5361_v30  ;;  %v5363_v12 = vcombine.low %v11380_v41, %v11384_v59  ;;  %v5370_v63 = vrot.slane %v5362_v28, %v10046_v17 }
 0x16e   : > { %12840 = vst [vmem:[#allocation23_spill] sm:$0xff] %v11384_v59  ;;  %12842 = vst [vmem:[#allocation25_spill] sm:$0xff] %v11391_v33  ;;  %v9210_v44 = vld.sshfl [vmem:[%s10027_s9 + $0x34] sm:$0x3 pattern:$0x76325410]  ;;  %v6069_v0 = vcombine.low %v11374_v10, %v9208_v37  ;;  %v6076_v27 = vrot.slane %v6068_v22, %v10046_v17  ;;  %9720 = vmatpush3.bf16.msra.mxu1 %v7537_v46  ;;  %v4997_v61 = vcombine.high %v9118_v57, %v9118_v57 }
 0x16f   : > { %12841 = vst [vmem:[#allocation24_spill] sm:$0xff] %v11388_v4  ;;  %v11401_v45 = vld.sshfl [vmem:[%s10027_s9 + $0x38] sm:$0x33 pattern:$0x76325410]  ;;  %v9144_v16 = vrot.slane %v9116_v42, 9  ;;  %v5377_v30 = vrot.slane %v5363_v12, %v10046_v17  ;;  %v11416_v12 = vcombine.high %v11391_v33, %v11391_v33 }
 0x170   : > { %12843 = vst [vmem:[#allocation26_spill] sm:$0xff] %v11401_v45  ;;  %v5208_v2 = vrot.slane %v4981_v3, 7  ;;  %v5211_v36 = vrot.slane %v11358_v48, 7  ;;  %v6083_v56 = vrot.slane %v6069_v0, %v10046_v17  ;;  %v5214_v59 = vrot.slane %v11388_v4, 7 }
 0x171   : > { %v9145_v28 = vrot.slane %v9118_v57, 9  ;;  %v11408_v41 = vld.sshfl [vmem:[%s10027_s9 + $0x34] sm:$0x13 pattern:$0x76325410]  ;;  %v5218_v42 = vrot.slane %v4997_v61, 7  ;;  %v5378_v3 = vcombine.low %v5370_v63, %v5377_v30  ;;  %v6086_v0 = vcombine.low %v9210_v44, %v11401_v45 }
 0x172   : > { %12844 = vst [vmem:[#allocation27_spill] sm:$0xff] %v11408_v41  ;;  %v11412_v37 = vsel %vm10511_vm15, %v9144_v16, %v5208_v2  ;;  %v5210_v46 = vrot.slane %v5208_v2, 2  ;;  %v5213_v22 = vrot.slane %v5211_v36, 2  ;;  %v6084_v10 = vcombine.low %v6076_v27, %v6083_v56  ;;  %12846 = vst [vmem:[#allocation29_spill] sm:$0xff] %v11416_v12 }
 0x173   : > { %12845 = vst [vmem:[#allocation28_spill] sm:$0xff] %v11412_v37  ;;  %v9120_v4 = vld.sshfl [vmem:[%s10027_s9 + $0x38] sm:$0x32 pattern:$0x76325410]  ;;  %v5219_v16 = vsel %vm10511_vm15, %v9145_v28, %v5218_v42  ;;  %v11432_v56 = vcombine.high %v11408_v41, %v11408_v41  ;;  %9673 = vmatprep.mubr.msk.bf16.mxu1 %vm1451_vm8, %v5378_v3  ;;  %v5220_v27 = vrot.slane %v5218_v42, 2  ;;  %v6100_v61 = vrot.slane %v6086_v0, %v10046_v17 }
 0x174   : > { %v11422_v57 = vsel %vm10511_vm15, %v5210_v46, %v5211_v36  ;;  %v11426_v2 = vsel %vm10511_vm15, %v5213_v22, %v5214_v59  ;;  %9699 = vmatprep.mubr.msk.bf16.mxu0 %vm1451_vm8, %v6084_v10  ;;  %v6085_v59 = vcombine.low %v11391_v33, %v11416_v12  ;;  %v9121_v63 = vld.sshfl [vmem:[%s10027_s9 + $0x3c] sm:$0x13 pattern:$0x76325410]  ;;  %v5013_v30 = vcombine.high %v9120_v4, %v9120_v4 }
 0x175   : > { %12847 = vst [vmem:[#allocation30_spill] sm:$0xff] %v11422_v57  ;;  %12848 = vst [vmem:[#allocation31_spill] sm:$0xff] %v11426_v2  ;;  %v5379_v36 = vcombine.low %v11412_v37, %v11422_v57  ;;  %v5380_v44 = vcombine.low %v11426_v2, %v5219_v16  ;;  %v11444_v28 = vrot.slane %v11408_v41, 7  ;;  %v5224_v46 = vrot.slane %v11432_v56, 7 }
 0x176   : > { %12849 = vst [vmem:[#allocation32_spill] sm:$0xff] %v11432_v56  ;;  %v9212_v10 = vld.sshfl [vmem:[%s10027_s9 + $0x3c] sm:$0x3 pattern:$0x76325410]  ;;  %v6093_v12 = vrot.slane %v6085_v59, %v10046_v17  ;;  %v9146_v33 = vrot.slane %v9120_v4, 9 }
 0x177   : > { %12850 = vst [vmem:[#allocation33_spill] sm:$0xff] %v11444_v28  ;;  %v11449_v22 = vld.sshfl [vmem:[%s10027_s9 + $0x40] sm:$0x33 pattern:$0x76325410]  ;;  %v5387_v3 = vrot.slane %v5379_v36, %v10046_v17  ;;  %v5394_v16 = vrot.slane %v5380_v44, %v10046_v17  ;;  %v5222_v0 = vsel %vm10511_vm15, %v5220_v27, %v11444_v28  ;;  %v5223_v41 = vrot.slane %v11444_v28, 2 }
 0x178   : > { %12851 = vst [vmem:[#allocation34_spill] sm:$0xff] %v11449_v22  ;;  %v9122_v42 = vld.sshfl [vmem:[%s10027_s9 + $0x40] sm:$0x32 pattern:$0x76325410]  ;;  %v11459_v57 = vrot.slane %v5013_v30, 7  ;;  %v6101_v37 = vcombine.low %v6093_v12, %v6100_v61  ;;  %v11463_v36 = vcombine.high %v11401_v45, %v11401_v45  ;;  %v11467_v4 = vcombine.high %v11449_v22, %v11449_v22 }
 0x179   : > { %v5231_v56 = vrot.slane %v9121_v63, 7  ;;  %v5395_v2 = vcombine.low %v5387_v3, %v5394_v16  ;;  %v11470_v44 = vld.sshfl [vmem:[%s10027_s9 + $0x44] sm:$0x13 pattern:$0x76325410]  ;;  %v11474_v59 = vsel %vm10511_vm15, %v5223_v41, %v5224_v46  ;;  %v5021_v61 = vcombine.high %v9121_v63, %v9121_v63 }
 0x17a   : > { %12852 = vst [vmem:[#allocation35_spill] sm:$0xff] %v11459_v57  ;;  %12853 = vst [vmem:[#allocation36_spill] sm:$0xff] %v11463_v36  ;;  %v11479_v27 = vsel %vm10511_vm15, %v9146_v33, %v11459_v57  ;;  %v12768_v12 = vrot.slane %v11459_v57, 2  ;;  %9700 = vmatmul.mubr.msk.bf16.gmra.mxu0 %vm1451_vm8, %v6101_v37  ;;  %v5396_v30 = vcombine.low %v5222_v0, %v11474_v59 }
 0x17b   : > { %12854 = vst [vmem:[#allocation37_spill] sm:$0xff] %v11467_v4  ;;  %12855 = vst [vmem:[#allocation38_spill] sm:$0xff] %v11474_v59  ;;  %9674 = vmatmul.mubr.msk.bf16.gmra.mxu1 %vm1451_vm8, %v5395_v2  ;;  %v6102_v3 = vcombine.low %v11463_v36, %v9212_v10  ;;  %v6103_v41 = vcombine.low %v11449_v22, %v11467_v4  ;;  %v5233_v46 = vrot.slane %v5231_v56, 2  ;;  %v5234_v37 = vrot.slane %v5021_v61, 7 }
 0x17c   : > { %12856 = vst [vmem:[#allocation39_spill] sm:$0xff] %v11479_v27  ;;  %v9214_v16 = vld.sshfl [vmem:[%s10027_s9 + $0x44] sm:$0x3 pattern:$0x76325410]  ;;  %v5232_v33 = vsel %vm10511_vm15, %v12768_v12, %v5231_v56  ;;  %v5029_v63 = vcombine.high %v9122_v42, %v9122_v42  ;;  %v11495_v2 = vcombine.high %v11470_v44, %v11470_v44  ;;  %v5404_v28 = vrot.slane %v5396_v30, %v10046_v17 }
 0x17d   : > { %v9216_v0 = vld.sshfl [vmem:[%s10027_s9 + $0x4c] sm:$0x3 pattern:$0x76325410]  ;;  %v5397_v10 = vcombine.low %v11479_v27, %v5232_v33  ;;  %v6110_v4 = vrot.slane %v6102_v3, %v10046_v17  ;;  %v6117_v57 = vrot.slane %v6103_v41, %v10046_v17  ;;  %v5235_v56 = vsel %vm10511_vm15, %v5233_v46, %v5234_v37 }
 0x17e   : > { %12857 = vst [vmem:[#allocation40_spill] sm:$0xff] %v11495_v2  ;;  %v9124_v22 = vld.sshfl [vmem:[%s10027_s9 + $0x48] sm:$0x32 pattern:$0x76325410]  ;;  %v9147_v12 = vrot.slane %v9122_v42, 9  ;;  %v6119_v30 = vcombine.low %v9214_v16, %v10965_v62  ;;  %v6120_v42 = vcombine.low %v10977_v32, %v9216_v0 }
 0x17f   : > { %v5238_v59 = vrot.slane %v5029_v63, 7  ;;  %v5241_v36 = vrot.slane %v11470_v44, 7  ;;  %v5411_v61 = vrot.slane %v5397_v10, %v10046_v17  ;;  %v6118_v45 = vcombine.low %v6110_v4, %v6117_v57  ;;  %v9125_v3 = vld.sshfl [vmem:[%s10027_s9 + $0x4c] sm:$0x13 pattern:$0x76325410] }
 0x180   : > { %v5244_v33 = vrot.slane %v11495_v2, 7  ;;  %v9126_v46 = vld.sshfl [vmem:[%s10027_s9 + $0x50] sm:$0x32 pattern:$0x76325410]  ;;  %v6127_v57 = vrot.slane %v6119_v30, %v10046_v17  ;;  %v5045_v4 = vcombine.high %v9124_v22, %v9124_v22  ;;  %v5053_v16 = vcombine.high %v9125_v3, %v9125_v3 }
 0x181   : > { %v5239_v41 = vsel %vm10511_vm15, %v9147_v12, %v5238_v59  ;;  %v5240_v27 = vrot.slane %v5238_v59, 2  ;;  %v5243_v48 = vrot.slane %v5241_v36, 2  ;;  %v5412_v63 = vcombine.low %v5404_v28, %v5411_v61  ;;  %9703 = vmatprep.mubr.msk.bf16.mxu0 %vm1451_vm8, %v6118_v45  ;;  %v9217_v10 = vld.sshfl [vmem:[%s10027_s9 + $0x50] sm:$0x33 pattern:$0x76325410] }
 0x182   : > { %v5413_v37 = vcombine.low %v5235_v56, %v5239_v41  ;;  %v6134_v59 = vrot.slane %v6120_v42, %v10046_v17  ;;  %v9218_v32 = vld.sshfl [vmem:[%s10027_s9 + $0x54] sm:$0x3 pattern:$0x76325410]  ;;  %v5061_v0 = vcombine.high %v9126_v46, %v9126_v46  ;;  %v9148_v56 = vrot.slane %v9124_v22, 9 }
 0x183   : > { %v5242_v62 = vsel %vm10511_vm15, %v5240_v27, %v5241_v36  ;;  %v5245_v12 = vsel %vm10511_vm15, %v5243_v48, %v5244_v33  ;;  %9677 = vmatprep.mubr.msk.bf16.mxu1 %vm1451_vm8, %v5412_v63  ;;  %v9128_v61 = vld.sshfl [vmem:[%s10027_s9 + $0x58] sm:$0x32 pattern:$0x76325410]  ;;  %v5248_v41 = vrot.slane %v5045_v4, 7  ;;  %v5251_v2 = vrot.slane %v9125_v3, 7 }
 0x184   : > { %v5414_v28 = vcombine.low %v5242_v62, %v5245_v12  ;;  %v5421_v45 = vrot.slane %v5413_v37, %v10046_v17  ;;  %v6135_v30 = vcombine.low %v6127_v57, %v6134_v59  ;;  %v5254_v36 = vrot.slane %v5053_v16, 7  ;;  %v9129_v12 = vld.sshfl [vmem:[%s10027_s9 + $0x5c] sm:$0x13 pattern:$0x76325410] }
 0x185   : > { %v9149_v48 = vrot.slane %v9126_v46, 9  ;;  %v5258_v33 = vrot.slane %v5061_v0, 7  ;;  %v5919_v42 = vcombine.high %v9217_v10, %v9217_v10  ;;  %v5249_v63 = vsel %vm10511_vm15, %v9148_v56, %v5248_v41 }
 0x186   : > { %v5428_v27 = vrot.slane %v5414_v28, %v10046_v17  ;;  %9704 = vmatmul.mubr.msk.bf16.gmra.mxu0 %vm1451_vm8, %v6135_v30  ;;  %v5250_v62 = vrot.slane %v5248_v41, 2  ;;  %v5253_v37 = vrot.slane %v5251_v2, 2  ;;  %v6137_v22 = vcombine.low %v9218_v32, %v10997_v38 }
 0x187   : > { %v5259_v3 = vsel %vm10511_vm15, %v9149_v48, %v5258_v33  ;;  %v6136_v4 = vcombine.low %v9217_v10, %v5919_v42  ;;  %v5077_v59 = vcombine.high %v9128_v61, %v9128_v61  ;;  %v5260_v0 = vrot.slane %v5258_v33, 2 }
 0x188   : > { %v5429_v57 = vcombine.low %v5421_v45, %v5428_v27  ;;  %v5252_v46 = vsel %vm10511_vm15, %v5250_v62, %v5251_v2  ;;  %v5255_v16 = vsel %vm10511_vm15, %v5253_v37, %v5254_v36  ;;  %v6151_v28 = vrot.slane %v6137_v22, %v10046_v17  ;;  %v9130_v45 = vld.sshfl [vmem:[%s10027_s9 + $0x60] sm:$0x32 pattern:$0x76325410] }
 0x189   : > { %v5430_v56 = vcombine.low %v5249_v63, %v5252_v46  ;;  %v5431_v38 = vcombine.low %v5255_v16, %v5259_v3  ;;  %v6144_v32 = vrot.slane %v6136_v4, %v10046_v17  ;;  %v5261_v10 = vrot.slane %v11009_v50, 7  ;;  %v9850_v50 = vld.sshfl [vmem:[%s10027_s9 + $0x58] sm:$0x33 pattern:$0x76325410] }
 0x18a   : > { %9678 = vmatmul.mubr.msk.bf16.gmra.mxu1 %vm1451_vm8, %v5429_v57  ;;  %v5264_v30 = vrot.slane %v11015_v6, 7  ;;  %v9150_v41 = vrot.slane %v9128_v61, 9  ;;  %v5268_v2 = vrot.slane %v5077_v59, 7  ;;  %v5271_v27 = vrot.slane %v9129_v12, 7 }
 0x18b   : > { %v5438_v36 = vrot.slane %v5430_v56, %v10046_v17  ;;  %v5445_v48 = vrot.slane %v5431_v38, %v10046_v17  ;;  %v6152_v33 = vcombine.low %v6144_v32, %v6151_v28  ;;  %v5262_v42 = vsel %vm10511_vm15, %v5260_v0, %v5261_v10 }
 0x18c   : > { %v5263_v63 = vrot.slane %v5261_v10, 2  ;;  %v5269_v62 = vsel %vm10511_vm15, %v9150_v41, %v5268_v2  ;;  %v5270_v37 = vrot.slane %v5268_v2, 2  ;;  %v5934_v22 = vcombine.high %v9850_v50, %v9850_v50 }
 0x18d   : > { %v5446_v6 = vcombine.low %v5438_v36, %v5445_v48  ;;  %9707 = vmatprep.mubr.msk.bf16.mxu0 %vm1451_vm8, %v6152_v33  ;;  %v6154_v61 = vcombine.low %v11034_v13, %v11048_v51  ;;  %v5085_v57 = vcombine.high %v9129_v12, %v9129_v12  ;;  %v5093_v3 = vcombine.high %v9130_v45, %v9130_v45  ;;  %v9132_v13 = vld.sshfl [vmem:[%s10027_s9 + $0x68] sm:$0x32 pattern:$0x76325410] }
 0x18e   : > { %v5265_v4 = vsel %vm10511_vm15, %v5263_v63, %v5264_v30  ;;  %v5272_v59 = vsel %vm10511_vm15, %v5270_v37, %v5271_v27  ;;  %v6153_v46 = vcombine.low %v5934_v22, %v11031_v8  ;;  %v5273_v16 = vrot.slane %v5271_v27, 2  ;;  %v9134_v27 = vld.sshfl [vmem:[%s10027_s9 + $0x70] sm:$0x32 pattern:$0x76325410] }
 0x18f   : > { %9681 = vmatprep.mubr.msk.bf16.mxu1 %vm1451_vm8, %v5446_v6  ;;  %v5447_v28 = vcombine.low %v5262_v42, %v5265_v4  ;;  %v5448_v0 = vcombine.low %v5269_v62, %v5272_v59  ;;  %v6168_v56 = vrot.slane %v6154_v61, %v10046_v17  ;;  %v5274_v38 = vrot.slane %v5085_v57, 7 }
 0x190   : > { %v6161_v51 = vrot.slane %v6153_v46, %v10046_v17  ;;  %v9151_v12 = vrot.slane %v9130_v45, 9  ;;  %v5278_v32 = vrot.slane %v5093_v3, 7  ;;  %v5281_v10 = vrot.slane %v11053_v60, 7 }
 0x191   : > { %v5455_v30 = vrot.slane %v5447_v28, %v10046_v17  ;;  %v5462_v8 = vrot.slane %v5448_v0, %v10046_v17  ;;  %v5275_v41 = vsel %vm10511_vm15, %v5273_v16, %v5274_v38  ;;  %v5284_v2 = vrot.slane %v11060_v7, 7 }
 0x192   : > { %v6169_v36 = vcombine.low %v6161_v51, %v6168_v56  ;;  %v5279_v48 = vsel %vm10511_vm15, %v9151_v12, %v5278_v32  ;;  %v5280_v33 = vrot.slane %v5278_v32, 2  ;;  %v5283_v45 = vrot.slane %v5281_v10, 2 }
 0x193   : > { %v5463_v42 = vcombine.low %v5455_v30, %v5462_v8  ;;  %v5464_v63 = vcombine.low %v5275_v41, %v5279_v48  ;;  %v6170_v60 = vcombine.low %v11041_v43, %v11077_v23  ;;  %v6171_v62 = vcombine.low %v11093_v31, %v11086_v21  ;;  %v9136_v21 = vld.sshfl [vmem:[%s10027_s9 + $0x78] sm:$0x32 pattern:$0x76325410] }
 0x194   : > { %9708 = vmatmul.mubr.msk.bf16.gmra.mxu0 %vm1451_vm8, %v6169_v36  ;;  %v5282_v7 = vsel %vm10511_vm15, %v5280_v33, %v5281_v10  ;;  %v5285_v37 = vsel %vm10511_vm15, %v5283_v45, %v5284_v2  ;;  %v5109_v50 = vcombine.high %v9132_v13, %v9132_v13  ;;  %v5125_v22 = vcombine.high %v9134_v27, %v9134_v27 }
 0x195   : > { %9682 = vmatmul.mubr.msk.bf16.gmra.mxu1 %vm1451_vm8, %v5463_v42  ;;  %v5465_v6 = vcombine.low %v5282_v7, %v5285_v37  ;;  %v5472_v61 = vrot.slane %v5464_v63, %v10046_v17  ;;  %v6178_v43 = vrot.slane %v6170_v60, %v10046_v17  ;;  %v6185_v23 = vrot.slane %v6171_v62, %v10046_v17 }
 0x196   : > { %v9152_v31 = vrot.slane %v9132_v13, 9  ;;  %v5288_v57 = vrot.slane %v5109_v50, 7  ;;  %v5291_v3 = vrot.slane %v11100_v25, 7  ;;  %v5294_v4 = vrot.slane %v11109_v20, 7 }
 0x197   : > { %v5479_v59 = vrot.slane %v5465_v6, %v10046_v17  ;;  %v6186_v46 = vcombine.low %v6178_v43, %v6185_v23  ;;  %v9153_v16 = vrot.slane %v9134_v27, 9  ;;  %v5298_v28 = vrot.slane %v5125_v22, 7  ;;  %v9138_v27 = vld.sshfl [vmem:[%s10027_s9 + $0x80] sm:$0x32 pattern:$0x76325410] }
 0x198   : > { %v5289_v0 = vsel %vm10511_vm15, %v9152_v31, %v5288_v57  ;;  %v5290_v56 = vrot.slane %v5288_v57, 2  ;;  %v5293_v38 = vrot.slane %v5291_v3, 2  ;;  %v6187_v51 = vcombine.low %v11089_v58, %v11113_v24 }
 0x199   : > { %v5480_v13 = vcombine.low %v5472_v61, %v5479_v59  ;;  %9711 = vmatprep.mubr.msk.bf16.mxu0 %vm1451_vm8, %v6186_v46  ;;  %v5299_v25 = vsel %vm10511_vm15, %v9153_v16, %v5298_v28  ;;  %v6188_v20 = vcombine.low %v11136_v5, %v11129_v11  ;;  %v5141_v12 = vcombine.high %v9136_v21, %v9136_v21 }
 0x19a   : > { %v5292_v32 = vsel %vm10511_vm15, %v5290_v56, %v5291_v3  ;;  %v5295_v10 = vsel %vm10511_vm15, %v5293_v38, %v5294_v4  ;;  %v6195_v30 = vrot.slane %v6187_v51, %v10046_v17  ;;  %v5300_v8 = vrot.slane %v5298_v28, 2 }
 0x19b   : > { %9685 = vmatprep.mubr.msk.bf16.mxu1 %vm1451_vm8, %v5480_v13  ;;  %v5481_v58 = vcombine.low %v5289_v0, %v5292_v32  ;;  %v5482_v24 = vcombine.low %v5295_v10, %v5299_v25  ;;  %v6202_v41 = vrot.slane %v6188_v20, %v10046_v17  ;;  %v5301_v2 = vrot.slane %v11140_v54, 7  ;;  %v11641_v25 = vpop.f32.mrf.mxu0  ;;  %v11643_v20 = vpop.f32.mrf.mxu1 }
 0x19c   : > { %v5304_v11 = vrot.slane %v11154_v29, 7  ;;  %v9154_v5 = vrot.slane %v9136_v21, 9  ;;  %v5308_v36 = vrot.slane %v5141_v12, 7  ;;  %v5311_v48 = vrot.slane %v11165_v55, 7  ;;  %12858 = vst [vmem:[#allocation41_spill] sm:$0xff] %v11641_v25 }
 0x19d   : > { %v5489_v33 = vrot.slane %v5481_v58, %v10046_v17  ;;  %v5496_v45 = vrot.slane %v5482_v24, %v10046_v17  ;;  %v6203_v42 = vcombine.low %v6195_v30, %v6202_v41  ;;  %v5302_v63 = vsel %vm10511_vm15, %v5300_v8, %v5301_v2 }
 0x19e   : > { %v5303_v60 = vrot.slane %v5301_v2, 2  ;;  %v5309_v54 = vsel %vm10511_vm15, %v9154_v5, %v5308_v36  ;;  %v5310_v62 = vrot.slane %v5308_v36, 2  ;;  %v6204_v29 = vcombine.low %v11148_v40, %v11179_v26  ;;  %v9231_v40 = vld.sshfl [vmem:[%s10027_s9 + $0x88] sm:$0x33 pattern:$0x76325410] }
 0x19f   : > { %v5497_v7 = vcombine.low %v5489_v33, %v5496_v45  ;;  %9712 = vmatmul.mubr.msk.bf16.gmra.mxu0 %vm1451_vm8, %v6203_v42  ;;  %v6205_v55 = vcombine.low %v11173_v53, %v11192_v1  ;;  %v5157_v37 = vcombine.high %v9138_v27, %v9138_v27  ;;  %v5313_v50 = vrot.slane %v5311_v48, 2  ;;  %v9232_v1 = vld.sshfl [vmem:[%s10027_s9 + $0x8c] sm:$0x3 pattern:$0x76325410]  ;;  %v11660_v33 = vpop.f32.mrf.mxu0  ;;  %v11662_v45 = vpop.f32.mrf.mxu1 }
 0x1a0   : > { %v5305_v22 = vsel %vm10511_vm15, %v5303_v60, %v5304_v11  ;;  %v5312_v6 = vsel %vm10511_vm15, %v5310_v62, %v5311_v48  ;;  %v6212_v61 = vrot.slane %v6204_v29, %v10046_v17  ;;  %v5314_v43 = vrot.slane %v11208_v15, 7  ;;  %12859 = vst [vmem:[#allocation42_spill] sm:$0xff] %v11660_v33 }
 0x1a1   : > { %9686 = vmatmul.mubr.msk.bf16.gmra.mxu1 %vm1451_vm8, %v5497_v7  ;;  %v5498_v26 = vcombine.low %v5302_v63, %v5305_v22  ;;  %v5499_v23 = vcombine.low %v5309_v54, %v5312_v6  ;;  %v6219_v21 = vrot.slane %v6205_v55, %v10046_v17  ;;  %v9155_v53 = vrot.slane %v9138_v27, 9  ;;  %v12860_v7 = vld [vmem:[#allocation6_spill] sm:$0xff] }
 0x1a2   : > { %v5315_v31 = vsel %vm10511_vm15, %v5313_v50, %v5314_v43  ;;  %v5318_v57 = vrot.slane %v5157_v37, 7  ;;  %v5321_v3 = vrot.slane %v11203_v39, 7  ;;  %v5324_v4 = vrot.slane %v11212_v52, 7 }
 0x1a3   : > { %v5506_v59 = vrot.slane %v5498_v26, %v10046_v17  ;;  %v5513_v15 = vrot.slane %v5499_v23, %v10046_v17  ;;  %v6220_v46 = vcombine.low %v6212_v61, %v6219_v21  ;;  %v6024_v16 = vcombine.high %v9231_v40, %v9231_v40  ;;  %v12863_v26 = vld [vmem:[#allocation10_spill] sm:$0xff]  ;;  %v11672_v21 = vpop.f32.mrf.mxu0 }
 0x1a4   : > { %v5319_v28 = vsel %vm10511_vm15, %v9155_v53, %v5318_v57  ;;  %v5320_v0 = vrot.slane %v5318_v57, 2  ;;  %v5323_v56 = vrot.slane %v5321_v3, 2  ;;  %v6221_v38 = vcombine.low %v11182_v47, %v9231_v40  ;;  %v12862_v40 = vld [vmem:[#allocation11_spill] sm:$0xff]  ;;  %12864 = vst [vmem:[#allocation6_spill] sm:$0xff] %v11672_v21  ;;  %v11674_v53 = vpop.f32.mrf.mxu1 }
 0x1a5   : > { %v5514_v51 = vcombine.low %v5506_v59, %v5513_v15  ;;  %9715 = vmatprep.mubr.msk.bf16.mxu0 %vm1451_vm8, %v6220_v46  ;;  %v5515_v13 = vcombine.low %v5315_v31, %v5319_v28  ;;  %v6222_v39 = vcombine.low %v6024_v16, %v9232_v1  ;;  %v6751_v52 = vshrl.u32 %v11238_v19, 16  ;;  %v12866_v46 = vld [vmem:[#allocation15_spill] sm:$0xff] }
 0x1a6   : > { %v5322_v12 = vsel %vm10511_vm15, %v5320_v0, %v5321_v3  ;;  %v5325_v32 = vsel %vm10511_vm15, %v5323_v56, %v5324_v4  ;;  %v6229_v10 = vrot.slane %v6221_v38, %v10046_v17  ;;  %v6754_v47 = vshll.u32 %v11238_v19, 16  ;;  %v12867_v38 = vld [vmem:[#allocation8_spill] sm:$0xff] }
 0x1a7   : > { %9689 = vmatprep.mubr.msk.bf16.mxu1 %vm1451_vm8, %v5514_v51  ;;  %v5516_v30 = vcombine.low %v5322_v12, %v5325_v32  ;;  %v5523_v8 = vrot.slane %v5515_v13, %v10046_v17  ;;  %v6236_v58 = vrot.slane %v6222_v39, %v10046_v17  ;;  %v6753_v24 = vrot.slane %v6751_v52, 6 }
 0x1a8   : > { %v6756_v41 = vrot.slane %v6754_v47, 7  ;;  %v6760_v2 = vshll.u32 %v11257_v14, 16  ;;  %v6764_v27 = vshrl.u32 %v11257_v14, 16  ;;  %v6770_v11 = vshll.u32 %v11260_v9, 16 }
 0x1a9   : > { %v5530_v5 = vrot.slane %v5516_v30, %v10046_v17  ;;  %v6237_v36 = vcombine.low %v6229_v10, %v6236_v58  ;;  %v6774_v19 = vshrl.u32 %v11260_v9, 16  ;;  %v6780_v48 = vshll.u32 %v11288_v34, 16  ;;  %v12861_v34 = vld [vmem:[#allocation7_spill] sm:$0xff]  ;;  %v11688_v10 = vpop.f32.mrf.mxu0 }
 0x1aa   : > { %v6757_v42 = vor.u32 %v6756_v41, %v6753_v24  ;;  %v6762_v63 = vrot.slane %v6760_v2, 7  ;;  %v6766_v60 = vrot.slane %v6764_v27, 6  ;;  %v6772_v54 = vrot.slane %v6770_v11, 7  ;;  %12868 = vst [vmem:[#allocation7_spill] sm:$0xff] %v11688_v10  ;;  %v12869_v27 = vld [vmem:[#allocation9_spill] sm:$0xff] }
 0x1ab   : > { %v5531_v62 = vcombine.low %v5523_v8, %v5530_v5  ;;  %9716 = vmatmul.mubr.msk.bf16.gmra.mxu0 %vm1451_vm8, %v6237_v36  ;;  %v6776_v14 = vrot.slane %v6774_v19, 6  ;;  %v6782_v29 = vrot.slane %v6780_v48, 7  ;;  %v6785_v55 = vshrl.u32 %v12860_v7, 16 }
 0x1ac   : > { %v6758_v37 = vrot.slane %v6757_v42, 2  ;;  %v6767_v50 = vor.u32 %v6766_v60, %v6762_v63  ;;  %v6788_v9 = vshll.u32 %v12860_v7, 16  ;;  %v6794_v22 = vshll.u32 %v12861_v34, 16  ;;  %v12870_v60 = vld [vmem:[#allocation12_spill] sm:$0xff] }
 0x1ad   : > { %9690 = vmatmul.mubr.msk.bf16.gmra.mxu1 %vm1451_vm8, %v5531_v62  ;;  %v6777_v6 = vor.u32 %v6776_v14, %v6772_v54  ;;  %v6787_v61 = vrot.slane %v6785_v55, 6  ;;  %v6798_v43 = vshrl.u32 %v12861_v34, 16  ;;  %v8174_v23 = vcombine.low %v12863_v26, %v12862_v40  ;;  %v11702_v62 = vpop.f32.mrf.mxu0  ;;  %v12876_v40 = vld [vmem:[#allocation20_spill] sm:$0xff] }
 0x1ae   : > { %v6763_v31 = vsel %vm10065_vm7, %v6758_v37, %v6762_v63  ;;  %v6768_v57 = vrot.slane %v6767_v50, 2  ;;  %v6790_v3 = vrot.slane %v6788_v9, 7  ;;  %v6796_v4 = vrot.slane %v6794_v22, 7  ;;  %12871 = vst [vmem:[#allocation11_spill] sm:$0xff] %v11702_v62  ;;  %v12872_v37 = vld [vmem:[#allocation13_spill] sm:$0xff]  ;;  %v12873_v22 = vld [vmem:[#allocation19_spill] sm:$0xff] }
 0x1af   : > { %v6778_v59 = vrot.slane %v6777_v6, 2  ;;  %v6800_v15 = vrot.slane %v6798_v43, 6  ;;  %v8175_v16 = vcombine.low %v12866_v46, %v11314_v18  ;;  %v8182_v28 = vrot.slane %v8174_v23, %v10046_v17  ;;  %v11690_v18 = vpop.f32.mrf.mxu1  ;;  %v12874_v6 = vld [vmem:[#allocation14_spill] sm:$0xff] }
 0x1b0   : > { %v6773_v0 = vsel %vm10065_vm7, %v6768_v57, %v6772_v54  ;;  %v6791_v56 = vor.u32 %v6790_v3, %v6787_v61  ;;  %v6804_v51 = vshll.u32 %v12867_v38, 16  ;;  %v6808_v13 = vshrl.u32 %v12867_v38, 16  ;;  %v12875_v43 = vld [vmem:[#allocation22_spill] sm:$0xff] }
 0x1b1   : > { %v6783_v39 = vsel %vm10065_vm7, %v6778_v59, %v6782_v29  ;;  %v6801_v52 = vor.u32 %v6800_v15, %v6796_v4  ;;  %v7296_v12 = vcombine.low %v6763_v31, %v6773_v0  ;;  %v8189_v32 = vrot.slane %v8175_v16, %v10046_v17  ;;  %v11704_v14 = vpop.f32.mrf.mxu1  ;;  %v11717_v16 = vpop.f32.mrf.mxu0 }
 0x1b2   : > { %v6792_v47 = vrot.slane %v6791_v56, 2  ;;  %v6806_v30 = vrot.slane %v6804_v51, 7  ;;  %v6810_v8 = vrot.slane %v6808_v13, 6  ;;  %v6814_v58 = vshll.u32 %v11328_v35, 16  ;;  %12877 = vst [vmem:[#allocation10_spill] sm:$0xff] %v11717_v16  ;;  %v12878_v51 = vld [vmem:[#allocation16_spill] sm:$0xff] }
 0x1b3   : > { %v6802_v24 = vrot.slane %v6801_v52, 2  ;;  %v7304_v41 = vrot.slane %v7296_v12, %v10046_v17  ;;  %v8190_v2 = vcombine.low %v8182_v28, %v8189_v32  ;;  %v6819_v11 = vshrl.u32 %v12869_v27, 16  ;;  %v11719_v28 = vpop.f32.mrf.mxu1  ;;  %v12879_v12 = vld [vmem:[#allocation17_spill] sm:$0xff] }
 0x1b4   : > { %v6797_v5 = vsel %vm10065_vm7, %v6792_v47, %v6796_v4  ;;  %v6811_v36 = vor.u32 %v6810_v8, %v6806_v30  ;;  %v6816_v19 = vrot.slane %v6814_v58, 7  ;;  %v6822_v48 = vshll.u32 %v12869_v27, 16  ;;  %v12880_v27 = vld [vmem:[#allocation21_spill] sm:$0xff] }
 0x1b5   : > { %v7297_v42 = vcombine.low %v6783_v39, %v6797_v5  ;;  %9747 = vmatprep.mubr.msk.bf16.mxu0 %vm1451_vm8, %v8190_v2  ;;  %v6807_v63 = vsel %vm10065_vm7, %v6802_v24, %v6806_v30  ;;  %v6821_v35 = vrot.slane %v6819_v11, 6  ;;  %v6828_v54 = vshll.u32 %v12870_v60, 16 }
 0x1b6   : > { %v6812_v29 = vrot.slane %v6811_v36, 2  ;;  %v6824_v7 = vrot.slane %v6822_v48, 7  ;;  %v6832_v55 = vshrl.u32 %v12870_v60, 16  ;;  %v6838_v50 = vshll.u32 %v12872_v37, 16  ;;  %v11732_v36 = vpop.f32.mrf.mxu0 }
 0x1b7   : > { %v7311_v9 = vrot.slane %v7297_v42, %v10046_v17  ;;  %v6830_v34 = vrot.slane %v6828_v54, 7  ;;  %v8191_v61 = vcombine.low %v12874_v6, %v12873_v22  ;;  %v8192_v26 = vcombine.low %v12876_v40, %v12875_v43  ;;  %12881 = vst [vmem:[#allocation5_spill] sm:$0xff] %v11732_v36  ;;  %v12884_v40 = vld [vmem:[#allocation28_spill] sm:$0xff] }
 0x1b8   : > { %v6817_v23 = vsel %vm10065_vm7, %v6812_v29, %v6816_v19  ;;  %v6825_v31 = vor.u32 %v6824_v7, %v6821_v35  ;;  %v6834_v57 = vrot.slane %v6832_v55, 6  ;;  %v6840_v3 = vrot.slane %v6838_v50, 7  ;;  %v11734_v19 = vpop.f32.mrf.mxu1 }
 0x1b9   : > { %v7312_v4 = vcombine.low %v7304_v41, %v7311_v9  ;;  %v7313_v59 = vcombine.low %v6807_v63, %v6817_v23  ;;  %v8199_v15 = vrot.slane %v8191_v61, %v10046_v17  ;;  %v8206_v46 = vrot.slane %v8192_v26, %v10046_v17  ;;  %v12882_v63 = vld [vmem:[#allocation18_spill] sm:$0xff]  ;;  %v12885_v26 = vld [vmem:[#allocation23_spill] sm:$0xff] }
 0x1ba   : > { %v6826_v0 = vrot.slane %v6825_v31, 2  ;;  %v6835_v56 = vor.u32 %v6834_v57, %v6830_v34  ;;  %v6842_v38 = vshrl.u32 %v12872_v37, 16  ;;  %v6848_v13 = vshll.u32 %v12878_v51, 16  ;;  %v11744_v31 = vpop.f32.mrf.mxu0  ;;  %v11746_v57 = vpop.f32.mrf.mxu1 }
 0x1bb   : > { %9721 = vmatprep.mubr.msk.bf16.mxu1 %vm1451_vm8, %v7312_v4  ;;  %v7321_v39 = vrot.slane %v7313_v59, %v10046_v17  ;;  %v8207_v52 = vcombine.low %v8199_v15, %v8206_v46  ;;  %v6853_v32 = vshrl.u32 %v12879_v12, 16  ;;  %v6856_v47 = vshll.u32 %v12879_v12, 16  ;;  %12886 = vst [vmem:[#allocation15_spill] sm:$0xff] %v11744_v31  ;;  %v12887_v15 = vld [vmem:[#allocation31_spill] sm:$0xff]  ;;  %v12888_v46 = vld [vmem:[#allocation30_spill] sm:$0xff] }
 0x1bc   : > { %v6831_v30 = vsel %vm10065_vm7, %v6826_v0, %v6830_v34  ;;  %v6836_v8 = vrot.slane %v6835_v56, 2  ;;  %v6844_v58 = vrot.slane %v6842_v38, 6  ;;  %v6850_v24 = vrot.slane %v6848_v13, 7  ;;  %v12883_v34 = vld [vmem:[#allocation24_spill] sm:$0xff] }
 0x1bd   : > { %9748 = vmatmul.mubr.msk.bf16.vlgmr.msra.gmra.mxu0 %vm1451_vm8, %v8207_v52  ;;  %v6855_v41 = vrot.slane %v6853_v32, 6  ;;  %v6858_v2 = vrot.slane %v6856_v47, 7  ;;  %v6862_v11 = vshll.u32 %v12880_v27, 16  ;;  %v6866_v5 = vshrl.u32 %v12880_v27, 16  ;;  %v12889_v47 = vld [vmem:[#allocation25_spill] sm:$0xff]  ;;  %v11765_v27 = vpop.f32.mrf.mxu1 }
 0x1be   : > { %v6841_v48 = vsel %vm10065_vm7, %v6836_v8, %v6840_v3  ;;  %v6845_v42 = vor.u32 %v6844_v58, %v6840_v3  ;;  %v6872_v35 = vshll.u32 %v12882_v63, 16  ;;  %v6876_v60 = vshrl.u32 %v12882_v63, 16 }
 0x1bf   : > { %v7314_v54 = vcombine.low %v6831_v30, %v6841_v48  ;;  %v6859_v29 = vor.u32 %v6858_v2, %v6855_v41  ;;  %v6864_v7 = vrot.slane %v6862_v11, 7  ;;  %v6868_v55 = vrot.slane %v6866_v5, 6  ;;  %v11763_v2 = vpop.f32.mrf.mxu0 }
 0x1c0   : > { %v6846_v37 = vrot.slane %v6845_v42, 2  ;;  %v6874_v50 = vrot.slane %v6872_v35, 7  ;;  %v6878_v9 = vrot.slane %v6876_v60, 6  ;;  %v6882_v22 = vshll.u32 %v12883_v34, 16 }
 0x1c1   : > { %v7328_v6 = vrot.slane %v7314_v54, %v10046_v17  ;;  %v6860_v61 = vrot.slane %v6859_v29, 2  ;;  %v6869_v43 = vor.u32 %v6868_v55, %v6864_v7  ;;  %v8208_v23 = vcombine.low %v12885_v26, %v12884_v40  ;;  %v12891_v29 = vld [vmem:[#allocation27_spill] sm:$0xff]  ;;  %v11778_v26 = vpop.f32.mrf.mxu0 }
 0x1c2   : > { %v6851_v3 = vsel %vm10065_vm7, %v6846_v37, %v6850_v24  ;;  %v6879_v4 = vor.u32 %v6878_v9, %v6874_v50  ;;  %v6884_v59 = vrot.slane %v6882_v22, 7  ;;  %v8209_v0 = vcombine.low %v12888_v46, %v12887_v15  ;;  %v12892_v37 = vld [vmem:[#allocation32_spill] sm:$0xff]  ;;  %v12893_v9 = vld [vmem:[#allocation26_spill] sm:$0xff] }
 0x1c3   : > { %v7329_v56 = vcombine.low %v7321_v39, %v7328_v6  ;;  %v6865_v38 = vsel %vm10065_vm7, %v6860_v61, %v6864_v7  ;;  %v6870_v51 = vrot.slane %v6869_v43, 2  ;;  %v8216_v13 = vrot.slane %v8208_v23, %v10046_v17  ;;  %v12890_v39 = vld [vmem:[#allocation29_spill] sm:$0xff]  ;;  %v9363_v40 = vld.sshfl [vmem:[%s10027_s9 + $0x30] sm:$0x32 pattern:$0x76325410]  ;;  %v11780_v23 = vpop.f32.mrf.mxu1 }
 0x1c4   : > { %v6880_v52 = vrot.slane %v6879_v4, 2  ;;  %v7330_v12 = vcombine.low %v6851_v3, %v6865_v38  ;;  %v8223_v32 = vrot.slane %v8209_v0, %v10046_v17  ;;  %v6887_v30 = vshrl.u32 %v12889_v47, 16 }
 0x1c5   : > { %9722 = vmatmul.mubr.msk.bf16.vlgmr.msra.gmra.mxu1 %vm1451_vm8, %v7329_v56  ;;  %v6875_v8 = vsel %vm10065_vm7, %v6870_v51, %v6874_v50  ;;  %v6890_v58 = vshll.u32 %v12889_v47, 16  ;;  %v6896_v24 = vshll.u32 %v12890_v39, 16  ;;  %v6900_v41 = vshrl.u32 %v12890_v39, 16  ;;  %v11782_v51 = vpop.f32.mrf.mxu0 }
 0x1c6   : > { %v6885_v11 = vsel %vm10065_vm7, %v6880_v52, %v6884_v59  ;;  %v7338_v5 = vrot.slane %v7330_v12, %v10046_v17  ;;  %v8224_v48 = vcombine.low %v8216_v13, %v8223_v32  ;;  %v6889_v42 = vrot.slane %v6887_v30, 6  ;;  %v11784_v13 = vpop.f32.mrf.mxu1  ;;  %v12895_v12 = vld [vmem:[#allocation36_spill] sm:$0xff] }
 0x1c7   : > { %v7331_v63 = vcombine.low %v6875_v8, %v6885_v11  ;;  %v6892_v35 = vrot.slane %v6890_v58, 7  ;;  %v6898_v60 = vrot.slane %v6896_v24, 7  ;;  %v6902_v54 = vrot.slane %v6900_v41, 6  ;;  %12894 = vst [vmem:[#allocation8_spill] sm:$0xff] %v11784_v13  ;;  %v12896_v24 = vld [vmem:[#allocation39_spill] sm:$0xff]  ;;  %v12897_v41 = vld [vmem:[#allocation38_spill] sm:$0xff] }
 0x1c8   : > { %9751 = vmatprep.mubr.msk.bf16.mxu0 %vm1451_vm8, %v8224_v48  ;;  %v6906_v7 = vshll.u32 %v12891_v29, 16  ;;  %v6910_v55 = vshrl.u32 %v12891_v29, 16  ;;  %v6916_v50 = vshll.u32 %v12892_v37, 16  ;;  %v6921_v34 = vshrl.u32 %v12893_v9, 16  ;;  %v11797_v48 = vpop.f32.mrf.mxu0 }
 0x1c9   : > { %v7345_v22 = vrot.slane %v7331_v63, %v10046_v17  ;;  %v6893_v6 = vor.u32 %v6892_v35, %v6889_v42  ;;  %v6903_v61 = vor.u32 %v6902_v54, %v6898_v60  ;;  %v6924_v43 = vshll.u32 %v12893_v9, 16  ;;  %v11799_v42 = vpop.f32.mrf.mxu1 }
 0x1ca   : > { %v6908_v3 = vrot.slane %v6906_v7, 7  ;;  %v6912_v4 = vrot.slane %v6910_v55, 6  ;;  %v6918_v59 = vrot.slane %v6916_v50, 7  ;;  %v6923_v15 = vrot.slane %v6921_v34, 6  ;;  %12898 = vst [vmem:[#allocation9_spill] sm:$0xff] %v11799_v42  ;;  %v11809_v9 = vpop.f32.mrf.mxu0 }
 0x1cb   : > { %v7346_v46 = vcombine.low %v7338_v5, %v7345_v22  ;;  %v6894_v0 = vrot.slane %v6893_v6, 2  ;;  %v6904_v56 = vrot.slane %v6903_v61, 2  ;;  %v6926_v38 = vrot.slane %v6924_v43, 7  ;;  %v11807_v50 = vpop.f32.mrf.mxu1  ;;  %12900 = vst [vmem:[#allocation13_spill] sm:$0xff] %v11809_v9 }
 0x1cc   : > { %v6913_v52 = vor.u32 %v6912_v4, %v6908_v3  ;;  %v6930_v32 = vshll.u32 %v12895_v12, 16  ;;  %v7827_v47 = vcombine.high %v9363_v40, %v9363_v40  ;;  %v9391_v30 = vrot.slane %v9363_v40, 9  ;;  %v11795_v5 = vld.sshfl [vmem:[%s10027_s9 + $0x3c] sm:$0x13 pattern:$0x76325410] }
 0x1cd   : > { %9725 = vmatprep.mubr.msk.bf16.mxu1 %vm1451_vm8, %v7346_v46  ;;  %v6899_v8 = vsel %vm10065_vm7, %v6894_v0, %v6898_v60  ;;  %v6909_v58 = vsel %vm10065_vm7, %v6904_v56, %v6908_v3  ;;  %v6927_v39 = vor.u32 %v6926_v38, %v6923_v15  ;;  %v8226_v11 = vcombine.low %v12897_v41, %v12896_v24  ;;  %v11820_v15 = vpop.f32.mrf.mxu1  ;;  %v11822_v46 = vpop.f32.mrf.mxu0 }
 0x1ce   : > { %v6914_v63 = vrot.slane %v6913_v52, 2  ;;  %v6932_v35 = vrot.slane %v6930_v32, 7  ;;  %v7347_v54 = vcombine.low %v6899_v8, %v6909_v58  ;;  %v8054_v29 = vrot.slane %v7827_v47, 7  ;;  %12899 = vst [vmem:[#allocation12_spill] sm:$0xff] %v11807_v50  ;;  %12901 = vst [vmem:[#allocation19_spill] sm:$0xff] %v11820_v15  ;;  %v12904_v52 = vld [vmem:[#allocation34_spill] sm:$0xff] }
 0x1cf   : > { %v6928_v7 = vrot.slane %v6927_v39, 2  ;;  %v8240_v60 = vrot.slane %v8226_v11, %v10046_v17  ;;  %v11804_v55 = vcombine.high %v11795_v5, %v11795_v5  ;;  %v6934_v37 = vshrl.u32 %v12895_v12, 16  ;;  %12902 = vst [vmem:[#allocation14_spill] sm:$0xff] %v11822_v46  ;;  %v11829_v58 = vpop.f32.mrf.mxu1  ;;  %v11831_v39 = vpop.f32.mrf.mxu0 }
 0x1d0   : > { %v6919_v34 = vsel %vm10065_vm7, %v6914_v63, %v6918_v59  ;;  %v7355_v22 = vrot.slane %v7347_v54, %v10046_v17  ;;  %v8055_v6 = vsel %vm10511_vm15, %v9391_v30, %v8054_v29  ;;  %v8056_v61 = vrot.slane %v8054_v29, 2  ;;  %v12903_v59 = vld [vmem:[#allocation33_spill] sm:$0xff]  ;;  %12905 = vst [vmem:[#allocation22_spill] sm:$0xff] %v11829_v58  ;;  %12906 = vst [vmem:[#allocation20_spill] sm:$0xff] %v11831_v39 }
 0x1d1   : > { %v6933_v43 = vsel %vm10065_vm7, %v6928_v7, %v6932_v35  ;;  %v6936_v40 = vrot.slane %v6934_v37, 6  ;;  %v6940_v3 = vshll.u32 %v11795_v5, 16  ;;  %v6944_v4 = vshrl.u32 %v11795_v5, 16  ;;  %v12907_v37 = vld [vmem:[#allocation37_spill] sm:$0xff] }
 0x1d2   : > { %v7348_v0 = vcombine.low %v6919_v34, %v6933_v43  ;;  %v8058_v56 = vsel %vm10511_vm15, %v8056_v61, %v12903_v59  ;;  %v6950_v38 = vshll.u32 %v11804_v55, 16  ;;  %v6955_v12 = vshrl.u32 %v12904_v52, 16  ;;  %v11840_v61 = vpop.f32.mrf.mxu0 }
 0x1d3   : > { %v8225_v32 = vcombine.low %v8055_v6, %v8058_v56  ;;  %v6937_v47 = vor.u32 %v6936_v40, %v6932_v35  ;;  %v6942_v30 = vrot.slane %v6940_v3, 7  ;;  %v6946_v8 = vrot.slane %v6944_v4, 6  ;;  %v9367_v6 = vld.sshfl [vmem:[%s10027_s9 + $0x40] sm:$0x32 pattern:$0x76325410]  ;;  %v11838_v35 = vpop.f32.mrf.mxu1 }
 0x1d4   : > { %v7362_v24 = vrot.slane %v7348_v0, %v10046_v17  ;;  %v6952_v41 = vrot.slane %v6950_v38, 7  ;;  %v6957_v11 = vrot.slane %v6955_v12, 6  ;;  %v6958_v63 = vshll.u32 %v12904_v52, 16  ;;  %12908 = vst [vmem:[#allocation16_spill] sm:$0xff] %v11838_v35  ;;  %12909 = vst [vmem:[#allocation17_spill] sm:$0xff] %v11840_v61  ;;  %v11848_v12 = vpop.f32.mrf.mxu0 }
 0x1d5   : > { %v8233_v54 = vrot.slane %v8225_v32, %v10046_v17  ;;  %v6938_v29 = vrot.slane %v6937_v47, 2  ;;  %v6947_v7 = vor.u32 %v6946_v8, %v6942_v30  ;;  %v6964_v34 = vshll.u32 %v12907_v37, 16  ;;  %v11846_v52 = vpop.f32.mrf.mxu1  ;;  %12911 = vst [vmem:[#allocation18_spill] sm:$0xff] %v11848_v12 }
 0x1d6   : > { %v7363_v43 = vcombine.low %v7355_v22, %v7362_v24  ;;  %v6960_v40 = vrot.slane %v6958_v63, 7  ;;  %v6968_v3 = vshrl.u32 %v12907_v37, 16  ;;  %v6974_v4 = vshll.u32 %v11470_v44, 16  ;;  %12910 = vst [vmem:[#allocation21_spill] sm:$0xff] %v11846_v52 }
 0x1d7   : > { %v8241_v0 = vcombine.low %v8233_v54, %v8240_v60  ;;  %v6943_v59 = vsel %vm10065_vm7, %v6938_v29, %v6942_v30  ;;  %v6948_v56 = vrot.slane %v6947_v7, 2  ;;  %v6966_v38 = vrot.slane %v6964_v34, 7  ;;  %v11852_v8 = vld.sshfl [vmem:[%s10027_s9 + $0x44] sm:$0x13 pattern:$0x76325410]  ;;  %v11859_v54 = vpop.f32.mrf.mxu1  ;;  %v11861_v29 = vpop.f32.mrf.mxu0 }
 0x1d8   : > { %9726 = vmatmul.mubr.msk.bf16.gmra.mxu1 %vm1451_vm8, %v7363_v43  ;;  %v6961_v32 = vor.u32 %v6960_v40, %v6957_v11  ;;  %v6970_v22 = vrot.slane %v6968_v3, 6  ;;  %v6976_v47 = vrot.slane %v6974_v4, 7  ;;  %v7859_v24 = vcombine.high %v9367_v6, %v9367_v6  ;;  %12912 = vst [vmem:[#allocation24_spill] sm:$0xff] %v11859_v54  ;;  %12913 = vst [vmem:[#allocation28_spill] sm:$0xff] %v11861_v29  ;;  %v12914_v40 = vld [vmem:[#allocation35_spill] sm:$0xff] }
 0x1d9   : > { %9752 = vmatmul.mubr.msk.bf16.gmra.mxu0 %vm1451_vm8, %v8241_v0  ;;  %v6953_v60 = vsel %vm10065_vm7, %v6948_v56, %v6952_v41  ;;  %v8067_v30 = vrot.slane %v11795_v5, 7  ;;  %v8070_v63 = vrot.slane %v11804_v55, 7  ;;  %v9393_v34 = vrot.slane %v9367_v6, 9  ;;  %v11869_v55 = vpop.f32.mrf.mxu1  ;;  %v11871_v56 = vpop.f32.mrf.mxu0 }
 0x1da   : > { %v6962_v7 = vrot.slane %v6961_v32, 2  ;;  %v6971_v11 = vor.u32 %v6970_v22, %v6966_v38  ;;  %v7364_v37 = vcombine.low %v6943_v59, %v6953_v60  ;;  %v9292_v43 = vld.sshfl [vmem:[%s10027_s9 + $0x48] sm:$0x33 pattern:$0x76325410]  ;;  %v12915_v3 = vrot.slane %v12914_v40, 2 }
 0x1db   : > { %v8069_v41 = vrot.slane %v8067_v30, 2  ;;  %v8074_v0 = vrot.slane %v7859_v24, 7  ;;  %v8077_v5 = vrot.slane %v11852_v8, 7  ;;  %12916 = vst [vmem:[#allocation23_spill] sm:$0xff] %v11869_v55  ;;  %12917 = vst [vmem:[#allocation31_spill] sm:$0xff] %v11871_v56  ;;  %v6613_v40 = vcombine.high %v9292_v43, %v9292_v43  ;;  %v11885_v31 = vpop.f32.mrf.mxu0 }
 0x1dc   : > { %v8068_v4 = vsel %vm10511_vm15, %v12915_v3, %v8067_v30  ;;  %v6967_v32 = vsel %vm10065_vm7, %v6962_v7, %v6966_v38  ;;  %v6972_v22 = vrot.slane %v6971_v11, 2  ;;  %v7372_v6 = vrot.slane %v7364_v37, %v10046_v17  ;;  %v11881_v24 = vld.sshfl [vmem:[%s10027_s9 + $0x4c] sm:$0x13 pattern:$0x76325410]  ;;  %v11883_v3 = vpop.f32.mrf.mxu1  ;;  %12919 = vst [vmem:[#allocation25_spill] sm:$0xff] %v11885_v31 }
 0x1dd   : > { %v8071_v59 = vsel %vm10511_vm15, %v8069_v41, %v8070_v63  ;;  %v8075_v60 = vsel %vm10511_vm15, %v9393_v34, %v8074_v0  ;;  %v8076_v30 = vrot.slane %v8074_v0, 2  ;;  %12918 = vst [vmem:[#allocation30_spill] sm:$0xff] %v11883_v3  ;;  %v11891_v11 = vcombine.high %v11881_v24, %v11881_v24  ;;  %v12920_v41 = vld [vmem:[#allocation40_spill] sm:$0xff]  ;;  %v11899_v31 = vpop.f32.mrf.mxu0 }
 0x1de   : > { %v6977_v38 = vsel %vm10065_vm7, %v6972_v22, %v6976_v47  ;;  %v8242_v7 = vcombine.low %v8068_v4, %v8071_v59  ;;  %v6978_v63 = vshrl.u32 %v11470_v44, 16  ;;  %v6984_v0 = vshll.u32 %v12920_v41, 16  ;;  %v11897_v3 = vpop.f32.mrf.mxu1  ;;  %12921 = vst [vmem:[#allocation29_spill] sm:$0xff] %v11899_v31 }
 0x1df   : > { %v7365_v37 = vcombine.low %v6967_v32, %v6977_v38  ;;  %v8078_v34 = vsel %vm10511_vm15, %v8076_v30, %v8077_v5  ;;  %v6989_v56 = vshrl.u32 %v9292_v43, 16  ;;  %v6992_v29 = vshll.u32 %v9292_v43, 16  ;;  %v11905_v30 = vpop.f32.mrf.mxu0  ;;  %v9369_v52 = vld.sshfl [vmem:[%s10027_s9 + $0x48] sm:$0x32 pattern:$0x76325410] }
 0x1e0   : > { %v8243_v22 = vcombine.low %v8075_v60, %v8078_v34  ;;  %v8250_v4 = vrot.slane %v8242_v7, %v10046_v17  ;;  %v6980_v59 = vrot.slane %v6978_v63, 6  ;;  %v6986_v44 = vrot.slane %v6984_v0, 7  ;;  %v11903_v36 = vpop.f32.mrf.mxu1  ;;  %12922 = vst [vmem:[#allocation27_spill] sm:$0xff] %v11905_v30 }
 0x1e1   : > { %v7379_v55 = vrot.slane %v7365_v37, %v10046_v17  ;;  %v6991_v32 = vrot.slane %v6989_v56, 6  ;;  %v6998_v38 = vshll.u32 %v6613_v40, 16  ;;  %v6994_v54 = vrot.slane %v6992_v29, 7  ;;  %v11913_v56 = vpop.f32.mrf.mxu0 }
 0x1e2   : > { %v8257_v41 = vrot.slane %v8243_v22, %v10046_v17  ;;  %v6981_v12 = vor.u32 %v6980_v59, %v6976_v47  ;;  %v7002_v16 = vshrl.u32 %v6613_v40, 16  ;;  %v7008_v7 = vshll.u32 %v11881_v24, 16  ;;  %v11911_v63 = vpop.f32.mrf.mxu1  ;;  %12923 = vst [vmem:[#allocation32_spill] sm:$0xff] %v11913_v56 }
 0x1e3   : > { %v7380_v60 = vcombine.low %v7372_v6, %v7379_v55  ;;  %v7000_v34 = vrot.slane %v6998_v38, 7  ;;  %v7012_v43 = vshrl.u32 %v11881_v24, 16  ;;  %v6995_v62 = vor.u32 %v6994_v54, %v6991_v32  ;;  %v11921_v22 = vpop.f32.mrf.mxu0 }
 0x1e4   : > { %v8258_v37 = vcombine.low %v8250_v4, %v8257_v41  ;;  %v6982_v0 = vrot.slane %v6981_v12, 2  ;;  %v7004_v61 = vrot.slane %v7002_v16, 6  ;;  %v7010_v47 = vrot.slane %v7008_v7, 7  ;;  %v11919_v6 = vpop.f32.mrf.mxu1  ;;  %12924 = vst [vmem:[#allocation26_spill] sm:$0xff] %v11921_v22 }
 0x1e5   : > { %9729 = vmatprep.mubr.msk.bf16.mxu1 %vm1451_vm8, %v7380_v60  ;;  %v7014_v29 = vrot.slane %v7012_v43, 6  ;;  %v7018_v40 = vshll.u32 %v11891_v11, 16  ;;  %v7867_v55 = vcombine.high %v11852_v8, %v11852_v8  ;;  %v6996_v54 = vrot.slane %v6995_v62, 2  ;;  %v11928_v8 = vpop.f32.mrf.mxu0 }
 0x1e6   : > { %9755 = vmatprep.mubr.msk.bf16.mxu0 %vm1451_vm8, %v8258_v37  ;;  %v6987_v12 = vsel %vm10065_vm7, %v6982_v0, %v6986_v44  ;;  %v7005_v16 = vor.u32 %v7004_v61, %v7000_v34  ;;  %v7875_v4 = vcombine.high %v9369_v52, %v9369_v52  ;;  %v8079_v38 = vrot.slane %v8077_v5, 2  ;;  %v11926_v60 = vpop.f32.mrf.mxu1  ;;  %12925 = vst [vmem:[#allocation36_spill] sm:$0xff] %v11928_v8  ;;  %v9294_v0 = vld.sshfl [vmem:[%s10027_s9 + $0x50] sm:$0x33 pattern:$0x76325410] }
 0x1e7   : > { %v7015_v59 = vor.u32 %v7014_v29, %v7010_v47  ;;  %v7020_v32 = vrot.slane %v7018_v40, 7  ;;  %v8080_v41 = vrot.slane %v7867_v55, 7  ;;  %v7001_v7 = vsel %vm10065_vm7, %v6996_v54, %v7000_v34  ;;  %v11938_v40 = vpop.f32.mrf.mxu0 }
 0x1e8   : > { %v7006_v43 = vrot.slane %v7005_v16, 2  ;;  %v9394_v37 = vrot.slane %v9369_v52, 9  ;;  %v8084_v39 = vrot.slane %v7875_v4, 7  ;;  %v7381_v62 = vcombine.low %v6987_v12, %v7001_v7  ;;  %v11936_v29 = vpop.f32.mrf.mxu1  ;;  %12926 = vst [vmem:[#allocation39_spill] sm:$0xff] %v11938_v40 }
 0x1e9   : > { %v7016_v44 = vrot.slane %v7015_v59, 2  ;;  %v8081_v61 = vsel %vm10511_vm15, %v8079_v38, %v8080_v41  ;;  %v8087_v5 = vrot.slane %v11881_v24, 7  ;;  %v8090_v54 = vrot.slane %v11891_v11, 7  ;;  %v11954_v7 = vpop.f32.mrf.mxu0 }
 0x1ea   : > { %v7011_v55 = vsel %vm10065_vm7, %v7006_v43, %v7010_v47  ;;  %v8085_v52 = vsel %vm10511_vm15, %v9394_v37, %v8084_v39  ;;  %v8086_v34 = vrot.slane %v8084_v39, 2  ;;  %v9296_v12 = vld.sshfl [vmem:[%s10027_s9 + $0x58] sm:$0x33 pattern:$0x76325410]  ;;  %v7389_v24 = vrot.slane %v7381_v62, %v10046_v17  ;;  %v11952_v41 = vpop.f32.mrf.mxu1  ;;  %12927 = vst [vmem:[#allocation38_spill] sm:$0xff] %v11954_v7 }
 0x1eb   : > { %v7021_v16 = vsel %vm10065_vm7, %v7016_v44, %v7020_v32  ;;  %v8089_v4 = vrot.slane %v8087_v5, 2  ;;  %v8259_v59 = vcombine.low %v8081_v61, %v8085_v52  ;;  %v11950_v38 = vld.sshfl [vmem:[%s10027_s9 + $0x54] sm:$0x13 pattern:$0x76325410]  ;;  %v6629_v43 = vcombine.high %v9294_v0, %v9294_v0 }
 0x1ec   : > { %v7382_v47 = vcombine.low %v7011_v55, %v7021_v16  ;;  %v8088_v39 = vsel %vm10511_vm15, %v8086_v34, %v8087_v5  ;;  %v11960_v11 = vcombine.high %v11950_v38, %v11950_v38  ;;  %v11965_v44 = vcombine.high %v9296_v12, %v9296_v12  ;;  %v11967_v61 = vpop.f32.mrf.mxu1  ;;  %v11969_v55 = vpop.f32.mrf.mxu0 }
 0x1ed   : > { %v8091_v32 = vsel %vm10511_vm15, %v8089_v4, %v8090_v54  ;;  %v8267_v37 = vrot.slane %v8259_v59, %v10046_v17  ;;  %v7023_v62 = vshrl.u32 %v9294_v0, 16  ;;  %12928 = vst [vmem:[#allocation33_spill] sm:$0xff] %v11969_v55  ;;  %v7026_v34 = vshll.u32 %v9294_v0, 16 }
 0x1ee   : > { %v7396_v5 = vrot.slane %v7382_v47, %v10046_v17  ;;  %v8260_v52 = vcombine.low %v8088_v39, %v8091_v32  ;;  %v7032_v16 = vshll.u32 %v6629_v43, 16  ;;  %v7036_v10 = vshrl.u32 %v6629_v43, 16  ;;  %v11974_v4 = vpop.f32.mrf.mxu1  ;;  %v11976_v59 = vpop.f32.mrf.mxu0  ;;  %v9371_v47 = vld.sshfl [vmem:[%s10027_s9 + $0x50] sm:$0x32 pattern:$0x76325410] }
 0x1ef   : > { %v7025_v35 = vrot.slane %v7023_v62, 6  ;;  %v7042_v46 = vshll.u32 %v11950_v38, 16  ;;  %v7046_v54 = vshrl.u32 %v11950_v38, 16  ;;  %12929 = vst [vmem:[#allocation34_spill] sm:$0xff] %v11976_v59  ;;  %v7028_v9 = vrot.slane %v7026_v34, 7 }
 0x1f0   : > { %v7397_v58 = vcombine.low %v7389_v24, %v7396_v5  ;;  %v8274_v21 = vrot.slane %v8260_v52, %v10046_v17  ;;  %v7034_v15 = vrot.slane %v7032_v16, 7  ;;  %v7038_v39 = vrot.slane %v7036_v10, 6  ;;  %v11981_v62 = vpop.f32.mrf.mxu1  ;;  %v11983_v33 = vpop.f32.mrf.mxu0  ;;  %v9373_v59 = vld.sshfl [vmem:[%s10027_s9 + $0x58] sm:$0x32 pattern:$0x76325410] }
 0x1f1   : > { %v7044_v0 = vrot.slane %v7042_v46, 7  ;;  %v7048_v32 = vrot.slane %v7046_v54, 6  ;;  %v7052_v43 = vshll.u32 %v11960_v11, 16  ;;  %12930 = vst [vmem:[#allocation37_spill] sm:$0xff] %v11983_v33  ;;  %v7029_v25 = vor.u32 %v7028_v9, %v7025_v35 }
 0x1f2   : > { %9730 = vmatmul.mubr.msk.bf16.gmra.mxu1 %vm1451_vm8, %v7397_v58  ;;  %v8275_v50 = vcombine.low %v8267_v37, %v8274_v21  ;;  %v7057_v24 = vshrl.u32 %v9296_v12, 16  ;;  %v7060_v5 = vshll.u32 %v9296_v12, 16  ;;  %v7039_v52 = vor.u32 %v7038_v39, %v7034_v15  ;;  %v11988_v46 = vpop.f32.mrf.mxu1  ;;  %v11990_v54 = vpop.f32.mrf.mxu0 }
 0x1f3   : > { %v7049_v34 = vor.u32 %v7048_v32, %v7044_v0  ;;  %v7054_v16 = vrot.slane %v7052_v43, 7  ;;  %v7066_v10 = vshll.u32 %v11965_v44, 16  ;;  %12931 = vst [vmem:[#allocation35_spill] sm:$0xff] %v11990_v54  ;;  %v7030_v55 = vrot.slane %v7029_v25, 2 }
 0x1f4   : > { %9756 = vmatmul.mubr.msk.bf16.gmra.mxu0 %vm1451_vm8, %v8275_v50  ;;  %v7059_v33 = vrot.slane %v7057_v24, 6  ;;  %v7062_v7 = vrot.slane %v7060_v5, 7  ;;  %v7891_v21 = vcombine.high %v9371_v47, %v9371_v47  ;;  %v7040_v9 = vrot.slane %v7039_v52, 2  ;;  %v11995_v37 = vpop.f32.mrf.mxu1  ;;  %v11997_v39 = vpop.f32.mrf.mxu0 }
 0x1f5   : > { %v7050_v58 = vrot.slane %v7049_v34, 2  ;;  %v11993_v35 = vrot.slane %v7066_v10, 7  ;;  %v7907_v12 = vcombine.high %v9373_v59, %v9373_v59  ;;  %12932 = vst [vmem:[#allocation40_spill] sm:$0xff] %v11997_v39  ;;  %v7035_v32 = vsel %vm10065_vm7, %v7030_v55, %v7034_v15 }
 0x1f6   : > { %v7063_v43 = vor.u32 %v7062_v7, %v7059_v33  ;;  %v9395_v50 = vrot.slane %v9371_v47, 9  ;;  %v8094_v25 = vrot.slane %v7891_v21, 7  ;;  %v7045_v24 = vsel %vm10065_vm7, %v7040_v9, %v7044_v0  ;;  %v9298_v10 = vld.sshfl [vmem:[%s10027_s9 + $0x60] sm:$0x33 pattern:$0x76325410]  ;;  %v12008_v54 = vpop.f32.mrf.mxu1  ;;  %v12010_v39 = vpop.f32.mrf.mxu0 }
 0x1f7   : > { %v7055_v5 = vsel %vm10065_vm7, %v7050_v58, %v7054_v16  ;;  %v8097_v52 = vrot.slane %v11950_v38, 7  ;;  %v8100_v34 = vrot.slane %v11960_v11, 7  ;;  %12933 = vst [vmem:[#allocation43_spill] sm:$0xff] %v12010_v39  ;;  %v7398_v15 = vcombine.low %v7035_v32, %v7045_v24 }
 0x1f8   : > { %v7064_v40 = vrot.slane %v7063_v43, 2  ;;  %v8095_v33 = vsel %vm10511_vm15, %v9395_v50, %v8094_v25  ;;  %v8096_v7 = vrot.slane %v8094_v25, 2  ;;  %v12015_v55 = vld.sshfl [vmem:[%s10027_s9 + $0x5c] sm:$0x13 pattern:$0x76325410]  ;;  %v12023_v11 = vpop.f32.mrf.mxu1  ;;  %v12025_v21 = vpop.f32.mrf.mxu0  ;;  %v6661_v32 = vcombine.high %v9298_v10, %v9298_v10 }
 0x1f9   : > { %v8099_v47 = vrot.slane %v8097_v52, 2  ;;  %v9396_v0 = vrot.slane %v9373_v59, 9  ;;  %v12017_v16 = vrot.slane %v7907_v12, 7  ;;  %v12021_v38 = vcombine.high %v12015_v55, %v12015_v55  ;;  %12934 = vst [vmem:[#allocation44_spill] sm:$0xff] %v12025_v21 }
 0x1fa   : > { %v7069_v9 = vsel %vm10065_vm7, %v7064_v40, %v11993_v35  ;;  %v7406_v58 = vrot.slane %v7398_v15, %v10046_v17  ;;  %v8098_v59 = vsel %vm10511_vm15, %v8096_v7, %v8097_v52  ;;  %v12038_v24 = vpop.f32.mrf.mxu1  ;;  %v12040_v21 = vpop.f32.mrf.mxu0  ;;  %v12043_v15 = vld.sshfl [vmem:[%s10027_s9 + $0x64] sm:$0x13 pattern:$0x76325410]  ;;  %v7070_v52 = vshrl.u32 %v11965_v44, 16 }
 0x1fb   : > { %v7399_v12 = vcombine.low %v7055_v5, %v7069_v9  ;;  %v8101_v43 = vsel %vm10511_vm15, %v8099_v47, %v8100_v34  ;;  %v8105_v50 = vsel %vm10511_vm15, %v9396_v0, %v12017_v16  ;;  %v8276_v25 = vcombine.low %v8095_v33, %v8098_v59  ;;  %12935 = vst [vmem:[#allocation45_spill] sm:$0xff] %v12038_v24  ;;  %v9375_v9 = vld.sshfl [vmem:[%s10027_s9 + $0x60] sm:$0x32 pattern:$0x76325410] }
 0x1fc   : > { %12936 = vst [vmem:[#allocation46_spill] sm:$0xff] %v12040_v21  ;;  %v8277_v40 = vcombine.low %v8101_v43, %v8105_v50  ;;  %v7076_v7 = vshll.u32 %v12015_v55, 16  ;;  %v7080_v5 = vshrl.u32 %v12015_v55, 16  ;;  %v7086_v0 = vshll.u32 %v12021_v38, 16  ;;  %v12052_v59 = vpop.f32.mrf.mxu1  ;;  %v12054_v21 = vpop.f32.mrf.mxu0 }
 0x1fd   : > { %v7413_v34 = vrot.slane %v7399_v12, %v10046_v17  ;;  %v8284_v47 = vrot.slane %v8276_v25, %v10046_v17  ;;  %v7091_v33 = vshrl.u32 %v9298_v10, 16  ;;  %12937 = vst [vmem:[#allocation47_spill] sm:$0xff] %v12052_v59  ;;  %12938 = vst [vmem:[#allocation48_spill] sm:$0xff] %v12054_v21  ;;  %v7072_v50 = vrot.slane %v7070_v52, 6 }
 0x1fe   : > { %v8291_v43 = vrot.slane %v8277_v40, %v10046_v17  ;;  %v7078_v44 = vrot.slane %v7076_v7, 7  ;;  %v7082_v39 = vrot.slane %v7080_v5, 6  ;;  %v7088_v22 = vrot.slane %v7086_v0, 7  ;;  %v12057_v12 = vpop.f32.mrf.mxu1  ;;  %v12059_v25 = vpop.f32.mrf.mxu0 }
 0x1ff   : > { %v7414_v8 = vcombine.low %v7406_v58, %v7413_v34  ;;  %v7093_v42 = vrot.slane %v7091_v33, 6  ;;  %v7094_v56 = vshll.u32 %v9298_v10, 16  ;;  %12939 = vst [vmem:[#allocation49_spill] sm:$0xff] %v12057_v12  ;;  %12940 = vst [vmem:[#allocation50_spill] sm:$0xff] %v12059_v25  ;;  %v7073_v31 = vor.u32 %v7072_v50, %v11993_v35 }
 0x200   : > { %v8292_v30 = vcombine.low %v8284_v47, %v8291_v43  ;;  %v7083_v24 = vor.u32 %v7082_v39, %v7078_v44  ;;  %v7100_v59 = vshll.u32 %v6661_v32, 16  ;;  %v7104_v40 = vshrl.u32 %v6661_v32, 16  ;;  %v12064_v58 = vpop.f32.mrf.mxu1  ;;  %v12066_v5 = vpop.f32.mrf.mxu0 }
 0x201   : > { %9733 = vmatprep.mubr.msk.bf16.mxu1 %vm1451_vm8, %v7414_v8  ;;  %v7096_v21 = vrot.slane %v7094_v56, 7  ;;  %v7110_v52 = vshll.u32 %v12043_v15, 16  ;;  %v7923_v7 = vcombine.high %v9375_v9, %v9375_v9  ;;  %12941 = vst [vmem:[#allocation51_spill] sm:$0xff] %v12064_v58  ;;  %12942 = vst [vmem:[#allocation52_spill] sm:$0xff] %v12066_v5  ;;  %v7074_v10 = vrot.slane %v7073_v31, 2 }
 0x202   : > { %9759 = vmatprep.mubr.msk.bf16.mxu0 %vm1451_vm8, %v8292_v30  ;;  %v7084_v34 = vrot.slane %v7083_v24, 2  ;;  %v7102_v47 = vrot.slane %v7100_v59, 7  ;;  %v8106_v35 = vrot.slane %v12017_v16, 2  ;;  %v7106_v0 = vrot.slane %v7104_v40, 6  ;;  %v12071_v32 = vpop.f32.mrf.mxu1  ;;  %v12073_v33 = vpop.f32.mrf.mxu0 }
 0x203   : > { %v7097_v39 = vor.u32 %v7096_v21, %v7093_v42  ;;  %v7112_v8 = vrot.slane %v7110_v52, 7  ;;  %v8107_v56 = vrot.slane %v12015_v55, 7  ;;  %12943 = vst [vmem:[#allocation53_spill] sm:$0xff] %v12071_v32  ;;  %12944 = vst [vmem:[#allocation54_spill] sm:$0xff] %v12073_v33  ;;  %v7079_v43 = vsel %vm10065_vm7, %v7074_v10, %v7078_v44 }
 0x204   : > { %v7089_v30 = vsel %vm10065_vm7, %v7084_v34, %v7088_v22  ;;  %v8110_v31 = vrot.slane %v12021_v38, 7  ;;  %v9397_v24 = vrot.slane %v9375_v9, 9  ;;  %v9300_v16 = vld.sshfl [vmem:[%s10027_s9 + $0x68] sm:$0x33 pattern:$0x76325410]  ;;  %v7107_v21 = vor.u32 %v7106_v0, %v7102_v47  ;;  %v12083_v50 = vpop.f32.mrf.mxu1  ;;  %v12085_v40 = vpop.f32.mrf.mxu0 }
 0x205   : > { %v7098_v42 = vrot.slane %v7097_v39, 2  ;;  %v7415_v59 = vcombine.low %v7079_v43, %v7089_v30  ;;  %v8108_v55 = vsel %vm10511_vm15, %v8106_v35, %v8107_v56  ;;  %12945 = vst [vmem:[#allocation55_spill] sm:$0xff] %v12083_v50  ;;  %12946 = vst [vmem:[#allocation56_spill] sm:$0xff] %v12085_v40  ;;  %v8109_v52 = vrot.slane %v8107_v56, 2 }
 0x206   : > { %v8114_v44 = vrot.slane %v7923_v7, 7  ;;  %v8117_v10 = vrot.slane %v12043_v15, 7  ;;  %v12090_v22 = vcombine.high %v12043_v15, %v12043_v15  ;;  %v7108_v9 = vrot.slane %v7107_v21, 2  ;;  %v12098_v0 = vpop.f32.mrf.mxu1  ;;  %v12100_v43 = vpop.f32.mrf.mxu0 }
 0x207   : > { %v7103_v38 = vsel %vm10065_vm7, %v7098_v42, %v7102_v47  ;;  %v7423_v34 = vrot.slane %v7415_v59, %v10046_v17  ;;  %v12096_v39 = vld.sshfl [vmem:[%s10027_s9 + $0x6c] sm:$0x13 pattern:$0x76325410]  ;;  %v6677_v35 = vcombine.high %v9300_v16, %v9300_v16  ;;  %12947 = vst [vmem:[#allocation57_spill] sm:$0xff] %v12098_v0  ;;  %12948 = vst [vmem:[#allocation58_spill] sm:$0xff] %v12100_v43 }
 0x208   : > { %v8111_v7 = vsel %vm10511_vm15, %v8109_v52, %v8110_v31  ;;  %v8115_v56 = vsel %vm10511_vm15, %v9397_v24, %v8114_v44  ;;  %v8116_v30 = vrot.slane %v8114_v44, 2  ;;  %v12108_v47 = vcombine.high %v12096_v39, %v12096_v39  ;;  %v12114_v43 = vpop.f32.mrf.mxu1  ;;  %v12116_v40 = vpop.f32.mrf.mxu0 }
 0x209   : > { %v7113_v42 = vsel %vm10065_vm7, %v7108_v9, %v7112_v8  ;;  %v8293_v21 = vcombine.low %v8108_v55, %v8111_v7  ;;  %v7114_v59 = vshrl.u32 %v12043_v15, 16  ;;  %v7120_v0 = vshll.u32 %v12090_v22, 16  ;;  %12949 = vst [vmem:[#allocation59_spill] sm:$0xff] %v12114_v43  ;;  %12950 = vst [vmem:[#allocation60_spill] sm:$0xff] %v12116_v40 }
 0x20a   : > { %v7416_v31 = vcombine.low %v7103_v38, %v7113_v42  ;;  %v8118_v24 = vsel %vm10511_vm15, %v8116_v30, %v8117_v10  ;;  %v7125_v52 = vshrl.u32 %v9300_v16, 16  ;;  %v7128_v44 = vshll.u32 %v9300_v16, 16  ;;  %v12121_v7 = vpop.f32.mrf.mxu1  ;;  %v12123_v15 = vpop.f32.mrf.mxu0 }
 0x20b   : > { %v8294_v33 = vcombine.low %v8115_v56, %v8118_v24  ;;  %v8301_v50 = vrot.slane %v8293_v21, %v10046_v17  ;;  %v7116_v9 = vrot.slane %v7114_v59, 6  ;;  %v7122_v55 = vrot.slane %v7120_v0, 7  ;;  %12951 = vst [vmem:[#allocation61_spill] sm:$0xff] %v12121_v7  ;;  %12952 = vst [vmem:[#allocation62_spill] sm:$0xff] %v12123_v15 }
 0x20c   : > { %v7430_v43 = vrot.slane %v7416_v31, %v10046_v17  ;;  %v7127_v5 = vrot.slane %v7125_v52, 6  ;;  %v7130_v40 = vrot.slane %v7128_v44, 7  ;;  %v7134_v38 = vshll.u32 %v6677_v35, 16  ;;  %v12129_v24 = vpop.f32.mrf.mxu1  ;;  %v12131_v21 = vpop.f32.mrf.mxu0 }
 0x20d   : > { %v8308_v42 = vrot.slane %v8294_v33, %v10046_v17  ;;  %v7117_v30 = vor.u32 %v7116_v9, %v7112_v8  ;;  %v7138_v32 = vshrl.u32 %v6677_v35, 16  ;;  %v7144_v16 = vshll.u32 %v12096_v39, 16  ;;  %v9377_v56 = vld.sshfl [vmem:[%s10027_s9 + $0x68] sm:$0x32 pattern:$0x76325410] }
 0x20e   : > { %12953 = vst [vmem:[#allocation63_spill] sm:$0xff] %v12129_v24  ;;  %12954 = vst [vmem:[#allocation64_spill] sm:$0xff] %v12131_v21  ;;  %v7431_v0 = vcombine.low %v7423_v34, %v7430_v43  ;;  %v7131_v59 = vor.u32 %v7130_v40, %v7127_v5  ;;  %v7136_v7 = vrot.slane %v7134_v38, 7  ;;  %v7148_v15 = vshrl.u32 %v12096_v39, 16  ;;  %v12134_v33 = vpop.f32.mrf.mxu1  ;;  %v12136_v8 = vpop.f32.mrf.mxu0 }
 0x20f   : > { %v8309_v31 = vcombine.low %v8301_v50, %v8308_v42  ;;  %v7118_v52 = vrot.slane %v7117_v30, 2  ;;  %v7140_v44 = vrot.slane %v7138_v32, 6  ;;  %v7146_v25 = vrot.slane %v7144_v16, 7  ;;  %12955 = vst [vmem:[#allocation65_spill] sm:$0xff] %v12134_v33  ;;  %12956 = vst [vmem:[#allocation66_spill] sm:$0xff] %v12136_v8 }
 0x210   : > { %9734 = vmatmul.mubr.msk.bf16.gmra.mxu1 %vm1451_vm8, %v7431_v0  ;;  %v7132_v35 = vrot.slane %v7131_v59, 2  ;;  %v7150_v9 = vrot.slane %v7148_v15, 6  ;;  %v7154_v21 = vshll.u32 %v12108_v47, 16  ;;  %v7939_v34 = vcombine.high %v9377_v56, %v9377_v56  ;;  %v12145_v38 = vpop.f32.mrf.mxu1  ;;  %v12147_v42 = vpop.f32.mrf.mxu0 }
 0x211   : > { %9760 = vmatmul.mubr.msk.bf16.gmra.mxu0 %vm1451_vm8, %v8309_v31  ;;  %v7123_v5 = vsel %vm10065_vm7, %v7118_v52, %v7122_v55  ;;  %v7141_v50 = vor.u32 %v7140_v44, %v7136_v7  ;;  %v8119_v40 = vrot.slane %v8117_v10, 2  ;;  %v8120_v32 = vrot.slane %v12090_v22, 7  ;;  %v9302_v43 = vld.sshfl [vmem:[%s10027_s9 + $0x70] sm:$0x33 pattern:$0x76325410] }
 0x212   : > { %12957 = vst [vmem:[#allocation67_spill] sm:$0xff] %v12145_v38  ;;  %12958 = vst [vmem:[#allocation68_spill] sm:$0xff] %v12147_v42  ;;  %v7137_v15 = vsel %vm10065_vm7, %v7132_v35, %v7136_v7  ;;  %v7151_v30 = vor.u32 %v7150_v9, %v7146_v25  ;;  %v7156_v16 = vrot.slane %v7154_v21, 7  ;;  %v9398_v0 = vrot.slane %v9377_v56, 9  ;;  %v12153_v52 = vpop.f32.mrf.mxu1  ;;  %v12155_v22 = vpop.f32.mrf.mxu0 }
 0x213   : > { %v7142_v59 = vrot.slane %v7141_v50, 2  ;;  %v7432_v31 = vcombine.low %v7123_v5, %v7137_v15  ;;  %v8121_v55 = vsel %vm10511_vm15, %v8119_v40, %v8120_v32  ;;  %v8124_v10 = vrot.slane %v7939_v34, 7  ;;  %12959 = vst [vmem:[#allocation69_spill] sm:$0xff] %v12153_v52  ;;  %12960 = vst [vmem:[#allocation70_spill] sm:$0xff] %v12155_v22 }
 0x214   : > { %v7152_v44 = vrot.slane %v7151_v30, 2  ;;  %v8127_v24 = vrot.slane %v12096_v39, 7  ;;  %v8130_v7 = vrot.slane %v12108_v47, 7  ;;  %v6693_v35 = vcombine.high %v9302_v43, %v9302_v43  ;;  %v12167_v50 = vpop.f32.mrf.mxu1  ;;  %v12169_v40 = vpop.f32.mrf.mxu0 }
 0x215   : > { %v7147_v56 = vsel %vm10065_vm7, %v7142_v59, %v7146_v25  ;;  %v7440_v21 = vrot.slane %v7432_v31, %v10046_v17  ;;  %v8125_v9 = vsel %vm10511_vm15, %v9398_v0, %v8124_v10  ;;  %v8126_v34 = vrot.slane %v8124_v10, 2  ;;  %v12165_v5 = vld.sshfl [vmem:[%s10027_s9 + $0x74] sm:$0x13 pattern:$0x76325410]  ;;  %12961 = vst [vmem:[#allocation71_spill] sm:$0xff] %v12167_v50 }
 0x216   : > { %12962 = vst [vmem:[#allocation72_spill] sm:$0xff] %v12169_v40  ;;  %v7157_v39 = vsel %vm10065_vm7, %v7152_v44, %v7156_v16  ;;  %v8129_v47 = vrot.slane %v8127_v24, 2  ;;  %v8310_v32 = vcombine.low %v8121_v55, %v8125_v9  ;;  %v9304_v15 = vld.sshfl [vmem:[%s10027_s9 + $0x78] sm:$0x33 pattern:$0x76325410]  ;;  %v12176_v25 = vcombine.high %v12165_v5, %v12165_v5  ;;  %v12182_v10 = vpop.f32.mrf.mxu1  ;;  %v12184_v58 = vpop.f32.mrf.mxu0 }
 0x217   : > { %v7433_v30 = vcombine.low %v7147_v56, %v7157_v39  ;;  %v8128_v0 = vsel %vm10511_vm15, %v8126_v34, %v8127_v24  ;;  %v12180_v59 = vcombine.high %v9304_v15, %v9304_v15  ;;  %v7159_v31 = vshrl.u32 %v9302_v43, 16  ;;  %12963 = vst [vmem:[#allocation73_spill] sm:$0xff] %v12182_v10  ;;  %12964 = vst [vmem:[#allocation74_spill] sm:$0xff] %v12184_v58 }
 0x218   : > { %v8131_v16 = vsel %vm10511_vm15, %v8129_v47, %v8130_v7  ;;  %v8318_v55 = vrot.slane %v8310_v32, %v10046_v17  ;;  %v7162_v44 = vshll.u32 %v9302_v43, 16  ;;  %v7168_v9 = vshll.u32 %v6693_v35, 16  ;;  %v12190_v12 = vpop.f32.mrf.mxu1  ;;  %v12192_v22 = vpop.f32.mrf.mxu0  ;;  %v9379_v47 = vld.sshfl [vmem:[%s10027_s9 + $0x70] sm:$0x32 pattern:$0x76325410] }
 0x219   : > { %v7447_v56 = vrot.slane %v7433_v30, %v10046_v17  ;;  %v8311_v39 = vcombine.low %v8128_v0, %v8131_v16  ;;  %v7161_v24 = vrot.slane %v7159_v31, 6  ;;  %v7172_v34 = vshrl.u32 %v6693_v35, 16  ;;  %12965 = vst [vmem:[#allocation75_spill] sm:$0xff] %v12190_v12  ;;  %12966 = vst [vmem:[#allocation76_spill] sm:$0xff] %v12192_v22 }
 0x21a   : > { %v7164_v42 = vrot.slane %v7162_v44, 7  ;;  %v7170_v8 = vrot.slane %v7168_v9, 7  ;;  %v7178_v52 = vshll.u32 %v12165_v5, 16  ;;  %v7182_v7 = vshrl.u32 %v12165_v5, 16  ;;  %v12200_v31 = vpop.f32.mrf.mxu1  ;;  %v12202_v35 = vpop.f32.mrf.mxu0 }
 0x21b   : > { %v7448_v32 = vcombine.low %v7440_v21, %v7447_v56  ;;  %v8325_v43 = vrot.slane %v8311_v39, %v10046_v17  ;;  %v7174_v58 = vrot.slane %v7172_v34, 6  ;;  %v7188_v30 = vshll.u32 %v12176_v25, 16  ;;  %v9381_v0 = vld.sshfl [vmem:[%s10027_s9 + $0x78] sm:$0x32 pattern:$0x76325410] }
 0x21c   : > { %12967 = vst [vmem:[#allocation77_spill] sm:$0xff] %v12200_v31  ;;  %12968 = vst [vmem:[#allocation78_spill] sm:$0xff] %v12202_v35  ;;  %v7165_v16 = vor.u32 %v7164_v42, %v7161_v24  ;;  %v7180_v22 = vrot.slane %v7178_v52, 7  ;;  %v7184_v44 = vrot.slane %v7182_v7, 6  ;;  %v7193_v9 = vshrl.u32 %v9304_v15, 16  ;;  %v12205_v56 = vpop.f32.mrf.mxu1  ;;  %v12207_v39 = vpop.f32.mrf.mxu0 }
 0x21d   : > { %9737 = vmatprep.mubr.msk.bf16.mxu1 %vm1451_vm8, %v7448_v32  ;;  %v8326_v40 = vcombine.low %v8318_v55, %v8325_v43  ;;  %v7175_v38 = vor.u32 %v7174_v58, %v7170_v8  ;;  %v7190_v33 = vrot.slane %v7188_v30, 7  ;;  %v7196_v21 = vshll.u32 %v9304_v15, 16  ;;  %12969 = vst [vmem:[#allocation79_spill] sm:$0xff] %v12205_v56  ;;  %12970 = vst [vmem:[#allocation80_spill] sm:$0xff] %v12207_v39 }
 0x21e   : > { %v7166_v34 = vrot.slane %v7165_v16, 2  ;;  %v7185_v12 = vor.u32 %v7184_v44, %v7180_v22  ;;  %v7195_v10 = vrot.slane %v7193_v9, 6  ;;  %v7202_v31 = vshll.u32 %v12180_v59, 16  ;;  %v12211_v55 = vpop.f32.mrf.mxu1  ;;  %v12213_v58 = vpop.f32.mrf.mxu0 }
 0x21f   : > { %9763 = vmatprep.mubr.msk.bf16.mxu0 %vm1451_vm8, %v8326_v40  ;;  %v7176_v42 = vrot.slane %v7175_v38, 2  ;;  %v7198_v52 = vrot.slane %v7196_v21, 7  ;;  %v7955_v24 = vcombine.high %v9379_v47, %v9379_v47  ;;  %v7971_v7 = vcombine.high %v9381_v0, %v9381_v0  ;;  %12971 = vst [vmem:[#allocation81_spill] sm:$0xff] %v12211_v55  ;;  %12972 = vst [vmem:[#allocation82_spill] sm:$0xff] %v12213_v58 }
 0x220   : > { %v7171_v15 = vsel %vm10065_vm7, %v7166_v34, %v7170_v8  ;;  %v7186_v32 = vrot.slane %v7185_v12, 2  ;;  %v7204_v43 = vrot.slane %v7202_v31, 7  ;;  %v9399_v30 = vrot.slane %v9379_v47, 9  ;;  %v12221_v21 = vpop.f32.mrf.mxu1  ;;  %v12223_v39 = vpop.f32.mrf.mxu0 }
 0x221   : > { %v7181_v16 = vsel %vm10065_vm7, %v7176_v42, %v7180_v22  ;;  %v7199_v44 = vor.u32 %v7198_v52, %v7195_v10  ;;  %v8134_v40 = vrot.slane %v7955_v24, 7  ;;  %v8137_v38 = vrot.slane %v12165_v5, 7  ;;  %v9306_v9 = vld.sshfl [vmem:[%s10027_s9 + $0x80] sm:$0x33 pattern:$0x76325410] }
 0x222   : > { %12973 = vst [vmem:[#allocation83_spill] sm:$0xff] %v12221_v21  ;;  %12974 = vst [vmem:[#allocation84_spill] sm:$0xff] %v12223_v39  ;;  %v7191_v58 = vsel %vm10065_vm7, %v7186_v32, %v7190_v33  ;;  %v7449_v35 = vcombine.low %v7171_v15, %v7181_v16  ;;  %v8140_v12 = vrot.slane %v12176_v25, 7  ;;  %v9400_v8 = vrot.slane %v9381_v0, 9  ;;  %v12233_v34 = vpop.f32.mrf.mxu1  ;;  %v12235_v42 = vpop.f32.mrf.mxu0 }
 0x223   : > { %v12229_v47 = vld.sshfl [vmem:[%s10027_s9 + $0x7c] sm:$0x13 pattern:$0x76325410]  ;;  %v7200_v31 = vrot.slane %v7199_v44, 2  ;;  %v8135_v22 = vsel %vm10511_vm15, %v9399_v30, %v8134_v40  ;;  %v8136_v10 = vrot.slane %v8134_v40, 2  ;;  %v6725_v25 = vcombine.high %v9306_v9, %v9306_v9 }
 0x224   : > { %v8139_v5 = vrot.slane %v8137_v38, 2  ;;  %12975 = vst [vmem:[#allocation85_spill] sm:$0xff] %v12233_v34  ;;  %12976 = vst [vmem:[#allocation86_spill] sm:$0xff] %v12235_v42  ;;  %v7457_v52 = vrot.slane %v7449_v35, %v10046_v17  ;;  %v12238_v24 = vrot.slane %v7971_v7, 7  ;;  %v12242_v33 = vcombine.high %v12229_v47, %v12229_v47  ;;  %v12251_v35 = vpop.f32.mrf.mxu1  ;;  %v12253_v7 = vpop.f32.mrf.mxu0 }
 0x225   : > { %v7205_v0 = vsel %vm10065_vm7, %v7200_v31, %v7204_v43  ;;  %v8138_v15 = vsel %vm10511_vm15, %v8136_v10, %v8137_v38  ;;  %v7206_v30 = vshrl.u32 %v12180_v59, 16  ;;  %12977 = vst [vmem:[#allocation87_spill] sm:$0xff] %v12251_v35  ;;  %12978 = vst [vmem:[#allocation88_spill] sm:$0xff] %v12253_v7  ;;  %v7212_v31 = vshll.u32 %v12229_v47, 16 }
 0x226   : > { %v8141_v32 = vsel %vm10511_vm15, %v8139_v5, %v8140_v12  ;;  %v7450_v16 = vcombine.low %v7191_v58, %v7205_v0  ;;  %v8145_v44 = vsel %vm10511_vm15, %v9400_v8, %v12238_v24  ;;  %v8327_v40 = vcombine.low %v8135_v22, %v8138_v15  ;;  %v12261_v59 = vpop.f32.mrf.mxu1  ;;  %v12263_v42 = vpop.f32.mrf.mxu0  ;;  %v12268_v7 = vld.sshfl [vmem:[%s10027_s9 + $0x84] sm:$0x13 pattern:$0x76325410] }
 0x227   : > { %v8328_v38 = vcombine.low %v8141_v32, %v8145_v44  ;;  %v7208_v10 = vrot.slane %v7206_v30, 6  ;;  %v7216_v12 = vshrl.u32 %v12229_v47, 16  ;;  %v7222_v5 = vshll.u32 %v12242_v33, 16  ;;  %12979 = vst [vmem:[#allocation89_spill] sm:$0xff] %v12261_v59  ;;  %12980 = vst [vmem:[#allocation90_spill] sm:$0xff] %v12263_v42 }
 0x228   : > { %v7464_v58 = vrot.slane %v7450_v16, %v10046_v17  ;;  %v8335_v0 = vrot.slane %v8327_v40, %v10046_v17  ;;  %v7214_v8 = vrot.slane %v7212_v31, 7  ;;  %v7227_v22 = vshrl.u32 %v9306_v9, 16  ;;  %v9383_v39 = vld.sshfl [vmem:[%s10027_s9 + $0x80] sm:$0x32 pattern:$0x76325410]  ;;  %v12272_v35 = vpop.f32.mrf.mxu1  ;;  %v12274_v34 = vpop.f32.mrf.mxu0 }
 0x229   : > { %v8342_v15 = vrot.slane %v8328_v38, %v10046_v17  ;;  %v7209_v32 = vor.u32 %v7208_v10, %v7204_v43  ;;  %v7218_v30 = vrot.slane %v7216_v12, 6  ;;  %v7224_v44 = vrot.slane %v7222_v5, 7  ;;  %12981 = vst [vmem:[#allocation91_spill] sm:$0xff] %v12274_v34 }
 0x22a   : > { %v7465_v59 = vcombine.low %v7457_v52, %v7464_v58  ;;  %v7229_v42 = vrot.slane %v7227_v22, 6  ;;  %v7230_v21 = vshll.u32 %v9306_v9, 16  ;;  %v7236_v16 = vshll.u32 %v6725_v25, 16  ;;  %v12276_v31 = vpop.f32.mrf.mxu1  ;;  %v12278_v13 = vpop.f32.mrf.mxu0 }
 0x22b   : > { %v8343_v55 = vcombine.low %v8335_v0, %v8342_v15  ;;  %v7210_v40 = vrot.slane %v7209_v32, 2  ;;  %v7219_v56 = vor.u32 %v7218_v30, %v7214_v8  ;;  %v7240_v50 = vshrl.u32 %v6725_v25, 16  ;;  %12982 = vst [vmem:[#allocation92_spill] sm:$0xff] %v12278_v13 }
 0x22c   : > { %9738 = vmatmul.mubr.msk.bf16.gmra.mxu1 %vm1451_vm8, %v7465_v59  ;;  %v7232_v43 = vrot.slane %v7230_v21, 7  ;;  %v7238_v38 = vrot.slane %v7236_v16, 7  ;;  %v7246_v10 = vshll.u32 %v12268_v7, 16  ;;  %v7987_v12 = vcombine.high %v9383_v39, %v9383_v39  ;;  %v12286_v58 = vpop.f32.mrf.mxu1  ;;  %v12288_v0 = vpop.f32.mrf.mxu0 }
 0x22d   : > { %9764 = vmatmul.mubr.msk.bf16.gmra.mxu0 %vm1451_vm8, %v8343_v55  ;;  %v7215_v9 = vsel %vm10065_vm7, %v7210_v40, %v7214_v8  ;;  %v7220_v52 = vrot.slane %v7219_v56, 2  ;;  %v7242_v5 = vrot.slane %v7240_v50, 6  ;;  %v8146_v25 = vrot.slane %v12238_v24, 2  ;;  %12983 = vst [vmem:[#allocation93_spill] sm:$0xff] %v12286_v58  ;;  %12984 = vst [vmem:[#allocation94_spill] sm:$0xff] %v12288_v0 }
 0x22e   : > { %v7233_v59 = vor.u32 %v7232_v43, %v7229_v42  ;;  %v7248_v21 = vrot.slane %v7246_v10, 7  ;;  %v8147_v22 = vrot.slane %v12229_v47, 7  ;;  %v8150_v15 = vrot.slane %v12242_v33, 7  ;;  %v12294_v50 = vpop.f32.mrf.mxu1  ;;  %v12296_v24 = vpop.f32.mrf.mxu0 }
 0x22f   : > { %v7225_v55 = vsel %vm10065_vm7, %v7220_v52, %v7224_v44  ;;  %v7243_v32 = vor.u32 %v7242_v5, %v7238_v38  ;;  %v9401_v8 = vrot.slane %v9383_v39, 9  ;;  %v8154_v56 = vrot.slane %v7987_v12, 7  ;;  %12985 = vst [vmem:[#allocation95_spill] sm:$0xff] %v12294_v50  ;;  %12986 = vst [vmem:[#allocation96_spill] sm:$0xff] %v12296_v24 }
 0x230   : > { %v7234_v30 = vrot.slane %v7233_v59, 2  ;;  %v7466_v16 = vcombine.low %v7215_v9, %v7225_v55  ;;  %v8148_v42 = vsel %vm10511_vm15, %v8146_v25, %v8147_v22  ;;  %v8149_v40 = vrot.slane %v8147_v22, 2  ;;  %v9308_v47 = vld.sshfl [vmem:[%s10027_s9 + $0x88] sm:$0x33 pattern:$0x76325410]  ;;  %v12304_v10 = vpop.f32.mrf.mxu1  ;;  %v12306_v12 = vpop.f32.mrf.mxu0 }
 0x231   : > { %v7244_v43 = vrot.slane %v7243_v32, 2  ;;  %v8155_v33 = vsel %vm10511_vm15, %v9401_v8, %v8154_v56  ;;  %v8156_v44 = vrot.slane %v8154_v56, 2  ;;  %v8157_v39 = vrot.slane %v12268_v7, 7  ;;  %12987 = vst [vmem:[#allocation97_spill] sm:$0xff] %v12304_v10  ;;  %12988 = vst [vmem:[#allocation98_spill] sm:$0xff] %v12306_v12 }
 0x232   : > { %v7239_v9 = vsel %vm10065_vm7, %v7234_v30, %v7238_v38  ;;  %v7474_v52 = vrot.slane %v7466_v16, %v10046_v17  ;;  %v8151_v5 = vsel %vm10511_vm15, %v8149_v40, %v8150_v15  ;;  %v6733_v25 = vcombine.high %v12268_v7, %v12268_v7  ;;  %v12320_v32 = vld.sshfl [vmem:[%s10027_s9 + $0x8c] sm:$0x13 pattern:$0x76325410]  ;;  %v12322_v38 = vpop.f32.mrf.mxu1  ;;  %v12324_v56 = vpop.f32.mrf.mxu0 }
 0x233   : > { %v7249_v59 = vsel %vm10065_vm7, %v7244_v43, %v7248_v21  ;;  %v8158_v22 = vsel %vm10511_vm15, %v8156_v44, %v8157_v39  ;;  %v8344_v55 = vcombine.low %v8148_v42, %v8151_v5  ;;  %v6741_v8 = vcombine.high %v9308_v47, %v9308_v47  ;;  %12989 = vst [vmem:[#allocation99_spill] sm:$0xff] %v12322_v38 }
 0x234   : > { %12990 = vst [vmem:[#allocation100_spill] sm:$0xff] %v12324_v56  ;;  %v7467_v30 = vcombine.low %v7239_v9, %v7249_v59  ;;  %v8345_v15 = vcombine.low %v8155_v33, %v8158_v22  ;;  %v12328_v16 = vcombine.high %v12320_v32, %v12320_v32  ;;  %v7250_v40 = vshrl.u32 %v12268_v7, 16  ;;  %v9385_v56 = vld.sshfl [vmem:[%s10027_s9 + $0x88] sm:$0x32 pattern:$0x76325410]  ;;  %v12335_v50 = vpop.f32.mrf.mxu1  ;;  %v12337_v0 = vpop.f32.mrf.mxu0 }
 0x235   : > { %v8352_v43 = vrot.slane %v8344_v55, %v10046_v17  ;;  %v7256_v44 = vshll.u32 %v6733_v25, 16  ;;  %v7261_v42 = vshrl.u32 %v9308_v47, 16  ;;  %v7264_v5 = vshll.u32 %v9308_v47, 16 }
 0x236   : > { %v7481_v12 = vrot.slane %v7467_v30, %v10046_v17  ;;  %v8359_v24 = vrot.slane %v8345_v15, %v10046_v17  ;;  %v7252_v38 = vrot.slane %v7250_v40, 6  ;;  %v7270_v10 = vshll.u32 %v6741_v8, 16 }
 0x237   : > { %v7258_v9 = vrot.slane %v7256_v44, 7  ;;  %v7263_v33 = vrot.slane %v7261_v42, 6  ;;  %v7266_v59 = vrot.slane %v7264_v5, 7  ;;  %v7274_v22 = vshrl.u32 %v6741_v8, 16 }
 0x238   : > { %v7482_v7 = vcombine.low %v7474_v52, %v7481_v12  ;;  %v8360_v55 = vcombine.low %v8352_v43, %v8359_v24  ;;  %v7253_v13 = vor.u32 %v7252_v38, %v7248_v21  ;;  %v7272_v34 = vrot.slane %v7270_v10, 7 }
 0x239   : > { %v7267_v47 = vor.u32 %v7266_v59, %v7263_v33  ;;  %v7276_v58 = vrot.slane %v7274_v22, 6  ;;  %v7280_v30 = vshll.u32 %v12320_v32, 16  ;;  %v7284_v15 = vshrl.u32 %v12320_v32, 16 }
 0x23a   : > { %9741 = vmatprep.mubr.msk.bf16.mxu1 %vm1451_vm8, %v7482_v7  ;;  %9767 = vmatprep.mubr.msk.bf16.mxu0 %vm1451_vm8, %v8360_v55  ;;  %v7254_v40 = vrot.slane %v7253_v13, 2  ;;  %v7290_v8 = vshll.u32 %v12328_v16, 16  ;;  %v8003_v44 = vcombine.high %v9385_v56, %v9385_v56  ;;  %v8159_v42 = vrot.slane %v8157_v39, 2  ;;  %v12346_v52 = vpop.f32.mrf.mxu0 }
 0x23b   : > { %v7268_v5 = vrot.slane %v7267_v47, 2  ;;  %v7277_v12 = vor.u32 %v7276_v58, %v7272_v34  ;;  %v7282_v24 = vrot.slane %v7280_v30, 7  ;;  %v7286_v21 = vrot.slane %v7284_v15, 6  ;;  %v12344_v10 = vpop.f32.mrf.mxu1 }
 0x23c   : > { %v7259_v38 = vsel %vm10065_vm7, %v7254_v40, %v7258_v9  ;;  %v7292_v43 = vrot.slane %v7290_v8, 7  ;;  %v8160_v33 = vrot.slane %v6733_v25, 7  ;;  %v9402_v59 = vrot.slane %v9385_v56, 9  ;;  %v12354_v58 = vpop.f32.mrf.mxu0 }
 0x23d   : > { %v7273_v13 = vsel %vm10065_vm7, %v7268_v5, %v7272_v34  ;;  %v7278_v22 = vrot.slane %v7277_v12, 2  ;;  %v7287_v7 = vor.u32 %v7286_v21, %v7282_v24  ;;  %v8164_v39 = vrot.slane %v8003_v44, 7  ;;  %v12352_v55 = vpop.f32.mrf.mxu1 }
 0x23e   : > { %v7483_v47 = vcombine.low %v7259_v38, %v7273_v13  ;;  %v8161_v30 = vsel %vm10511_vm15, %v8159_v42, %v8160_v33  ;;  %v8167_v15 = vrot.slane %v12320_v32, 7  ;;  %v8170_v9 = vrot.slane %v12328_v16, 7  ;;  %v12364_v8 = vpop.f32.mrf.mxu0 }
 0x23f   : > { %v7283_v25 = vsel %vm10065_vm7, %v7278_v22, %v7282_v24  ;;  %v7288_v56 = vrot.slane %v7287_v7, 2  ;;  %v8165_v34 = vsel %vm10511_vm15, %v9402_v59, %v8164_v39  ;;  %v8166_v40 = vrot.slane %v8164_v39, 2  ;;  %v12370_v42 = vpop.f32.mrf.mxu1 }
 0x240   : > { %v8169_v44 = vrot.slane %v8167_v15, 2  ;;  %v8361_v5 = vcombine.low %v8161_v30, %v8165_v34  ;;  %v7491_v24 = vrot.slane %v7483_v47, %v10046_v17  ;;  %v12375_v38 = vpop.f32.mrf.mxu0  ;;  %v1955_v34 = vadd.f32 %v11926_v60, %v11643_v20  ;;  %v12993_v60 = vld [vmem:[#allocation29_spill] sm:$0xff] }
 0x241   : > { %v7293_v12 = vsel %vm10065_vm7, %v7288_v56, %v7292_v43  ;;  %v8168_v32 = vsel %vm10511_vm15, %v8166_v40, %v8167_v15  ;;  %v12380_v43 = vpop.f32.mrf.mxu1  ;;  %v1939_v15 = vadd.f32 %v11897_v3, %v11763_v2  ;;  %v1934_v56 = vadd.f32 %v11919_v6, %v11797_v48 }
 0x242   : > { %v7484_v16 = vcombine.low %v7283_v25, %v7293_v12  ;;  %v8171_v21 = vsel %vm10511_vm15, %v8169_v44, %v8170_v9  ;;  %v8369_v59 = vrot.slane %v8361_v5, %v10046_v17  ;;  %v1942_v9 = vadd.f32 %v11911_v63, %v11782_v51  ;;  %v12991_v63 = vld [vmem:[#allocation8_spill] sm:$0xff]  ;;  %v13000_v44 = vld [vmem:[#allocation39_spill] sm:$0xff] }
 0x243   : > { %v8362_v33 = vcombine.low %v8168_v32, %v8171_v21  ;;  %v1947_v40 = vadd.f32 %v11936_v29, %v11662_v45  ;;  %v1958_v2 = vadd.f32 %v11952_v41, %v11674_v53  ;;  %v1963_v51 = vadd.f32 %v11981_v62, %v11719_v28  ;;  %v12994_v29 = vld [vmem:[#allocation27_spill] sm:$0xff]  ;;  %v12995_v28 = vld [vmem:[#allocation32_spill] sm:$0xff]  ;;  %v13002_v32 = vld [vmem:[#allocation33_spill] sm:$0xff] }
 0x244   : > { %v7498_v13 = vrot.slane %v7484_v16, %v10046_v17  ;;  %v1974_v20 = vadd.f32 %v11988_v46, %v11734_v19  ;;  %v1966_v45 = vadd.f32 %v11995_v37, %v11746_v57  ;;  %v1987_v53 = vadd.f32 %v12008_v54, %v11765_v27  ;;  %v12997_v19 = vld [vmem:[#allocation47_spill] sm:$0xff]  ;;  %v12998_v57 = vld [vmem:[#allocation26_spill] sm:$0xff]  ;;  %v12999_v27 = vld [vmem:[#allocation36_spill] sm:$0xff] }
 0x245   : > { %v8376_v1 = vrot.slane %v8362_v33, %v10046_v17  ;;  %v1931_v17 = vadd.f32 %v11903_v36, %v11778_v26  ;;  %v1950_v36 = vadd.f32 %v11967_v61, %v11690_v18  ;;  %v1971_v26 = vadd.f32 %v11974_v4, %v11704_v14  ;;  %v12992_v18 = vld [vmem:[#allocation45_spill] sm:$0xff] }
 0x246   : > { %v7499_v22 = vcombine.low %v7491_v24, %v7498_v13  ;;  %v12382_v7 = vpop.f32.mrf.mxu0  ;;  %v1979_v48 = vadd.f32 %v12023_v11, %v11780_v23  ;;  %v1990_v6 = vadd.f32 %v12992_v18, %v12991_v63  ;;  %v2864_v14 = vadd.f32 %v12993_v60, %v1939_v15  ;;  %v12996_v4 = vld [vmem:[#allocation9_spill] sm:$0xff]  ;;  %v13001_v11 = vld [vmem:[#allocation38_spill] sm:$0xff]  ;;  %v13005_v13 = vld [vmem:[#allocation35_spill] sm:$0xff] }
 0x247   : > { %v8377_v39 = vcombine.low %v8369_v59, %v8376_v1  ;;  %v2862_v41 = vadd.f32 %v12994_v29, %v1931_v17  ;;  %v2865_v61 = vadd.f32 %v12995_v28, %v1942_v9  ;;  %v1982_v62 = vadd.f32 %v12997_v19, %v12996_v4  ;;  %v13003_v24 = vld [vmem:[#allocation34_spill] sm:$0xff]  ;;  %v13004_v33 = vld [vmem:[#allocation37_spill] sm:$0xff]  ;;  %v13007_v15 = vld [vmem:[#allocation43_spill] sm:$0xff] }
 0x248   : > { %9742 = vmatmul.mubr.msk.bf16.gmra.mxu1 %vm1451_vm8, %v7499_v22  ;;  %v12385_v47 = vpop.f32.mrf.mxu0  ;;  %v2863_v37 = vadd.f32 %v12998_v57, %v1934_v56  ;;  %v2868_v54 = vadd.f32 %v12999_v27, %v1955_v34  ;;  %v2866_v23 = vadd.f32 %v13000_v44, %v1947_v40  ;;  %v2869_v5 = vadd.f32 %v13001_v11, %v1958_v2  ;;  %v13006_v22 = vld [vmem:[#allocation40_spill] sm:$0xff]  ;;  %v13009_v34 = vld [vmem:[#allocation46_spill] sm:$0xff]  ;;  %v13011_v2 = vld [vmem:[#allocation71_spill] sm:$0xff] }
 0x249   : > { %9768 = vmatmul.mubr.msk.bf16.gmra.mxu0 %vm1451_vm8, %v8377_v39  ;;  %v2867_v16 = vadd.f32 %v13002_v32, %v1950_v36  ;;  %v2872_v21 = vadd.f32 %v13003_v24, %v1971_v26  ;;  %v2870_v59 = vadd.f32 %v13004_v33, %v1963_v51  ;;  %v2873_v1 = vadd.f32 %v13005_v13, %v1974_v20  ;;  %v13008_v9 = vld [vmem:[#allocation44_spill] sm:$0xff]  ;;  %v13012_v29 = vld [vmem:[#allocation73_spill] sm:$0xff]  ;;  %v13013_v28 = vld [vmem:[#allocation75_spill] sm:$0xff] }
 0x24a   : > { %v12388_v49 = vpop.f32.mrf.mxu1  ;;  %v12398_v25 = vpop.f32.mrf.mxu0  ;;  %v2871_v39 = vadd.f32 %v13006_v22, %v1966_v45  ;;  %v2876_v17 = vadd.f32 %v13007_v15, %v1987_v53  ;;  %v2874_v56 = vadd.f32 %v13008_v9, %v1979_v48  ;;  %v2877_v63 = vadd.f32 %v13009_v34, %v1990_v6  ;;  %v13010_v40 = vld [vmem:[#allocation48_spill] sm:$0xff]  ;;  %v13014_v51 = vld [vmem:[#allocation65_spill] sm:$0xff]  ;;  %v13016_v45 = vld [vmem:[#allocation79_spill] sm:$0xff] }
 0x24b   : > { %v2875_v18 = vadd.f32 %v13010_v40, %v1982_v62  ;;  %v3569_v60 = vadd.f32 %v13011_v2, %v2863_v37  ;;  %v3574_v36 = vadd.f32 %v13012_v29, %v2868_v54  ;;  %v3572_v26 = vadd.f32 %v13013_v28, %v2866_v23  ;;  %v13015_v20 = vld [vmem:[#allocation77_spill] sm:$0xff]  ;;  %v13018_v11 = vld [vmem:[#allocation67_spill] sm:$0xff]  ;;  %v13019_v32 = vld [vmem:[#allocation72_spill] sm:$0xff] }
 0x24c   : > { %v12390_v30 = vpop.f32.mrf.mxu1  ;;  %v12431_v46 = vpop.f32.mrf.mxu0  ;;  %v3570_v19 = vadd.f32 %v13014_v51, %v2864_v14  ;;  %v3575_v57 = vadd.f32 %v13015_v20, %v2869_v5  ;;  %v3573_v27 = vadd.f32 %v13016_v45, %v2867_v16  ;;  %v13017_v53 = vld [vmem:[#allocation81_spill] sm:$0xff]  ;;  %v3568_v6 = vadd.f32 %v13018_v11, %v2862_v41  ;;  %v13020_v24 = vld [vmem:[#allocation74_spill] sm:$0xff]  ;;  %v13021_v33 = vld [vmem:[#allocation76_spill] sm:$0xff] }
 0x24d   : > { %v3578_v44 = vadd.f32 %v13017_v53, %v2872_v21  ;;  %v4831_v62 = vadd.f32 %v13019_v32, %v3569_v60  ;;  %v4836_v37 = vadd.f32 %v13020_v24, %v3574_v36  ;;  %v4834_v54 = vadd.f32 %v13021_v33, %v3572_v26  ;;  %v13022_v23 = vld [vmem:[#allocation78_spill] sm:$0xff]  ;;  %v13023_v15 = vld [vmem:[#allocation80_spill] sm:$0xff]  ;;  %v13025_v34 = vld [vmem:[#allocation83_spill] sm:$0xff] }
 0x24e   : > { %v12408_v3 = vpop.f32.mrf.mxu1  ;;  %v4837_v22 = vadd.f32 %v13022_v23, %v3575_v57  ;;  %v4835_v14 = vadd.f32 %v13023_v15, %v3573_v27  ;;  %v13024_v9 = vld [vmem:[#allocation82_spill] sm:$0xff]  ;;  %v3576_v16 = vadd.f32 %v13025_v34, %v2870_v59  ;;  %v13026_v21 = vld [vmem:[#allocation85_spill] sm:$0xff]  ;;  %v13027_v29 = vld [vmem:[#allocation87_spill] sm:$0xff]  ;;  %v3580_v36 = vadd.f32 %v12272_v35, %v2874_v56 }
 0x24f   : > { %v4840_v5 = vadd.f32 %v13024_v9, %v3578_v44  ;;  %v3579_v2 = vadd.f32 %v13026_v21, %v2873_v1  ;;  %v3577_v41 = vadd.f32 %v13027_v29, %v2871_v39  ;;  %v13028_v28 = vld [vmem:[#allocation89_spill] sm:$0xff]  ;;  %v13030_v45 = vld [vmem:[#allocation84_spill] sm:$0xff]  ;;  %v3583_v27 = vadd.f32 %v12276_v31, %v2877_v63  ;;  %v13032_v59 = vld [vmem:[#allocation86_spill] sm:$0xff] }
 0x250   : > { %v5640_v12 = vpop.f32.mrf.mxu1  ;;  %v3582_v60 = vadd.f32 %v13028_v28, %v2876_v17  ;;  %v13029_v26 = vld [vmem:[#allocation69_spill] sm:$0xff]  ;;  %v4838_v57 = vadd.f32 %v13030_v45, %v3576_v16  ;;  %v13033_v24 = vld [vmem:[#allocation88_spill] sm:$0xff]  ;;  %v13034_v33 = vld [vmem:[#allocation90_spill] sm:$0xff] }
 0x251   : > { %v3571_v20 = vadd.f32 %v13029_v26, %v2865_v61  ;;  %v13031_v53 = vld [vmem:[#allocation93_spill] sm:$0xff]  ;;  %v4841_v32 = vadd.f32 %v13032_v59, %v3579_v2  ;;  %v4839_v1 = vadd.f32 %v13033_v24, %v3577_v41  ;;  %v13035_v23 = vld [vmem:[#allocation91_spill] sm:$0xff]  ;;  %v13036_v15 = vld [vmem:[#allocation66_spill] sm:$0xff] }
 0x252   : > { %v3581_v44 = vadd.f32 %v13031_v53, %v2875_v18  ;;  %v4844_v39 = vadd.f32 %v13034_v33, %v3582_v60  ;;  %v4842_v17 = vadd.f32 %v13035_v23, %v3580_v36  ;;  %v4832_v35 = vadd.f32 %v13036_v15, %v3570_v19  ;;  %v13037_v56 = vld [vmem:[#allocation92_spill] sm:$0xff]  ;;  %v13038_v61 = vld [vmem:[#allocation94_spill] sm:$0xff] }
 0x253   : > { %v4845_v9 = vadd.f32 %v13037_v56, %v3583_v27  ;;  %v13039_v21 = vld [vmem:[#allocation68_spill] sm:$0xff]  ;;  %v13040_v29 = vld [vmem:[#allocation70_spill] sm:$0xff]  ;;  %v5709_v36 = vadd.f32 %v5640_v12, %v4831_v62 }
 0x254   : > { %v9709_v4 = vpop.f32.mrf.mxu0  ;;  %v4843_v34 = vadd.f32 %v13038_v61, %v3581_v44  ;;  %v4830_v31 = vadd.f32 %v13039_v21, %v3568_v6  ;;  %v5710_v63 = vadd.f32 %v12388_v49, %v4832_v35  ;;  %v4833_v2 = vadd.f32 %v13040_v29, %v3571_v20  ;;  %v13041_v21 = vld [vmem:[#allocation41_spill] sm:$0xff] }
 0x255   : > { %v9683_v48 = vpop.f32.mrf.mxu1 }
 0x256   : > { %v6359_v13 = vpop.f32.mrf.mxu0  ;;  %v12480_v41 = vadd.f32 %v12382_v7, %v5710_v63  ;;  %v5708_v28 = vadd.f32 %v12390_v30, %v4830_v31  ;;  %v5711_v19 = vadd.f32 %v12408_v3, %v4833_v2  ;;  %v5714_v26 = vadd.f32 %v9683_v48, %v4836_v37  ;;  %v13042_v31 = vld [vmem:[#allocation12_spill] sm:$0xff]  ;;  %v13043_v2 = vld [vmem:[#allocation42_spill] sm:$0xff] }
 0x257   : > { %v5653_v40 = vpop.f32.mrf.mxu1  ;;  %v12491_v7 = vadd.f32 %v12431_v46, %v5709_v36  ;;  %v1907_v63 = vadd.f32 %v13042_v31, %v13041_v21  ;;  %v13046_v36 = vld [vmem:[#allocation6_spill] sm:$0xff]  ;;  %v13061_v31 = vld [vmem:[#allocation97_spill] sm:$0xff] }
 0x258   : > { %v9710_v51 = vpop.f32.mrf.mxu0  ;;  %v5712_v45 = vadd.f32 %v5653_v40, %v4834_v54  ;;  %v12485_v27 = vadd.f32 %v12385_v47, %v5708_v28  ;;  %v12488_v20 = vadd.f32 %v12398_v25, %v5711_v19  ;;  %v12493_v30 = vadd.f32 %v9709_v4, %v5714_v26  ;;  %v13044_v28 = vld [vmem:[#allocation19_spill] sm:$0xff]  ;;  %v13045_v19 = vld [vmem:[#allocation13_spill] sm:$0xff]  ;;  %v13047_v26 = vld [vmem:[#allocation22_spill] sm:$0xff] }
 0x259   : > { %v9684_v11 = vpop.f32.mrf.mxu1 }
 0x25a   : > { %v6362_v16 = vpop.f32.mrf.mxu0  ;;  %v5715_v6 = vadd.f32 %v9684_v11, %v4837_v22  ;;  %v12495_v59 = vadd.f32 %v6359_v13, %v5712_v45  ;;  %v1910_v45 = vadd.f32 %v13047_v26, %v13046_v36  ;;  %v13065_v26 = vld [vmem:[#allocation98_spill] sm:$0xff] }
 0x25b   : > { %v5656_v18 = vpop.f32.mrf.mxu1 }
 0x25c   : > { %v5713_v53 = vadd.f32 %v5656_v18, %v4835_v14  ;;  %v12497_v3 = vadd.f32 %v9710_v51, %v5715_v6  ;;  %v13048_v6 = vld [vmem:[#allocation14_spill] sm:$0xff] }
 0x25e   : > { %v12499_v12 = vadd.f32 %v6362_v16, %v5713_v53  ;;  %v13049_v53 = vld [vmem:[#allocation7_spill] sm:$0xff] }
 0x25f   : > { %v9713_v60 = vpop.f32.mrf.mxu0 }
 0x261   : > { %v9687_v49 = vpop.f32.mrf.mxu1  ;;  %v6375_v44 = vpop.f32.mrf.mxu0 }
 0x262   : > { %v5718_v47 = vadd.f32 %v9687_v49, %v4840_v5  ;;  %v13050_v49 = vld [vmem:[#allocation16_spill] sm:$0xff] }
 0x263   : > { %v5669_v48 = vpop.f32.mrf.mxu1  ;;  %v9714_v62 = vpop.f32.mrf.mxu0 }
 0x264   : > { %v5716_v37 = vadd.f32 %v5669_v48, %v4838_v57  ;;  %v12501_v54 = vadd.f32 %v9713_v60, %v5718_v47  ;;  %v13051_v47 = vld [vmem:[#allocation49_spill] sm:$0xff] }
 0x265   : > { %v9688_v22 = vpop.f32.mrf.mxu1  ;;  %v6378_v40 = vpop.f32.mrf.mxu0 }
 0x266   : > { %v12503_v25 = vadd.f32 %v6375_v44, %v5716_v37  ;;  %v5719_v14 = vadd.f32 %v9688_v22, %v4841_v32  ;;  %v1902_v44 = vadd.f32 %v13050_v49, %v13049_v53  ;;  %v13053_v37 = vld [vmem:[#allocation51_spill] sm:$0xff]  ;;  %v13067_v49 = vld [vmem:[#allocation21_spill] sm:$0xff] }
 0x267   : > { %v5672_v46 = vpop.f32.mrf.mxu1  ;;  %v13066_v53 = vld [vmem:[#allocation11_spill] sm:$0xff] }
 0x268   : > { %v12505_v4 = vadd.f32 %v9714_v62, %v5719_v14  ;;  %v5717_v13 = vadd.f32 %v5672_v46, %v4839_v1  ;;  %v13054_v14 = vld [vmem:[#allocation17_spill] sm:$0xff] }
 0x269   : > { %v2855_v46 = vadd.f32 %v13054_v14, %v1902_v44  ;;  %v1923_v44 = vadd.f32 %v13067_v49, %v13066_v53  ;;  %v13069_v14 = vld [vmem:[#allocation10_spill] sm:$0xff]  ;;  %v13079_v49 = vld [vmem:[#allocation59_spill] sm:$0xff] }
 0x26a   : > { %v12507_v11 = vadd.f32 %v6378_v40, %v5717_v13  ;;  %v13055_v40 = vld [vmem:[#allocation50_spill] sm:$0xff] }
 0x26b   : > { %v9717_v51 = vpop.f32.mrf.mxu0 }
 0x26d   : > { %v9691_v24 = vpop.f32.mrf.mxu1  ;;  %v6391_v33 = vpop.f32.mrf.mxu0 }
 0x26e   : > { %v5722_v5 = vadd.f32 %v9691_v24, %v4844_v39  ;;  %v1899_v39 = vadd.f32 %v13044_v28, %v13043_v2  ;;  %v13063_v2 = vld [vmem:[#allocation96_spill] sm:$0xff] }
 0x26f   : > { %v5685_v23 = vpop.f32.mrf.mxu1  ;;  %v9718_v56 = vpop.f32.mrf.mxu0 }
 0x270   : > { %v12509_v15 = vadd.f32 %v9717_v51, %v5722_v5  ;;  %v5720_v57 = vadd.f32 %v5685_v23, %v4842_v17  ;;  %v2856_v17 = vadd.f32 %v13045_v19, %v1907_v63  ;;  %v13056_v51 = vld [vmem:[#allocation53_spill] sm:$0xff]  ;;  %v13058_v23 = vld [vmem:[#allocation55_spill] sm:$0xff] }
 0x271   : > { %v9692_v35 = vpop.f32.mrf.mxu1  ;;  %v6394_v29 = vpop.f32.mrf.mxu0 }
 0x272   : > { %v12511_v61 = vadd.f32 %v6391_v33, %v5720_v57  ;;  %v5723_v32 = vadd.f32 %v9692_v35, %v4845_v9  ;;  %v2854_v9 = vadd.f32 %v13048_v6, %v1899_v39  ;;  %v3562_v48 = vadd.f32 %v13051_v47, %v2856_v17  ;;  %v13057_v33 = vld [vmem:[#allocation52_spill] sm:$0xff]  ;;  %v13059_v35 = vld [vmem:[#allocation95_spill] sm:$0xff]  ;;  %v12551_v47 = vld [vmem:[%s12705_s2] ss:$0 sm:$0xff] }
 0x273   : > { %v5688_v16 = vpop.f32.mrf.mxu1  ;;  %v3561_v57 = vadd.f32 %v13058_v23, %v2855_v46  ;;  %v13064_v39 = vld [vmem:[#allocation99_spill] sm:$0xff]  ;;  %v13070_v46 = vld [vmem:[#allocation24_spill] sm:$0xff]  ;;  %v13071_v23 = vld [vmem:[#allocation18_spill] sm:$0xff] }
 0x274   : > { %v12515_v1 = vadd.f32 %v9718_v56, %v5723_v32  ;;  %v5721_v18 = vadd.f32 %v5688_v16, %v4843_v34  ;;  %v13052_v34 = vld [vmem:[#allocation20_spill] sm:$0xff]  ;;  %v3560_v22 = vadd.f32 %v13053_v37, %v2854_v9  ;;  %v4824_v13 = vadd.f32 %v13055_v40, %v3562_v48  ;;  %v13060_v16 = vld [vmem:[#allocation54_spill] sm:$0xff] }
 0x275   : > { %v2857_v62 = vadd.f32 %v13052_v34, %v1910_v45  ;;  %v13068_v34 = vld [vmem:[#allocation100_spill] sm:$0xff]  ;;  %v1915_v40 = vadd.f32 %v13070_v46, %v13069_v14  ;;  %v13082_v46 = vld [vmem:[#allocation61_spill] sm:$0xff] }
 0x276   : > { %v12519_v60 = vadd.f32 %v6394_v29, %v5721_v18  ;;  %v4822_v5 = vadd.f32 %v13057_v33, %v3560_v22  ;;  %v5702_v56 = vadd.f32 %v13059_v35, %v4824_v13  ;;  %v13062_v18 = vld [vmem:[#allocation56_spill] sm:$0xff]  ;;  %v13072_v35 = vld [vmem:[#allocation5_spill] sm:$0xff] }
 0x277   : > { %v3563_v24 = vadd.f32 %v13056_v51, %v2857_v62  ;;  %v4823_v29 = vadd.f32 %v13062_v18, %v3561_v57  ;;  %v2860_v57 = vadd.f32 %v13071_v23, %v1923_v44  ;;  %v13085_v23 = vld [vmem:[#allocation62_spill] sm:$0xff] }
 0x278   : > { %v5700_v63 = vadd.f32 %v13061_v31, %v4822_v5  ;;  %v6408_v28 = vadd.f32 %v13063_v2, %v5702_v56  ;;  %v13073_v56 = vld [vmem:[#allocation23_spill] sm:$0xff] }
 0x279   : > { %v4825_v21 = vadd.f32 %v13060_v16, %v3563_v24  ;;  %v5701_v6 = vadd.f32 %v12335_v50, %v4823_v29  ;;  %v1926_v16 = vadd.f32 %v13073_v56, %v13072_v35  ;;  %v13074_v29 = vld [vmem:[#allocation28_spill] sm:$0xff] }
 0x27a   : > { %v6406_v45 = vadd.f32 %v13065_v26, %v5700_v63  ;;  %v2858_v2 = vadd.f32 %v13074_v29, %v1915_v40  ;;  %v13086_v56 = vld [vmem:[#allocation64_spill] sm:$0xff] }
 0x27b   : > { %v5703_v19 = vadd.f32 %v13064_v39, %v4825_v21  ;;  %v6407_v51 = vadd.f32 %v12337_v0, %v5701_v6  ;;  %v13076_v39 = vld [vmem:[#allocation30_spill] sm:$0xff] }
 0x27c   : > { %v3564_v44 = vadd.f32 %v13079_v49, %v2858_v2 }
 0x27d   : > { %v9749_v32 = vpop.f32.mrf.mxu0  ;;  %v6409_v62 = vadd.f32 %v13068_v34, %v5703_v19  ;;  %v13077_v19 = vld [vmem:[#allocation57_spill] sm:$0xff] }
 0x27f   : > { %v8451_v36 = vpop.f32.mrf.mxu0 }
 0x281   : > { %v9750_v13 = vpop.f32.mrf.mxu0 }
 0x285   : > { %v9723_v17 = vpop.f32.mrf.mxu1 }
 0x286   : > { %v7670_v9 = vadd.f32 %v9723_v17, %v6408_v28  ;;  %v13075_v28 = vld [vmem:[#allocation15_spill] sm:$0xff]  ;;  %v3566_v17 = vadd.f32 %v13077_v19, %v2860_v57 }
 0x287   : > { %v7573_v48 = vpop.f32.mrf.mxu1  ;;  %v1918_v0 = vadd.f32 %v13076_v39, %v13075_v28 }
 0x288   : > { %v8548_v37 = vadd.f32 %v9749_v32, %v7670_v9  ;;  %v7668_v22 = vadd.f32 %v7573_v48, %v6406_v45  ;;  %v13078_v9 = vld [vmem:[#allocation31_spill] sm:$0xff] }
 0x289   : > { %v9724_v50 = vpop.f32.mrf.mxu1  ;;  %v2861_v53 = vadd.f32 %v13078_v9, %v1926_v16 }
 0x28a   : > { %v8579_v24 = vadd.f32 %v12551_v47, %v8548_v37  ;;  %v8546_v33 = vadd.f32 %v8451_v36, %v7668_v22  ;;  %v7671_v5 = vadd.f32 %v9724_v50, %v6409_v62  ;;  %v8454_v36 = vpop.f32.mrf.mxu0  ;;  %v13080_v62 = vld [vmem:[#allocation25_spill] sm:$0xff]  ;;  %v13081_v22 = vld [vmem:[#allocation58_spill] sm:$0xff] }
 0x28b   : > { %v7576_v21 = vpop.f32.mrf.mxu1  ;;  %v2859_v37 = vadd.f32 %v13080_v62, %v1918_v0  ;;  %v4828_v14 = vadd.f32 %v13081_v22, %v3566_v17  ;;  %v3567_v40 = vadd.f32 %v13082_v46, %v2861_v53 }
 0x28c   : > { %v8603_v31 = vmax.f32 %v8579_v24, 0.0  ;;  %v8577_v32 = vadd.f32 %v12551_v47, %v8546_v33  ;;  %v8549_v63 = vadd.f32 %v9750_v13, %v7671_v5  ;;  %v7669_v18 = vadd.f32 %v7576_v21, %v6407_v51  ;;  %v13083_v13 = vld [vmem:[#allocation60_spill] sm:$0xff]  ;;  %v13084_v24 = vld [vmem:[#allocation63_spill] sm:$0xff] }
 0x28d   : > { %v4826_v51 = vadd.f32 %v13083_v13, %v3564_v44  ;;  %v3565_v33 = vadd.f32 %v13084_v24, %v2859_v37  ;;  %v5706_v5 = vadd.f32 %v12344_v10, %v4828_v14  ;;  %v4829_v57 = vadd.f32 %v13085_v23, %v3567_v40 }
 0x28e   : > { %8627 = vst [vmem:[%s12566_s11 + $0x10] sm:$0xff] %v8603_v31  ;;  %v8601_v26 = vmax.f32 %v8577_v32, 0.0  ;;  %v8580_v45 = vadd.f32 %v12551_v47, %v8549_v63  ;;  %v8547_v6 = vadd.f32 %v8454_v36, %v7669_v18 }
 0x28f   : > { %v5704_v35 = vadd.f32 %v12352_v55, %v4826_v51  ;;  %v4827_v16 = vadd.f32 %v13086_v56, %v3565_v33  ;;  %v6412_v21 = vadd.f32 %v12346_v52, %v5706_v5  ;;  %v5707_v31 = vadd.f32 %v12370_v42, %v4829_v57 }
 0x290   : > { %8625 = vst [vmem:[%s12566_s11] sm:$0xff] %v8601_v26  ;;  %v8604_v48 = vmax.f32 %v8580_v45, 0.0  ;;  %v8578_v34 = vadd.f32 %v12551_v47, %v8547_v6 }
 0x291   : > { %v6410_v63 = vadd.f32 %v12354_v58, %v5704_v35  ;;  %v5705_v18 = vadd.f32 %v12380_v43, %v4827_v16  ;;  %v6413_v10 = vadd.f32 %v12364_v8, %v5707_v31 }
 0x292   : > { %8628 = vst [vmem:[%s12566_s11 + $0x18] sm:$0xff] %v8604_v48  ;;  %v8602_v50 = vmax.f32 %v8578_v34, 0.0 }
 0x293   : > { %v6411_v52 = vadd.f32 %v12375_v38, %v5705_v18 }
 0x294   : > { %8626 = vst [vmem:[%s12566_s11 + $0x8] sm:$0xff] %v8602_v50 }
 0x298   : > { %v9727_v32 = vpop.f32.mrf.mxu1 }
 0x299   : > { %v7674_v29 = vadd.f32 %v9727_v32, %v6412_v21  ;;  %v9753_v2 = vpop.f32.mrf.mxu0 }
 0x29a   : > { %v7589_v28 = vpop.f32.mrf.mxu1 }
 0x29b   : > { %v8552_v39 = vadd.f32 %v9753_v2, %v7674_v29  ;;  %v7672_v0 = vadd.f32 %v7589_v28, %v6410_v63  ;;  %v8467_v55 = vpop.f32.mrf.mxu0 }
 0x29c   : > { %v9728_v19 = vpop.f32.mrf.mxu1 }
 0x29d   : > { %v8583_v42 = vadd.f32 %v12551_v47, %v8552_v39  ;;  %v8550_v17 = vadd.f32 %v8467_v55, %v7672_v0  ;;  %v7675_v58 = vadd.f32 %v9728_v19, %v6413_v10  ;;  %v9754_v36 = vpop.f32.mrf.mxu0 }
 0x29e   : > { %v7592_v43 = vpop.f32.mrf.mxu1 }
 0x29f   : > { %v8607_v26 = vmax.f32 %v8583_v42, 0.0  ;;  %v8581_v45 = vadd.f32 %v12551_v47, %v8550_v17  ;;  %v8553_v8 = vadd.f32 %v9754_v36, %v7675_v58  ;;  %v7673_v6 = vadd.f32 %v7592_v43, %v6411_v52  ;;  %v8470_v9 = vpop.f32.mrf.mxu0 }
 0x2a1   : > { %8631 = vst [vmem:[%s12566_s11 + $0x30] sm:$0xff] %v8607_v26  ;;  %v8605_v53 = vmax.f32 %v8581_v45, 0.0  ;;  %v8584_v49 = vadd.f32 %v12551_v47, %v8553_v8  ;;  %v8551_v44 = vadd.f32 %v8470_v9, %v7673_v6 }
 0x2a3   : > { %8629 = vst [vmem:[%s12566_s11 + $0x20] sm:$0xff] %v8605_v53  ;;  %v8608_v38 = vmax.f32 %v8584_v49, 0.0  ;;  %v8582_v48 = vadd.f32 %v12551_v47, %v8551_v44 }
 0x2a5   : > { %8632 = vst [vmem:[%s12566_s11 + $0x38] sm:$0xff] %v8608_v38  ;;  %v8606_v34 = vmax.f32 %v8582_v48, 0.0 }
 0x2a7   : > { %8630 = vst [vmem:[%s12566_s11 + $0x28] sm:$0xff] %v8606_v34 }
 0x2b2   : > { %v9731_v62 = vpop.f32.mrf.mxu1 }
 0x2b3   : > { %v7678_v37 = vadd.f32 %v9731_v62, %v12480_v41 }
 0x2b4   : > { %v9757_v22 = vpop.f32.mrf.mxu0  ;;  %v7605_v14 = vpop.f32.mrf.mxu1 }
 0x2b5   : > { %v8556_v46 = vadd.f32 %v9757_v22, %v7678_v37  ;;  %v7676_v40 = vadd.f32 %v7605_v14, %v12485_v27 }
 0x2b6   : > { %v8483_v50 = vpop.f32.mrf.mxu0  ;;  %v9732_v13 = vpop.f32.mrf.mxu1 }
 0x2b7   : > { %v8587_v51 = vadd.f32 %v12551_v47, %v8556_v46  ;;  %v8554_v24 = vadd.f32 %v8483_v50, %v7676_v40  ;;  %v7679_v33 = vadd.f32 %v9732_v13, %v12488_v20 }
 0x2b8   : > { %v9758_v5 = vpop.f32.mrf.mxu0  ;;  %v7608_v23 = vpop.f32.mrf.mxu1 }
 0x2b9   : > { %v8611_v57 = vmax.f32 %v8587_v51, 0.0  ;;  %v8585_v41 = vadd.f32 %v12551_v47, %v8554_v24  ;;  %v8557_v35 = vadd.f32 %v9758_v5, %v7679_v33  ;;  %v7677_v56 = vadd.f32 %v7608_v23, %v12491_v7 }
 0x2ba   : > { %v8486_v16 = vpop.f32.mrf.mxu0 }
 0x2bb   : > { %8635 = vst [vmem:[%s12566_s11 + $0x50] sm:$0xff] %v8611_v57  ;;  %v8609_v27 = vmax.f32 %v8585_v41, 0.0  ;;  %v8588_v21 = vadd.f32 %v12551_v47, %v8557_v35  ;;  %v8555_v31 = vadd.f32 %v8486_v16, %v7677_v56 }
 0x2bd   : > { %8633 = vst [vmem:[%s12566_s11 + $0x40] sm:$0xff] %v8609_v27  ;;  %v8612_v32 = vmax.f32 %v8588_v21, 0.0  ;;  %v8586_v63 = vadd.f32 %v12551_v47, %v8555_v31 }
 0x2bf   : > { %8636 = vst [vmem:[%s12566_s11 + $0x58] sm:$0xff] %v8612_v32  ;;  %v8610_v20 = vmax.f32 %v8586_v63, 0.0 }
 0x2c1   : > { %8634 = vst [vmem:[%s12566_s11 + $0x48] sm:$0xff] %v8610_v20 }
 0x2d0   : > { %v9735_v18 = vpop.f32.mrf.mxu1 }
 0x2d1   : > { %v7682_v29 = vadd.f32 %v9735_v18, %v12493_v30  ;;  %v9761_v2 = vpop.f32.mrf.mxu0 }
 0x2d2   : > { %v7621_v28 = vpop.f32.mrf.mxu1 }
 0x2d3   : > { %v8560_v7 = vadd.f32 %v9761_v2, %v7682_v29  ;;  %v7680_v10 = vadd.f32 %v7621_v28, %v12495_v59  ;;  %v8499_v39 = vpop.f32.mrf.mxu0 }
 0x2d4   : > { %v9736_v0 = vpop.f32.mrf.mxu1 }
 0x2d5   : > { %v8591_v55 = vadd.f32 %v12551_v47, %v8560_v7  ;;  %v8558_v19 = vadd.f32 %v8499_v39, %v7680_v10  ;;  %v7683_v52 = vadd.f32 %v9736_v0, %v12497_v3  ;;  %v9762_v42 = vpop.f32.mrf.mxu0 }
 0x2d6   : > { %v7624_v17 = vpop.f32.mrf.mxu1 }
 0x2d7   : > { %v8615_v58 = vmax.f32 %v8591_v55, 0.0  ;;  %v8589_v30 = vadd.f32 %v12551_v47, %v8558_v19  ;;  %v8561_v36 = vadd.f32 %v9762_v42, %v7683_v52  ;;  %v7681_v43 = vadd.f32 %v7624_v17, %v12499_v12  ;;  %v8502_v26 = vpop.f32.mrf.mxu0 }
 0x2d9   : > { %8639 = vst [vmem:[%s12566_s11 + $0x70] sm:$0xff] %v8615_v58  ;;  %v8613_v59 = vmax.f32 %v8589_v30, 0.0  ;;  %v8592_v45 = vadd.f32 %v12551_v47, %v8561_v36  ;;  %v8559_v8 = vadd.f32 %v8502_v26, %v7681_v43 }
 0x2db   : > { %8637 = vst [vmem:[%s12566_s11 + $0x60] sm:$0xff] %v8613_v59  ;;  %v8616_v6 = vmax.f32 %v8592_v45, 0.0  ;;  %v8590_v9 = vadd.f32 %v12551_v47, %v8559_v8 }
 0x2dd   : > { %8640 = vst [vmem:[%s12566_s11 + $0x78] sm:$0xff] %v8616_v6  ;;  %v8614_v3 = vmax.f32 %v8590_v9, 0.0 }
 0x2df   : > { %8638 = vst [vmem:[%s12566_s11 + $0x68] sm:$0xff] %v8614_v3 }
 0x2ec   : > { %v9739_v53 = vpop.f32.mrf.mxu1 }
 0x2ed   : > { %v7686_v49 = vadd.f32 %v9739_v53, %v12501_v54  ;;  %v9765_v44 = vpop.f32.mrf.mxu0 }
 0x2ee   : > { %v7637_v38 = vpop.f32.mrf.mxu1 }
 0x2ef   : > { %v8564_v12 = vadd.f32 %v9765_v44, %v7686_v49  ;;  %v7684_v48 = vadd.f32 %v7637_v38, %v12503_v25  ;;  %v8515_v34 = vpop.f32.mrf.mxu0 }
 0x2f0   : > { %v9740_v62 = vpop.f32.mrf.mxu1 }
 0x2f1   : > { %v8595_v37 = vadd.f32 %v12551_v47, %v8564_v12  ;;  %v8562_v22 = vadd.f32 %v8515_v34, %v7684_v48  ;;  %v7687_v14 = vadd.f32 %v9740_v62, %v12505_v4  ;;  %v9766_v46 = vpop.f32.mrf.mxu0 }
 0x2f2   : > { %v7640_v40 = vpop.f32.mrf.mxu1 }
 0x2f3   : > { %v8619_v50 = vmax.f32 %v8595_v37, 0.0  ;;  %v8593_v54 = vadd.f32 %v12551_v47, %v8562_v22  ;;  %v8565_v13 = vadd.f32 %v9766_v46, %v7687_v14  ;;  %v7685_v51 = vadd.f32 %v7640_v40, %v12507_v11  ;;  %v8518_v24 = vpop.f32.mrf.mxu0 }
 0x2f5   : > { %8643 = vst [vmem:[%s12566_s11 + $0x90] sm:$0xff] %v8619_v50  ;;  %v8617_v25 = vmax.f32 %v8593_v54, 0.0  ;;  %v8596_v33 = vadd.f32 %v12551_v47, %v8565_v13  ;;  %v8563_v5 = vadd.f32 %v8518_v24, %v7685_v51 }
 0x2f7   : > { %8641 = vst [vmem:[%s12566_s11 + $0x80] sm:$0xff] %v8617_v25  ;;  %v8620_v23 = vmax.f32 %v8596_v33, 0.0  ;;  %v8594_v57 = vadd.f32 %v12551_v47, %v8563_v5 }
 0x2f9   : > { %8644 = vst [vmem:[%s12566_s11 + $0x98] sm:$0xff] %v8620_v23  ;;  %v8618_v4 = vmax.f32 %v8594_v57, 0.0 }
 0x2fb   : > { %8642 = vst [vmem:[%s12566_s11 + $0x88] sm:$0xff] %v8618_v4 }
 0x308   : > { %v9743_v41 = vpop.f32.mrf.mxu1 }
 0x309   : > { %v7690_v35 = vadd.f32 %v9743_v41, %v12509_v15  ;;  %v9769_v56 = vpop.f32.mrf.mxu0 }
 0x30a   : > { %v7653_v16 = vpop.f32.mrf.mxu1 }
 0x30b   : > { %v8568_v11 = vadd.f32 %v9769_v56, %v7690_v35  ;;  %v7688_v27 = vadd.f32 %v7653_v16, %v12511_v61  ;;  %v8531_v21 = vpop.f32.mrf.mxu0 }
 0x30c   : > { %v9744_v31 = vpop.f32.mrf.mxu1 }
 0x30d   : > { %v8599_v32 = vadd.f32 %v12551_v47, %v8568_v11  ;;  %v8566_v63 = vadd.f32 %v8531_v21, %v7688_v27  ;;  %v7691_v20 = vadd.f32 %v9744_v31, %v12515_v1  ;;  %v9770_v18 = vpop.f32.mrf.mxu0 }
 0x30e   : > { %v7656_v29 = vpop.f32.mrf.mxu1 }
 0x30f   : > { %v8623_v15 = vmax.f32 %v8599_v32, 0.0  ;;  %v8597_v2 = vadd.f32 %v12551_v47, %v8566_v63  ;;  %v8569_v28 = vadd.f32 %v9770_v18, %v7691_v20  ;;  %v7689_v7 = vadd.f32 %v7656_v29, %v12519_v60  ;;  %v8534_v61 = vpop.f32.mrf.mxu0 }
 0x311   : > { %8647 = vst [vmem:[%s12566_s11 + $0xb0] sm:$0xff] %v8623_v15  ;;  %v8621_v10 = vmax.f32 %v8597_v2, 0.0  ;;  %v8600_v39 = vadd.f32 %v12551_v47, %v8569_v28  ;;  %v8567_v0 = vadd.f32 %v8534_v61, %v7689_v7 }
 0x313   : > { %8645 = vst [vmem:[%s12566_s11 + $0xa0] sm:$0xff] %v8621_v10  ;;  %v8624_v1 = vmax.f32 %v8600_v39, 0.0  ;;  %v8598_v55 = vadd.f32 %v12551_v47, %v8567_v0 }
 0x315   : > { %8648 = vst [vmem:[%s12566_s11 + $0xb8] sm:$0xff] %v8624_v1  ;;  %v8622_v60 = vmax.f32 %v8598_v55, 0.0 }
 0x317   : > { %8646 = vst [vmem:[%s12566_s11 + $0xa8] sm:$0xff] %v8622_v60 }
 0x318   : > { %9864 = shalt.err (!%p9861_p5)
}
 0x319   : > { %s9865_s4 = scalar_lea.hbm %s12650_s26, 3072  ;;  %s9869_s7 = scalar_lea.hbm %s12706_s3, 6144 }
 0x31a   : > { %p9866_p6 = scmp.ne.s32.totalorder %s12650_s26, %s9865_s4  ;;  %p9870_p10 = scmp.lt.s32.totalorder %s12650_s26, %s12706_s3 }
 0x31b   : > { %p9871_p11 = scmp.lt.s32.totalorder %s9869_s7, %s9865_s4 }
 0x31c   : > { %p9867_p7 = pnand %p9866_p6, %p9993_p4 }
 0x31d   : > { %p9872_p12 = por %p9871_p11, %p9870_p10 }
 0x31e   : > { %p9868_p9 = pneg %p9867_p7 }
 0x320   : > { %p9873_p13 = pnand %p9872_p12, %p9868_p9 }
 0x322   : > { %9876 = shalt.err (!%p9873_p13)
}
 0x323   : > { %s9931_s10 = smov 128   ;;  %s9932_s11 = smov 8  }
 0x324   : > { %9786 = dma.vmem_to_hbm [thread:$0]  (%p9993_p4), %s12653_s19, 3072, %s12650_s26, %s12658_s15, %s9931_s10, %s9931_s10, %s9932_s11  }
 0x325 PF: > { %p9792_p0 = scmp.ge.s32.totalorder %s9927_s17, 2  ;;  %s8681_s18 = sand.u32 1, %s9907_s12  }
 0x326   : > { %s8682_s21 = scalar_lea.sflag [#allocation3], %s8681_s18 }
 0x327   : > { %p9789_p1 = pnand %p9792_p0, %p10000_p8 }
 0x329   : > { %p9790_p2 = pneg %p9789_p1 }
 0x32b   : > { %9902 = dma.done.wait (%p9790_p2), %s8682_s21, 3072  }
 0x32c   : > { %9904 = vsyncadd (%p9790_p2), %s8682_s21, 4294964224  ;;  %s16_s17 = sadd.s32 1, %s9927_s17   ;;  %s13087_s12 = smov %s9911_s13 }
 0x32d   : > { %p13_p3 = scmp.ge.s32.totalorder %s16_s17, 4   ;;  %s13088_s13 = smov %s9915_s14 }
 0x32e   : > { %s13089_s14 = smov %s10006_s25  ;;  %s13090_s15 = smov %s9923_s16 }
 0x32f   : > { %s13091_s16 = smov %s13093_s20  ;;  %15 = sbr.rel (!%p13_p3) target bundleno = 4 (0x4), region = 84 }
 0x334   :  { %8687 = vsyncpa [#allocation3], 1 }
 0x335   :  { %8689 = vsyncpa [#allocation3 + $0x1], 1 }

</bundles_post_ra>
